<compile_context>
chip_gen: v6e
topology: v6e:2x2x1
jax: 0.10.0
libtpu: 0.0.40
codegen_flags: <defaults>
</compile_context>

<pallas_src>
import jax
import jax.numpy as jnp
import numpy as np
from jax.experimental import pallas as pl
from jax.experimental.pallas import tpu as pltpu


# ----------------------------------------------------------------------------
# Fused kernel: (S, B, D0) time-major embeddings -> (1, S, S, B) arc scores
# ----------------------------------------------------------------------------
def _make_fused_kernel(n_layers, S, B, H):
    G4, G8 = 4 * H, 8 * H

    def kernel(*refs):
        x_ref = refs[0]
        layer_refs = refs[1:1 + 4 * n_layers]
        whm_ref, bhm_ref, wf_ref, bf_ref, out_ref = refs[1 + 4 * n_layers:]

        def run_layer(x_in, wih_ref, whh_f_ref, whh_b_ref, b_ref):
            D = x_in.shape[-1]
            # Hoisted input projection for BOTH directions at once:
            #   (S*B, D) @ (D, 8H) + (1, 8H), kept as a register value.
            # Column layout: [fwd 4H | bwd 4H], PyTorch gate order (i,f,g,o).
            g = (jnp.dot(x_in.reshape(S * B, D), wih_ref[...],
                         preferred_element_type=jnp.float32)
                 + b_ref[...]).reshape(S, B, G8)

            # TODO(synk): hold W_hh stationary in the MXU across the unrolled
            # recurrence via pltpu.matmul_push_rhs / matmul_acc_lhs /
            # matmul_pop instead of re-staging it on every jnp.dot.
            whh_f = whh_f_ref[...]
            whh_b = whh_b_ref[...]

            h_f = jnp.zeros((B, H), jnp.float32)
            h_b = jnp.zeros((B, H), jnp.float32)
            c_f = jnp.zeros((B, H), jnp.float32)
            c_b = jnp.zeros((B, H), jnp.float32)
            hs_f = [None] * S
            hs_b = [None] * S

            # Fully-unrolled recurrence over the small static sequence; the
            # forward (t) and backward (S-1-t) chains are independent per
            # step and co-issue in the VLIW bundles.
            # TODO(synk): switch to lax.fori_loop with modest unroll if S
            # ever grows beyond ~32 to bound code size / vreg live ranges.
            for t in range(S):
                tb = S - 1 - t
                # Two independent per-direction recurrent dots (B,H)@(H,4H):
                # no block-diagonal zero padding, no per-step h concat.
                rec_f = jnp.dot(h_f, whh_f, preferred_element_type=jnp.float32)
                rec_b = jnp.dot(h_b, whh_b, preferred_element_type=jnp.float32)
                gates_f = rec_f + g[t, :, 0:G4]        # whole-vreg aligned slab
                gates_b = rec_b + g[tb, :, G4:G8]
                # Transcendentals over full-width vregs (EUP slot), gate
                # pieces extracted afterwards.  Gate order: i, f, g, o.
                sg_f = jax.nn.sigmoid(gates_f)
                th_f = jnp.tanh(gates_f)
                sg_b = jax.nn.sigmoid(gates_b)
                th_b = jnp.tanh(gates_b)
                c_f = (sg_f[:, H:2 * H] * c_f
                       + sg_f[:, 0:H] * th_f[:, 2 * H:3 * H])
                c_b = (sg_b[:, H:2 * H] * c_b
                       + sg_b[:, 0:H] * th_b[:, 2 * H:3 * H])
                h_f = sg_f[:, 3 * H:G4] * jnp.tanh(c_f)
                h_b = sg_b[:, 3 * H:G4] * jnp.tanh(c_b)
                hs_f[t] = h_f
                hs_b[tb] = h_b

            # One lane-concat per position, off the serial recurrence chain.
            return [jnp.concatenate([hs_f[s], hs_b[s]], axis=-1)
                    for s in range(S)]

        # ---- stacked bidirectional LSTM; activations never leave regs/VMEM ----
        x_in = x_ref[...]                                 # (S, B, D0)
        for layer in range(n_layers):
            h_list = run_layer(x_in, *layer_refs[4 * layer:4 * layer + 4])
            x_in = jnp.stack(h_list, axis=0)              # (S, B, 2H) time-major

        # ---- biaffine-style score head (mlp_h / mlp_m fused into one matmul) ----
        M = wf_ref.shape[1]
        hm = (jnp.dot(x_in.reshape(S * B, 2 * H), whm_ref[...],
                      preferred_element_type=jnp.float32)
              + bhm_ref[...]).reshape(S, B, 2 * M)
        h_t = hm[:, :, 0:M]                               # (S, B, M)
        m_t = hm[:, :, M:2 * M]                           # (S, B, M)
        # TODO(synk): tile this (S, S, B, M) intermediate over a (row, col)
        # grid once S grows (v7x has only 64 MiB VMEM); trivial at S=8.
        z = jnp.tanh(h_t[:, None, :, :] + m_t[None, :, :, :])     # (S, S, B, M)
        # Lane reduce over M; an MXU contraction would give a 1-lane output
        # and a costly relayout at this size, so keep the VPU+XLU reduce.
        scores = jnp.sum(z * wf_ref[...][None, None], axis=-1)    # (S, S, B)
        out_ref[...] = (scores + bf_ref[...])[None]               # (1, S, S, B)

    return kernel


def fused_forward_scores(x_tm, lstm_packed, whm, bhm, wf, bf, *, batch_tile=None):
    """x_tm: (S, N, D0) float32 time-major embeddings; returns (N, S, S)."""
    S, N, D0 = x_tm.shape
    if batch_tile is None:
        batch_tile = 8 if N % 8 == 0 else N     # fill the 8 sublanes when possible
    assert N % batch_tile == 0
    B = batch_tile
    NB = N // B
    H = lstm_packed[0][1].shape[0]              # whh_f is (H, 4H)
    kernel = _make_fused_kernel(len(lstm_packed), S, B, H)

    args = [x_tm]
    in_specs = [pl.BlockSpec((S, B, D0), lambda n: (0, n, 0))]
    weights = []
    for (wih, whh_f, whh_b, b) in lstm_packed:
        weights += [wih, whh_f, whh_b, b]
    weights += [whm, bhm, wf, bf]
    for w in weights:
        args.append(w)
        in_specs.append(pl.BlockSpec(w.shape, lambda n: (0, 0)))

    res = pl.pallas_call(
        kernel,
        out_shape=jax.ShapeDtypeStruct((NB, S, S, B), jnp.float32),
        grid_spec=pltpu.PrefetchScalarGridSpec(
            num_scalar_prefetch=0,
            grid=(NB,),
            in_specs=in_specs,
            out_specs=pl.BlockSpec((1, S, S, B), lambda n: (n, 0, 0, 0)),
        ),
        compiler_params=pltpu.CompilerParams(
            dimension_semantics=("parallel",)),     # v7x: shard tiles over 2 TCs
    )(*args)
    # (NB, S, S, B) -> (N, S, S); tiny XLA relayout outside the kernel.
    return jnp.transpose(res, (0, 3, 1, 2)).reshape(N, S, S)


# ----------------------------------------------------------------------------
# Parameters.  "Standard" layout mirrors PyTorch (transposed to (in, out),
# gate order (i, f, g, o), biases pre-summed); the reference uses it directly
# and pack_params converts it to the fused-kernel layout.
# ----------------------------------------------------------------------------
def init_params(key, word_vocab, pos_vocab, word_dim, pos_dim, hidden,
                mlp_out, lstm_layers):
    n_keys = 2 + 6 * lstm_layers + 6
    ks = iter(jax.random.split(key, n_keys))

    def rnd(shape, scale=0.1):
        return jax.random.normal(next(ks), shape, jnp.float32) * scale

    params = {
        "word_emb": rnd((word_vocab, word_dim)),
        "pos_emb": rnd((pos_vocab, pos_dim)),
        "lstm": [],
        "wh": rnd((2 * hidden, mlp_out)), "bh": rnd((1, mlp_out)),
        "wm": rnd((2 * hidden, mlp_out)), "bm": rnd((1, mlp_out)),
        "wf": rnd((1, mlp_out)), "bf": rnd((1, 1)),
    }
    d_in = word_dim + pos_dim
    for _ in range(lstm_layers):
        fwd = (rnd((d_in, 4 * hidden)), rnd((hidden, 4 * hidden)),
               rnd((1, 4 * hidden)))
        bwd = (rnd((d_in, 4 * hidden)), rnd((hidden, 4 * hidden)),
               rnd((1, 4 * hidden)))
        params["lstm"].append((fwd, bwd))
        d_in = 2 * hidden
    return params


def pack_params(params):
    """Kernel layout: per layer (wih_cat (D,8H), whh_f (H,4H), whh_b (H,4H),
    b_cat (1,8H)); mlp_h/mlp_m fused into whm/bhm.  Native gate order kept."""
    packed = {
        "word_emb": params["word_emb"],
        "pos_emb": params["pos_emb"],
        "lstm": [],
        "whm": jnp.concatenate([params["wh"], params["wm"]], axis=1),
        "bhm": jnp.concatenate([params["bh"], params["bm"]], axis=1),
        "wf": params["wf"],
        "bf": params["bf"],
    }
    for (fwd, bwd) in params["lstm"]:
        w_ih_f, w_hh_f, b_f = fwd
        w_ih_b, w_hh_b, b_b = bwd
        packed["lstm"].append((
            jnp.concatenate([w_ih_f, w_ih_b], axis=1),   # (D, 8H)
            w_hh_f,                                      # (H, 4H)
            w_hh_b,                                      # (H, 4H)
            jnp.concatenate([b_f, b_b], axis=1),         # (1, 8H)
        ))
    return packed


@jax.jit
def forward(word_idx, pos_idx, packed):
    # word_idx, pos_idx: (N, S) int32 -- N sentences per call (N=1 reproduces
    # the PyTorch per-sentence forward exactly).
    we = jnp.take(packed["word_emb"], word_idx, axis=0)       # (N, S, word_dim)
    pe = jnp.take(packed["pos_emb"], pos_idx, axis=0)         # (N, S, pos_dim)
    x = jnp.concatenate([we, pe], axis=-1)                    # (N, S, D0)
    x_tm = jnp.transpose(x, (1, 0, 2))                        # (S, N, D0)
    return fused_forward_scores(x_tm, packed["lstm"], packed["whm"],
                                packed["bhm"], packed["wf"], packed["bf"])


# ----------------------------------------------------------------------------
# Pure-JAX reference (standard layout) for the correctness check
# ----------------------------------------------------------------------------
def _ref_lstm_dir(x, w_ih, w_hh, b):
    S = x.shape[0]
    H = w_hh.shape[0]
    h = jnp.zeros((1, H), jnp.float32)
    c = jnp.zeros((1, H), jnp.float32)
    outs = []
    for t in range(S):
        gates = x[t:t + 1] @ w_ih + h @ w_hh + b
        i = jax.nn.sigmoid(gates[:, 0:H])
        f = jax.nn.sigmoid(gates[:, H:2 * H])
        g = jnp.tanh(gates[:, 2 * H:3 * H])
        o = jax.nn.sigmoid(gates[:, 3 * H:4 * H])
        c = f * c + i * g
        h = o * jnp.tanh(c)
        outs.append(h)
    return jnp.concatenate(outs, axis=0)


def forward_ref(word_idx, pos_idx, params):
    outs = []
    for n in range(word_idx.shape[0]):
        we = jnp.take(params["word_emb"], word_idx[n], axis=0)
        pe = jnp.take(params["pos_emb"], pos_idx[n], axis=0)
        x = jnp.concatenate([we, pe], axis=-1)
        for (fwd_p, bwd_p) in params["lstm"]:
            h_f = _ref_lstm_dir(x, *fwd_p)
            h_b = _ref_lstm_dir(x[::-1], *bwd_p)[::-1]
            x = jnp.concatenate([h_f, h_b], axis=-1)
        h_out = x @ params["wh"] + params["bh"]
        m_out = x @ params["wm"] + params["bm"]
        z = jnp.tanh(h_out[:, None, :] + m_out[None, :, :])
        scores = jnp.sum(z * params["wf"][None, :, :], axis=-1) + params["bf"]
        outs.append(scores)
    return jnp.stack(outs, axis=0)


if __name__ == "__main__":
    WORD_VOCAB, POS_VOCAB = 50, 20
    WORD_DIM, POS_DIM = 32, 16
    HIDDEN, MLP_OUT, LSTM_LAYERS = 32, 32, 2
    S, N = 8, 16                       # 16 sentences -> 2 grid steps of 8

    key = jax.random.PRNGKey(0)
    k_params, k_w, k_p = jax.random.split(key, 3)
    params = init_params(k_params, WORD_VOCAB, POS_VOCAB, WORD_DIM, POS_DIM,
                         HIDDEN, MLP_OUT, LSTM_LAYERS)
    packed = pack_params(params)

    word_idx = jax.random.randint(k_w, (N, S), 0, WORD_VOCAB, dtype=jnp.int32)
    pos_idx = jax.random.randint(k_p, (N, S), 0, POS_VOCAB, dtype=jnp.int32)

    scores = forward(word_idx, pos_idx, packed)
    scores = jax.block_until_ready(scores)
    assert scores.shape == (N, S, S)

    ref = forward_ref(word_idx, pos_idx, params)
    np.testing.assert_allclose(np.asarray(scores), np.asarray(ref),
                               rtol=2e-3, atol=2e-3)
    print("KERNEL_OK")
</pallas_src>

<mosaic_0001>
module attributes {stable_mosaic.version = 11 : i64} {
  func.func @kernel(%arg0: i32, %arg1: memref<8x8x48xf32, #tpu.memory_space<vmem>>, %arg2: memref<48x256xf32, #tpu.memory_space<vmem>>, %arg3: memref<32x128xf32, #tpu.memory_space<vmem>>, %arg4: memref<32x128xf32, #tpu.memory_space<vmem>>, %arg5: memref<1x256xf32, #tpu.memory_space<vmem>>, %arg6: memref<64x256xf32, #tpu.memory_space<vmem>>, %arg7: memref<32x128xf32, #tpu.memory_space<vmem>>, %arg8: memref<32x128xf32, #tpu.memory_space<vmem>>, %arg9: memref<1x256xf32, #tpu.memory_space<vmem>>, %arg10: memref<64x64xf32, #tpu.memory_space<vmem>>, %arg11: memref<1x64xf32, #tpu.memory_space<vmem>>, %arg12: memref<1x32xf32, #tpu.memory_space<vmem>>, %arg13: memref<1x1xf32, #tpu.memory_space<vmem>>, %arg14: memref<1x8x8x8xf32, #tpu.memory_space<vmem>>) attributes {dimension_semantics = [#tpu.dimension_semantics<parallel>], iteration_bounds = array<i64: 2>, scalar_prefetch = 0 : i64, scratch_operands = 0 : i64, tpu.core_type = #tpu.core_type<tc>, window_params = [{transform_indices = @transform_0, window_bounds = array<i64: 8, 8, 48>}, {pipeline_mode = #tpu.pipeline_mode<synchronous>, transform_indices = @transform_1, window_bounds = array<i64: 48, 256>}, {pipeline_mode = #tpu.pipeline_mode<synchronous>, transform_indices = @transform_2, window_bounds = array<i64: 32, 128>}, {pipeline_mode = #tpu.pipeline_mode<synchronous>, transform_indices = @transform_3, window_bounds = array<i64: 32, 128>}, {pipeline_mode = #tpu.pipeline_mode<synchronous>, transform_indices = @transform_4, window_bounds = array<i64: 1, 256>}, {pipeline_mode = #tpu.pipeline_mode<synchronous>, transform_indices = @transform_5, window_bounds = array<i64: 64, 256>}, {pipeline_mode = #tpu.pipeline_mode<synchronous>, transform_indices = @transform_6, window_bounds = array<i64: 32, 128>}, {pipeline_mode = #tpu.pipeline_mode<synchronous>, transform_indices = @transform_7, window_bounds = array<i64: 32, 128>}, {pipeline_mode = #tpu.pipeline_mode<synchronous>, transform_indices = @transform_8, window_bounds = array<i64: 1, 256>}, {pipeline_mode = #tpu.pipeline_mode<synchronous>, transform_indices = @transform_9, window_bounds = array<i64: 64, 64>}, {pipeline_mode = #tpu.pipeline_mode<synchronous>, transform_indices = @transform_10, window_bounds = array<i64: 1, 64>}, {pipeline_mode = #tpu.pipeline_mode<synchronous>, transform_indices = @transform_11, window_bounds = array<i64: 1, 32>}, {pipeline_mode = #tpu.pipeline_mode<synchronous>, transform_indices = @transform_12, window_bounds = array<i64: 1, 1>}, {transform_indices = @transform_13, window_bounds = array<i64: 1, 8, 8, 8>}]} {
    %c0 = arith.constant 0 : index
    %c0_0 = arith.constant 0 : index
    %c0_1 = arith.constant 0 : index
    %0 = vector.load %arg1[%c0, %c0_0, %c0_1] : memref<8x8x48xf32, #tpu.memory_space<vmem>>, vector<8x8x48xf32>
    %1 = vector.shape_cast %0 : vector<8x8x48xf32> to vector<64x48xf32>
    %c0_2 = arith.constant 0 : index
    %c0_3 = arith.constant 0 : index
    %2 = vector.load %arg2[%c0_2, %c0_3] : memref<48x256xf32, #tpu.memory_space<vmem>>, vector<48x256xf32>
    %cst = arith.constant dense<0.000000e+00> : vector<64x256xf32>
    %3 = tpu.matmul %1, %2, %cst {dimension_numbers = #tpu.dot_dimension_numbers<[1], [0], [0], [1], [0, 0, 1, 1], [], []>} : vector<64x48xf32>, vector<48x256xf32>, vector<64x256xf32> -> vector<64x256xf32>
    %c0_4 = arith.constant 0 : index
    %c0_5 = arith.constant 0 : index
    %4 = vector.load %arg5[%c0_4, %c0_5] : memref<1x256xf32, #tpu.memory_space<vmem>>, vector<1x256xf32>
    %5 = vector.broadcast %4 : vector<1x256xf32> to vector<64x256xf32>
    %6 = arith.addf %3, %5 : vector<64x256xf32>
    %7 = vector.shape_cast %6 : vector<64x256xf32> to vector<8x8x256xf32>
    %c0_6 = arith.constant 0 : index
    %c0_7 = arith.constant 0 : index
    %8 = vector.load %arg3[%c0_6, %c0_7] : memref<32x128xf32, #tpu.memory_space<vmem>>, vector<32x128xf32>
    %c0_8 = arith.constant 0 : index
    %c0_9 = arith.constant 0 : index
    %9 = vector.load %arg4[%c0_8, %c0_9] : memref<32x128xf32, #tpu.memory_space<vmem>>, vector<32x128xf32>
    %cst_10 = arith.constant 0.000000e+00 : f32
    %10 = vector.broadcast %cst_10 : f32 to vector<8x32xf32>
    %cst_11 = arith.constant 0.000000e+00 : f32
    %11 = vector.broadcast %cst_11 : f32 to vector<8x32xf32>
    %cst_12 = arith.constant 0.000000e+00 : f32
    %12 = vector.broadcast %cst_12 : f32 to vector<8x32xf32>
    %cst_13 = arith.constant 0.000000e+00 : f32
    %13 = vector.broadcast %cst_13 : f32 to vector<8x32xf32>
    %cst_14 = arith.constant dense<0.000000e+00> : vector<8x128xf32>
    %14 = tpu.matmul %10, %8, %cst_14 {dimension_numbers = #tpu.dot_dimension_numbers<[1], [0], [0], [1], [0, 0, 1, 1], [], []>} : vector<8x32xf32>, vector<32x128xf32>, vector<8x128xf32> -> vector<8x128xf32>
    %cst_15 = arith.constant dense<0.000000e+00> : vector<8x128xf32>
    %15 = tpu.matmul %11, %9, %cst_15 {dimension_numbers = #tpu.dot_dimension_numbers<[1], [0], [0], [1], [0, 0, 1, 1], [], []>} : vector<8x32xf32>, vector<32x128xf32>, vector<8x128xf32> -> vector<8x128xf32>
    %16 = vector.extract_strided_slice %7 {offsets = [0, 0, 0], sizes = [1, 8, 128], strides = [1, 1, 1]} : vector<8x8x256xf32> to vector<1x8x128xf32>
    %17 = vector.shape_cast %16 : vector<1x8x128xf32> to vector<8x128xf32>
    %18 = arith.addf %14, %17 : vector<8x128xf32>
    %19 = vector.extract_strided_slice %7 {offsets = [7, 0, 128], sizes = [1, 8, 128], strides = [1, 1, 1]} : vector<8x8x256xf32> to vector<1x8x128xf32>
    %20 = vector.shape_cast %19 : vector<1x8x128xf32> to vector<8x128xf32>
    %21 = arith.addf %15, %20 : vector<8x128xf32>
    %22 = arith.negf %18 : vector<8x128xf32>
    %23 = math.exp %22 : vector<8x128xf32>
    %cst_16 = arith.constant 1.000000e+00 : f32
    %24 = vector.broadcast %cst_16 : f32 to vector<8x128xf32>
    %25 = arith.addf %24, %23 : vector<8x128xf32>
    %26 = arith.divf %24, %25 : vector<8x128xf32>
    %27 = math.tanh %18 : vector<8x128xf32>
    %28 = arith.negf %21 : vector<8x128xf32>
    %29 = math.exp %28 : vector<8x128xf32>
    %cst_17 = arith.constant 1.000000e+00 : f32
    %30 = vector.broadcast %cst_17 : f32 to vector<8x128xf32>
    %31 = arith.addf %30, %29 : vector<8x128xf32>
    %32 = arith.divf %30, %31 : vector<8x128xf32>
    %33 = math.tanh %21 : vector<8x128xf32>
    %34 = vector.extract_strided_slice %26 {offsets = [0, 32], sizes = [8, 32], strides = [1, 1]} : vector<8x128xf32> to vector<8x32xf32>
    %35 = arith.mulf %34, %12 : vector<8x32xf32>
    %36 = vector.extract_strided_slice %26 {offsets = [0, 0], sizes = [8, 32], strides = [1, 1]} : vector<8x128xf32> to vector<8x32xf32>
    %37 = vector.extract_strided_slice %27 {offsets = [0, 64], sizes = [8, 32], strides = [1, 1]} : vector<8x128xf32> to vector<8x32xf32>
    %38 = arith.mulf %36, %37 : vector<8x32xf32>
    %39 = arith.addf %35, %38 : vector<8x32xf32>
    %40 = vector.extract_strided_slice %32 {offsets = [0, 32], sizes = [8, 32], strides = [1, 1]} : vector<8x128xf32> to vector<8x32xf32>
    %41 = arith.mulf %40, %13 : vector<8x32xf32>
    %42 = vector.extract_strided_slice %32 {offsets = [0, 0], sizes = [8, 32], strides = [1, 1]} : vector<8x128xf32> to vector<8x32xf32>
    %43 = vector.extract_strided_slice %33 {offsets = [0, 64], sizes = [8, 32], strides = [1, 1]} : vector<8x128xf32> to vector<8x32xf32>
    %44 = arith.mulf %42, %43 : vector<8x32xf32>
    %45 = arith.addf %41, %44 : vector<8x32xf32>
    %46 = vector.extract_strided_slice %26 {offsets = [0, 96], sizes = [8, 32], strides = [1, 1]} : vector<8x128xf32> to vector<8x32xf32>
    %47 = math.tanh %39 : vector<8x32xf32>
    %48 = arith.mulf %46, %47 : vector<8x32xf32>
    %49 = vector.extract_strided_slice %32 {offsets = [0, 96], sizes = [8, 32], strides = [1, 1]} : vector<8x128xf32> to vector<8x32xf32>
    %50 = math.tanh %45 : vector<8x32xf32>
    %51 = arith.mulf %49, %50 : vector<8x32xf32>
    %cst_18 = arith.constant dense<0.000000e+00> : vector<8x128xf32>
    %52 = tpu.matmul %48, %8, %cst_18 {dimension_numbers = #tpu.dot_dimension_numbers<[1], [0], [0], [1], [0, 0, 1, 1], [], []>} : vector<8x32xf32>, vector<32x128xf32>, vector<8x128xf32> -> vector<8x128xf32>
    %cst_19 = arith.constant dense<0.000000e+00> : vector<8x128xf32>
    %53 = tpu.matmul %51, %9, %cst_19 {dimension_numbers = #tpu.dot_dimension_numbers<[1], [0], [0], [1], [0, 0, 1, 1], [], []>} : vector<8x32xf32>, vector<32x128xf32>, vector<8x128xf32> -> vector<8x128xf32>
    %54 = vector.extract_strided_slice %7 {offsets = [1, 0, 0], sizes = [1, 8, 128], strides = [1, 1, 1]} : vector<8x8x256xf32> to vector<1x8x128xf32>
    %55 = vector.shape_cast %54 : vector<1x8x128xf32> to vector<8x128xf32>
    %56 = arith.addf %52, %55 : vector<8x128xf32>
    %57 = vector.extract_strided_slice %7 {offsets = [6, 0, 128], sizes = [1, 8, 128], strides = [1, 1, 1]} : vector<8x8x256xf32> to vector<1x8x128xf32>
    %58 = vector.shape_cast %57 : vector<1x8x128xf32> to vector<8x128xf32>
    %59 = arith.addf %53, %58 : vector<8x128xf32>
    %60 = arith.negf %56 : vector<8x128xf32>
    %61 = math.exp %60 : vector<8x128xf32>
    %cst_20 = arith.constant 1.000000e+00 : f32
    %62 = vector.broadcast %cst_20 : f32 to vector<8x128xf32>
    %63 = arith.addf %62, %61 : vector<8x128xf32>
    %64 = arith.divf %62, %63 : vector<8x128xf32>
    %65 = math.tanh %56 : vector<8x128xf32>
    %66 = arith.negf %59 : vector<8x128xf32>
    %67 = math.exp %66 : vector<8x128xf32>
    %cst_21 = arith.constant 1.000000e+00 : f32
    %68 = vector.broadcast %cst_21 : f32 to vector<8x128xf32>
    %69 = arith.addf %68, %67 : vector<8x128xf32>
    %70 = arith.divf %68, %69 : vector<8x128xf32>
    %71 = math.tanh %59 : vector<8x128xf32>
    %72 = vector.extract_strided_slice %64 {offsets = [0, 32], sizes = [8, 32], strides = [1, 1]} : vector<8x128xf32> to vector<8x32xf32>
    %73 = arith.mulf %72, %39 : vector<8x32xf32>
    %74 = vector.extract_strided_slice %64 {offsets = [0, 0], sizes = [8, 32], strides = [1, 1]} : vector<8x128xf32> to vector<8x32xf32>
    %75 = vector.extract_strided_slice %65 {offsets = [0, 64], sizes = [8, 32], strides = [1, 1]} : vector<8x128xf32> to vector<8x32xf32>
    %76 = arith.mulf %74, %75 : vector<8x32xf32>
    %77 = arith.addf %73, %76 : vector<8x32xf32>
    %78 = vector.extract_strided_slice %70 {offsets = [0, 32], sizes = [8, 32], strides = [1, 1]} : vector<8x128xf32> to vector<8x32xf32>
    %79 = arith.mulf %78, %45 : vector<8x32xf32>
    %80 = vector.extract_strided_slice %70 {offsets = [0, 0], sizes = [8, 32], strides = [1, 1]} : vector<8x128xf32> to vector<8x32xf32>
    %81 = vector.extract_strided_slice %71 {offsets = [0, 64], sizes = [8, 32], strides = [1, 1]} : vector<8x128xf32> to vector<8x32xf32>
    %82 = arith.mulf %80, %81 : vector<8x32xf32>
    %83 = arith.addf %79, %82 : vector<8x32xf32>
    %84 = vector.extract_strided_slice %64 {offsets = [0, 96], sizes = [8, 32], strides = [1, 1]} : vector<8x128xf32> to vector<8x32xf32>
    %85 = math.tanh %77 : vector<8x32xf32>
    %86 = arith.mulf %84, %85 : vector<8x32xf32>
    %87 = vector.extract_strided_slice %70 {offsets = [0, 96], sizes = [8, 32], strides = [1, 1]} : vector<8x128xf32> to vector<8x32xf32>
    %88 = math.tanh %83 : vector<8x32xf32>
    %89 = arith.mulf %87, %88 : vector<8x32xf32>
    %cst_22 = arith.constant dense<0.000000e+00> : vector<8x128xf32>
    %90 = tpu.matmul %86, %8, %cst_22 {dimension_numbers = #tpu.dot_dimension_numbers<[1], [0], [0], [1], [0, 0, 1, 1], [], []>} : vector<8x32xf32>, vector<32x128xf32>, vector<8x128xf32> -> vector<8x128xf32>
    %cst_23 = arith.constant dense<0.000000e+00> : vector<8x128xf32>
    %91 = tpu.matmul %89, %9, %cst_23 {dimension_numbers = #tpu.dot_dimension_numbers<[1], [0], [0], [1], [0, 0, 1, 1], [], []>} : vector<8x32xf32>, vector<32x128xf32>, vector<8x128xf32> -> vector<8x128xf32>
    %92 = vector.extract_strided_slice %7 {offsets = [2, 0, 0], sizes = [1, 8, 128], strides = [1, 1, 1]} : vector<8x8x256xf32> to vector<1x8x128xf32>
    %93 = vector.shape_cast %92 : vector<1x8x128xf32> to vector<8x128xf32>
    %94 = arith.addf %90, %93 : vector<8x128xf32>
    %95 = vector.extract_strided_slice %7 {offsets = [5, 0, 128], sizes = [1, 8, 128], strides = [1, 1, 1]} : vector<8x8x256xf32> to vector<1x8x128xf32>
    %96 = vector.shape_cast %95 : vector<1x8x128xf32> to vector<8x128xf32>
    %97 = arith.addf %91, %96 : vector<8x128xf32>
    %98 = arith.negf %94 : vector<8x128xf32>
    %99 = math.exp %98 : vector<8x128xf32>
    %cst_24 = arith.constant 1.000000e+00 : f32
    %100 = vector.broadcast %cst_24 : f32 to vector<8x128xf32>
    %101 = arith.addf %100, %99 : vector<8x128xf32>
    %102 = arith.divf %100, %101 : vector<8x128xf32>
    %103 = math.tanh %94 : vector<8x128xf32>
    %104 = arith.negf %97 : vector<8x128xf32>
    %105 = math.exp %104 : vector<8x128xf32>
    %cst_25 = arith.constant 1.000000e+00 : f32
    %106 = vector.broadcast %cst_25 : f32 to vector<8x128xf32>
    %107 = arith.addf %106, %105 : vector<8x128xf32>
    %108 = arith.divf %106, %107 : vector<8x128xf32>
    %109 = math.tanh %97 : vector<8x128xf32>
    %110 = vector.extract_strided_slice %102 {offsets = [0, 32], sizes = [8, 32], strides = [1, 1]} : vector<8x128xf32> to vector<8x32xf32>
    %111 = arith.mulf %110, %77 : vector<8x32xf32>
    %112 = vector.extract_strided_slice %102 {offsets = [0, 0], sizes = [8, 32], strides = [1, 1]} : vector<8x128xf32> to vector<8x32xf32>
    %113 = vector.extract_strided_slice %103 {offsets = [0, 64], sizes = [8, 32], strides = [1, 1]} : vector<8x128xf32> to vector<8x32xf32>
    %114 = arith.mulf %112, %113 : vector<8x32xf32>
    %115 = arith.addf %111, %114 : vector<8x32xf32>
    %116 = vector.extract_strided_slice %108 {offsets = [0, 32], sizes = [8, 32], strides = [1, 1]} : vector<8x128xf32> to vector<8x32xf32>
    %117 = arith.mulf %116, %83 : vector<8x32xf32>
    %118 = vector.extract_strided_slice %108 {offsets = [0, 0], sizes = [8, 32], strides = [1, 1]} : vector<8x128xf32> to vector<8x32xf32>
    %119 = vector.extract_strided_slice %109 {offsets = [0, 64], sizes = [8, 32], strides = [1, 1]} : vector<8x128xf32> to vector<8x32xf32>
    %120 = arith.mulf %118, %119 : vector<8x32xf32>
    %121 = arith.addf %117, %120 : vector<8x32xf32>
    %122 = vector.extract_strided_slice %102 {offsets = [0, 96], sizes = [8, 32], strides = [1, 1]} : vector<8x128xf32> to vector<8x32xf32>
    %123 = math.tanh %115 : vector<8x32xf32>
    %124 = arith.mulf %122, %123 : vector<8x32xf32>
    %125 = vector.extract_strided_slice %108 {offsets = [0, 96], sizes = [8, 32], strides = [1, 1]} : vector<8x128xf32> to vector<8x32xf32>
    %126 = math.tanh %121 : vector<8x32xf32>
    %127 = arith.mulf %125, %126 : vector<8x32xf32>
    %cst_26 = arith.constant dense<0.000000e+00> : vector<8x128xf32>
    %128 = tpu.matmul %124, %8, %cst_26 {dimension_numbers = #tpu.dot_dimension_numbers<[1], [0], [0], [1], [0, 0, 1, 1], [], []>} : vector<8x32xf32>, vector<32x128xf32>, vector<8x128xf32> -> vector<8x128xf32>
    %cst_27 = arith.constant dense<0.000000e+00> : vector<8x128xf32>
    %129 = tpu.matmul %127, %9, %cst_27 {dimension_numbers = #tpu.dot_dimension_numbers<[1], [0], [0], [1], [0, 0, 1, 1], [], []>} : vector<8x32xf32>, vector<32x128xf32>, vector<8x128xf32> -> vector<8x128xf32>
    %130 = vector.extract_strided_slice %7 {offsets = [3, 0, 0], sizes = [1, 8, 128], strides = [1, 1, 1]} : vector<8x8x256xf32> to vector<1x8x128xf32>
    %131 = vector.shape_cast %130 : vector<1x8x128xf32> to vector<8x128xf32>
    %132 = arith.addf %128, %131 : vector<8x128xf32>
    %133 = vector.extract_strided_slice %7 {offsets = [4, 0, 128], sizes = [1, 8, 128], strides = [1, 1, 1]} : vector<8x8x256xf32> to vector<1x8x128xf32>
    %134 = vector.shape_cast %133 : vector<1x8x128xf32> to vector<8x128xf32>
    %135 = arith.addf %129, %134 : vector<8x128xf32>
    %136 = arith.negf %132 : vector<8x128xf32>
    %137 = math.exp %136 : vector<8x128xf32>
    %cst_28 = arith.constant 1.000000e+00 : f32
    %138 = vector.broadcast %cst_28 : f32 to vector<8x128xf32>
    %139 = arith.addf %138, %137 : vector<8x128xf32>
    %140 = arith.divf %138, %139 : vector<8x128xf32>
    %141 = math.tanh %132 : vector<8x128xf32>
    %142 = arith.negf %135 : vector<8x128xf32>
    %143 = math.exp %142 : vector<8x128xf32>
    %cst_29 = arith.constant 1.000000e+00 : f32
    %144 = vector.broadcast %cst_29 : f32 to vector<8x128xf32>
    %145 = arith.addf %144, %143 : vector<8x128xf32>
    %146 = arith.divf %144, %145 : vector<8x128xf32>
    %147 = math.tanh %135 : vector<8x128xf32>
    %148 = vector.extract_strided_slice %140 {offsets = [0, 32], sizes = [8, 32], strides = [1, 1]} : vector<8x128xf32> to vector<8x32xf32>
    %149 = arith.mulf %148, %115 : vector<8x32xf32>
    %150 = vector.extract_strided_slice %140 {offsets = [0, 0], sizes = [8, 32], strides = [1, 1]} : vector<8x128xf32> to vector<8x32xf32>
    %151 = vector.extract_strided_slice %141 {offsets = [0, 64], sizes = [8, 32], strides = [1, 1]} : vector<8x128xf32> to vector<8x32xf32>
    %152 = arith.mulf %150, %151 : vector<8x32xf32>
    %153 = arith.addf %149, %152 : vector<8x32xf32>
    %154 = vector.extract_strided_slice %146 {offsets = [0, 32], sizes = [8, 32], strides = [1, 1]} : vector<8x128xf32> to vector<8x32xf32>
    %155 = arith.mulf %154, %121 : vector<8x32xf32>
    %156 = vector.extract_strided_slice %146 {offsets = [0, 0], sizes = [8, 32], strides = [1, 1]} : vector<8x128xf32> to vector<8x32xf32>
    %157 = vector.extract_strided_slice %147 {offsets = [0, 64], sizes = [8, 32], strides = [1, 1]} : vector<8x128xf32> to vector<8x32xf32>
    %158 = arith.mulf %156, %157 : vector<8x32xf32>
    %159 = arith.addf %155, %158 : vector<8x32xf32>
    %160 = vector.extract_strided_slice %140 {offsets = [0, 96], sizes = [8, 32], strides = [1, 1]} : vector<8x128xf32> to vector<8x32xf32>
    %161 = math.tanh %153 : vector<8x32xf32>
    %162 = arith.mulf %160, %161 : vector<8x32xf32>
    %163 = vector.extract_strided_slice %146 {offsets = [0, 96], sizes = [8, 32], strides = [1, 1]} : vector<8x128xf32> to vector<8x32xf32>
    %164 = math.tanh %159 : vector<8x32xf32>
    %165 = arith.mulf %163, %164 : vector<8x32xf32>
    %cst_30 = arith.constant dense<0.000000e+00> : vector<8x128xf32>
    %166 = tpu.matmul %162, %8, %cst_30 {dimension_numbers = #tpu.dot_dimension_numbers<[1], [0], [0], [1], [0, 0, 1, 1], [], []>} : vector<8x32xf32>, vector<32x128xf32>, vector<8x128xf32> -> vector<8x128xf32>
    %cst_31 = arith.constant dense<0.000000e+00> : vector<8x128xf32>
    %167 = tpu.matmul %165, %9, %cst_31 {dimension_numbers = #tpu.dot_dimension_numbers<[1], [0], [0], [1], [0, 0, 1, 1], [], []>} : vector<8x32xf32>, vector<32x128xf32>, vector<8x128xf32> -> vector<8x128xf32>
    %168 = vector.extract_strided_slice %7 {offsets = [4, 0, 0], sizes = [1, 8, 128], strides = [1, 1, 1]} : vector<8x8x256xf32> to vector<1x8x128xf32>
    %169 = vector.shape_cast %168 : vector<1x8x128xf32> to vector<8x128xf32>
    %170 = arith.addf %166, %169 : vector<8x128xf32>
    %171 = vector.extract_strided_slice %7 {offsets = [3, 0, 128], sizes = [1, 8, 128], strides = [1, 1, 1]} : vector<8x8x256xf32> to vector<1x8x128xf32>
    %172 = vector.shape_cast %171 : vector<1x8x128xf32> to vector<8x128xf32>
    %173 = arith.addf %167, %172 : vector<8x128xf32>
    %174 = arith.negf %170 : vector<8x128xf32>
    %175 = math.exp %174 : vector<8x128xf32>
    %cst_32 = arith.constant 1.000000e+00 : f32
    %176 = vector.broadcast %cst_32 : f32 to vector<8x128xf32>
    %177 = arith.addf %176, %175 : vector<8x128xf32>
    %178 = arith.divf %176, %177 : vector<8x128xf32>
    %179 = math.tanh %170 : vector<8x128xf32>
    %180 = arith.negf %173 : vector<8x128xf32>
    %181 = math.exp %180 : vector<8x128xf32>
    %cst_33 = arith.constant 1.000000e+00 : f32
    %182 = vector.broadcast %cst_33 : f32 to vector<8x128xf32>
    %183 = arith.addf %182, %181 : vector<8x128xf32>
    %184 = arith.divf %182, %183 : vector<8x128xf32>
    %185 = math.tanh %173 : vector<8x128xf32>
    %186 = vector.extract_strided_slice %178 {offsets = [0, 32], sizes = [8, 32], strides = [1, 1]} : vector<8x128xf32> to vector<8x32xf32>
    %187 = arith.mulf %186, %153 : vector<8x32xf32>
    %188 = vector.extract_strided_slice %178 {offsets = [0, 0], sizes = [8, 32], strides = [1, 1]} : vector<8x128xf32> to vector<8x32xf32>
    %189 = vector.extract_strided_slice %179 {offsets = [0, 64], sizes = [8, 32], strides = [1, 1]} : vector<8x128xf32> to vector<8x32xf32>
    %190 = arith.mulf %188, %189 : vector<8x32xf32>
    %191 = arith.addf %187, %190 : vector<8x32xf32>
    %192 = vector.extract_strided_slice %184 {offsets = [0, 32], sizes = [8, 32], strides = [1, 1]} : vector<8x128xf32> to vector<8x32xf32>
    %193 = arith.mulf %192, %159 : vector<8x32xf32>
    %194 = vector.extract_strided_slice %184 {offsets = [0, 0], sizes = [8, 32], strides = [1, 1]} : vector<8x128xf32> to vector<8x32xf32>
    %195 = vector.extract_strided_slice %185 {offsets = [0, 64], sizes = [8, 32], strides = [1, 1]} : vector<8x128xf32> to vector<8x32xf32>
    %196 = arith.mulf %194, %195 : vector<8x32xf32>
    %197 = arith.addf %193, %196 : vector<8x32xf32>
    %198 = vector.extract_strided_slice %178 {offsets = [0, 96], sizes = [8, 32], strides = [1, 1]} : vector<8x128xf32> to vector<8x32xf32>
    %199 = math.tanh %191 : vector<8x32xf32>
    %200 = arith.mulf %198, %199 : vector<8x32xf32>
    %201 = vector.extract_strided_slice %184 {offsets = [0, 96], sizes = [8, 32], strides = [1, 1]} : vector<8x128xf32> to vector<8x32xf32>
    %202 = math.tanh %197 : vector<8x32xf32>
    %203 = arith.mulf %201, %202 : vector<8x32xf32>
    %cst_34 = arith.constant dense<0.000000e+00> : vector<8x128xf32>
    %204 = tpu.matmul %200, %8, %cst_34 {dimension_numbers = #tpu.dot_dimension_numbers<[1], [0], [0], [1], [0, 0, 1, 1], [], []>} : vector<8x32xf32>, vector<32x128xf32>, vector<8x128xf32> -> vector<8x128xf32>
    %cst_35 = arith.constant dense<0.000000e+00> : vector<8x128xf32>
    %205 = tpu.matmul %203, %9, %cst_35 {dimension_numbers = #tpu.dot_dimension_numbers<[1], [0], [0], [1], [0, 0, 1, 1], [], []>} : vector<8x32xf32>, vector<32x128xf32>, vector<8x128xf32> -> vector<8x128xf32>
    %206 = vector.extract_strided_slice %7 {offsets = [5, 0, 0], sizes = [1, 8, 128], strides = [1, 1, 1]} : vector<8x8x256xf32> to vector<1x8x128xf32>
    %207 = vector.shape_cast %206 : vector<1x8x128xf32> to vector<8x128xf32>
    %208 = arith.addf %204, %207 : vector<8x128xf32>
    %209 = vector.extract_strided_slice %7 {offsets = [2, 0, 128], sizes = [1, 8, 128], strides = [1, 1, 1]} : vector<8x8x256xf32> to vector<1x8x128xf32>
    %210 = vector.shape_cast %209 : vector<1x8x128xf32> to vector<8x128xf32>
    %211 = arith.addf %205, %210 : vector<8x128xf32>
    %212 = arith.negf %208 : vector<8x128xf32>
    %213 = math.exp %212 : vector<8x128xf32>
    %cst_36 = arith.constant 1.000000e+00 : f32
    %214 = vector.broadcast %cst_36 : f32 to vector<8x128xf32>
    %215 = arith.addf %214, %213 : vector<8x128xf32>
    %216 = arith.divf %214, %215 : vector<8x128xf32>
    %217 = math.tanh %208 : vector<8x128xf32>
    %218 = arith.negf %211 : vector<8x128xf32>
    %219 = math.exp %218 : vector<8x128xf32>
    %cst_37 = arith.constant 1.000000e+00 : f32
    %220 = vector.broadcast %cst_37 : f32 to vector<8x128xf32>
    %221 = arith.addf %220, %219 : vector<8x128xf32>
    %222 = arith.divf %220, %221 : vector<8x128xf32>
    %223 = math.tanh %211 : vector<8x128xf32>
    %224 = vector.extract_strided_slice %216 {offsets = [0, 32], sizes = [8, 32], strides = [1, 1]} : vector<8x128xf32> to vector<8x32xf32>
    %225 = arith.mulf %224, %191 : vector<8x32xf32>
    %226 = vector.extract_strided_slice %216 {offsets = [0, 0], sizes = [8, 32], strides = [1, 1]} : vector<8x128xf32> to vector<8x32xf32>
    %227 = vector.extract_strided_slice %217 {offsets = [0, 64], sizes = [8, 32], strides = [1, 1]} : vector<8x128xf32> to vector<8x32xf32>
    %228 = arith.mulf %226, %227 : vector<8x32xf32>
    %229 = arith.addf %225, %228 : vector<8x32xf32>
    %230 = vector.extract_strided_slice %222 {offsets = [0, 32], sizes = [8, 32], strides = [1, 1]} : vector<8x128xf32> to vector<8x32xf32>
    %231 = arith.mulf %230, %197 : vector<8x32xf32>
    %232 = vector.extract_strided_slice %222 {offsets = [0, 0], sizes = [8, 32], strides = [1, 1]} : vector<8x128xf32> to vector<8x32xf32>
    %233 = vector.extract_strided_slice %223 {offsets = [0, 64], sizes = [8, 32], strides = [1, 1]} : vector<8x128xf32> to vector<8x32xf32>
    %234 = arith.mulf %232, %233 : vector<8x32xf32>
    %235 = arith.addf %231, %234 : vector<8x32xf32>
    %236 = vector.extract_strided_slice %216 {offsets = [0, 96], sizes = [8, 32], strides = [1, 1]} : vector<8x128xf32> to vector<8x32xf32>
    %237 = math.tanh %229 : vector<8x32xf32>
    %238 = arith.mulf %236, %237 : vector<8x32xf32>
    %239 = vector.extract_strided_slice %222 {offsets = [0, 96], sizes = [8, 32], strides = [1, 1]} : vector<8x128xf32> to vector<8x32xf32>
    %240 = math.tanh %235 : vector<8x32xf32>
    %241 = arith.mulf %239, %240 : vector<8x32xf32>
    %cst_38 = arith.constant dense<0.000000e+00> : vector<8x128xf32>
    %242 = tpu.matmul %238, %8, %cst_38 {dimension_numbers = #tpu.dot_dimension_numbers<[1], [0], [0], [1], [0, 0, 1, 1], [], []>} : vector<8x32xf32>, vector<32x128xf32>, vector<8x128xf32> -> vector<8x128xf32>
    %cst_39 = arith.constant dense<0.000000e+00> : vector<8x128xf32>
    %243 = tpu.matmul %241, %9, %cst_39 {dimension_numbers = #tpu.dot_dimension_numbers<[1], [0], [0], [1], [0, 0, 1, 1], [], []>} : vector<8x32xf32>, vector<32x128xf32>, vector<8x128xf32> -> vector<8x128xf32>
    %244 = vector.extract_strided_slice %7 {offsets = [6, 0, 0], sizes = [1, 8, 128], strides = [1, 1, 1]} : vector<8x8x256xf32> to vector<1x8x128xf32>
    %245 = vector.shape_cast %244 : vector<1x8x128xf32> to vector<8x128xf32>
    %246 = arith.addf %242, %245 : vector<8x128xf32>
    %247 = vector.extract_strided_slice %7 {offsets = [1, 0, 128], sizes = [1, 8, 128], strides = [1, 1, 1]} : vector<8x8x256xf32> to vector<1x8x128xf32>
    %248 = vector.shape_cast %247 : vector<1x8x128xf32> to vector<8x128xf32>
    %249 = arith.addf %243, %248 : vector<8x128xf32>
    %250 = arith.negf %246 : vector<8x128xf32>
    %251 = math.exp %250 : vector<8x128xf32>
    %cst_40 = arith.constant 1.000000e+00 : f32
    %252 = vector.broadcast %cst_40 : f32 to vector<8x128xf32>
    %253 = arith.addf %252, %251 : vector<8x128xf32>
    %254 = arith.divf %252, %253 : vector<8x128xf32>
    %255 = math.tanh %246 : vector<8x128xf32>
    %256 = arith.negf %249 : vector<8x128xf32>
    %257 = math.exp %256 : vector<8x128xf32>
    %cst_41 = arith.constant 1.000000e+00 : f32
    %258 = vector.broadcast %cst_41 : f32 to vector<8x128xf32>
    %259 = arith.addf %258, %257 : vector<8x128xf32>
    %260 = arith.divf %258, %259 : vector<8x128xf32>
    %261 = math.tanh %249 : vector<8x128xf32>
    %262 = vector.extract_strided_slice %254 {offsets = [0, 32], sizes = [8, 32], strides = [1, 1]} : vector<8x128xf32> to vector<8x32xf32>
    %263 = arith.mulf %262, %229 : vector<8x32xf32>
    %264 = vector.extract_strided_slice %254 {offsets = [0, 0], sizes = [8, 32], strides = [1, 1]} : vector<8x128xf32> to vector<8x32xf32>
    %265 = vector.extract_strided_slice %255 {offsets = [0, 64], sizes = [8, 32], strides = [1, 1]} : vector<8x128xf32> to vector<8x32xf32>
    %266 = arith.mulf %264, %265 : vector<8x32xf32>
    %267 = arith.addf %263, %266 : vector<8x32xf32>
    %268 = vector.extract_strided_slice %260 {offsets = [0, 32], sizes = [8, 32], strides = [1, 1]} : vector<8x128xf32> to vector<8x32xf32>
    %269 = arith.mulf %268, %235 : vector<8x32xf32>
    %270 = vector.extract_strided_slice %260 {offsets = [0, 0], sizes = [8, 32], strides = [1, 1]} : vector<8x128xf32> to vector<8x32xf32>
    %271 = vector.extract_strided_slice %261 {offsets = [0, 64], sizes = [8, 32], strides = [1, 1]} : vector<8x128xf32> to vector<8x32xf32>
    %272 = arith.mulf %270, %271 : vector<8x32xf32>
    %273 = arith.addf %269, %272 : vector<8x32xf32>
    %274 = vector.extract_strided_slice %254 {offsets = [0, 96], sizes = [8, 32], strides = [1, 1]} : vector<8x128xf32> to vector<8x32xf32>
    %275 = math.tanh %267 : vector<8x32xf32>
    %276 = arith.mulf %274, %275 : vector<8x32xf32>
    %277 = vector.extract_strided_slice %260 {offsets = [0, 96], sizes = [8, 32], strides = [1, 1]} : vector<8x128xf32> to vector<8x32xf32>
    %278 = math.tanh %273 : vector<8x32xf32>
    %279 = arith.mulf %277, %278 : vector<8x32xf32>
    %cst_42 = arith.constant dense<0.000000e+00> : vector<8x128xf32>
    %280 = tpu.matmul %276, %8, %cst_42 {dimension_numbers = #tpu.dot_dimension_numbers<[1], [0], [0], [1], [0, 0, 1, 1], [], []>} : vector<8x32xf32>, vector<32x128xf32>, vector<8x128xf32> -> vector<8x128xf32>
    %cst_43 = arith.constant dense<0.000000e+00> : vector<8x128xf32>
    %281 = tpu.matmul %279, %9, %cst_43 {dimension_numbers = #tpu.dot_dimension_numbers<[1], [0], [0], [1], [0, 0, 1, 1], [], []>} : vector<8x32xf32>, vector<32x128xf32>, vector<8x128xf32> -> vector<8x128xf32>
    %282 = vector.extract_strided_slice %7 {offsets = [7, 0, 0], sizes = [1, 8, 128], strides = [1, 1, 1]} : vector<8x8x256xf32> to vector<1x8x128xf32>
    %283 = vector.shape_cast %282 : vector<1x8x128xf32> to vector<8x128xf32>
    %284 = arith.addf %280, %283 : vector<8x128xf32>
    %285 = vector.extract_strided_slice %7 {offsets = [0, 0, 128], sizes = [1, 8, 128], strides = [1, 1, 1]} : vector<8x8x256xf32> to vector<1x8x128xf32>
    %286 = vector.shape_cast %285 : vector<1x8x128xf32> to vector<8x128xf32>
    %287 = arith.addf %281, %286 : vector<8x128xf32>
    %288 = arith.negf %284 : vector<8x128xf32>
    %289 = math.exp %288 : vector<8x128xf32>
    %cst_44 = arith.constant 1.000000e+00 : f32
    %290 = vector.broadcast %cst_44 : f32 to vector<8x128xf32>
    %291 = arith.addf %290, %289 : vector<8x128xf32>
    %292 = arith.divf %290, %291 : vector<8x128xf32>
    %293 = math.tanh %284 : vector<8x128xf32>
    %294 = arith.negf %287 : vector<8x128xf32>
    %295 = math.exp %294 : vector<8x128xf32>
    %cst_45 = arith.constant 1.000000e+00 : f32
    %296 = vector.broadcast %cst_45 : f32 to vector<8x128xf32>
    %297 = arith.addf %296, %295 : vector<8x128xf32>
    %298 = arith.divf %296, %297 : vector<8x128xf32>
    %299 = math.tanh %287 : vector<8x128xf32>
    %300 = vector.extract_strided_slice %292 {offsets = [0, 32], sizes = [8, 32], strides = [1, 1]} : vector<8x128xf32> to vector<8x32xf32>
    %301 = arith.mulf %300, %267 : vector<8x32xf32>
    %302 = vector.extract_strided_slice %292 {offsets = [0, 0], sizes = [8, 32], strides = [1, 1]} : vector<8x128xf32> to vector<8x32xf32>
    %303 = vector.extract_strided_slice %293 {offsets = [0, 64], sizes = [8, 32], strides = [1, 1]} : vector<8x128xf32> to vector<8x32xf32>
    %304 = arith.mulf %302, %303 : vector<8x32xf32>
    %305 = arith.addf %301, %304 : vector<8x32xf32>
    %306 = vector.extract_strided_slice %298 {offsets = [0, 32], sizes = [8, 32], strides = [1, 1]} : vector<8x128xf32> to vector<8x32xf32>
    %307 = arith.mulf %306, %273 : vector<8x32xf32>
    %308 = vector.extract_strided_slice %298 {offsets = [0, 0], sizes = [8, 32], strides = [1, 1]} : vector<8x128xf32> to vector<8x32xf32>
    %309 = vector.extract_strided_slice %299 {offsets = [0, 64], sizes = [8, 32], strides = [1, 1]} : vector<8x128xf32> to vector<8x32xf32>
    %310 = arith.mulf %308, %309 : vector<8x32xf32>
    %311 = arith.addf %307, %310 : vector<8x32xf32>
    %312 = vector.extract_strided_slice %292 {offsets = [0, 96], sizes = [8, 32], strides = [1, 1]} : vector<8x128xf32> to vector<8x32xf32>
    %313 = math.tanh %305 : vector<8x32xf32>
    %314 = arith.mulf %312, %313 : vector<8x32xf32>
    %315 = vector.extract_strided_slice %298 {offsets = [0, 96], sizes = [8, 32], strides = [1, 1]} : vector<8x128xf32> to vector<8x32xf32>
    %316 = math.tanh %311 : vector<8x32xf32>
    %317 = arith.mulf %315, %316 : vector<8x32xf32>
    %318 = tpu.concatenate %48, %317 in 1 : vector<8x32xf32>, vector<8x32xf32> -> vector<8x64xf32>
    %319 = tpu.concatenate %86, %279 in 1 : vector<8x32xf32>, vector<8x32xf32> -> vector<8x64xf32>
    %320 = tpu.concatenate %124, %241 in 1 : vector<8x32xf32>, vector<8x32xf32> -> vector<8x64xf32>
    %321 = tpu.concatenate %162, %203 in 1 : vector<8x32xf32>, vector<8x32xf32> -> vector<8x64xf32>
    %322 = tpu.concatenate %200, %165 in 1 : vector<8x32xf32>, vector<8x32xf32> -> vector<8x64xf32>
    %323 = tpu.concatenate %238, %127 in 1 : vector<8x32xf32>, vector<8x32xf32> -> vector<8x64xf32>
    %324 = tpu.concatenate %276, %89 in 1 : vector<8x32xf32>, vector<8x32xf32> -> vector<8x64xf32>
    %325 = tpu.concatenate %314, %51 in 1 : vector<8x32xf32>, vector<8x32xf32> -> vector<8x64xf32>
    %326 = vector.shape_cast %318 : vector<8x64xf32> to vector<1x8x64xf32>
    %327 = vector.shape_cast %319 : vector<8x64xf32> to vector<1x8x64xf32>
    %328 = vector.shape_cast %320 : vector<8x64xf32> to vector<1x8x64xf32>
    %329 = vector.shape_cast %321 : vector<8x64xf32> to vector<1x8x64xf32>
    %330 = vector.shape_cast %322 : vector<8x64xf32> to vector<1x8x64xf32>
    %331 = vector.shape_cast %323 : vector<8x64xf32> to vector<1x8x64xf32>
    %332 = vector.shape_cast %324 : vector<8x64xf32> to vector<1x8x64xf32>
    %333 = vector.shape_cast %325 : vector<8x64xf32> to vector<1x8x64xf32>
    %334 = tpu.concatenate %326, %327, %328, %329, %330, %331, %332, %333 in 0 : vector<1x8x64xf32>, vector<1x8x64xf32>, vector<1x8x64xf32>, vector<1x8x64xf32>, vector<1x8x64xf32>, vector<1x8x64xf32>, vector<1x8x64xf32>, vector<1x8x64xf32> -> vector<8x8x64xf32>
    %335 = vector.shape_cast %334 : vector<8x8x64xf32> to vector<64x64xf32>
    %c0_46 = arith.constant 0 : index
    %c0_47 = arith.constant 0 : index
    %336 = vector.load %arg6[%c0_46, %c0_47] : memref<64x256xf32, #tpu.memory_space<vmem>>, vector<64x256xf32>
    %cst_48 = arith.constant dense<0.000000e+00> : vector<64x256xf32>
    %337 = tpu.matmul %335, %336, %cst_48 {dimension_numbers = #tpu.dot_dimension_numbers<[1], [0], [0], [1], [0, 0, 1, 1], [], []>} : vector<64x64xf32>, vector<64x256xf32>, vector<64x256xf32> -> vector<64x256xf32>
    %c0_49 = arith.constant 0 : index
    %c0_50 = arith.constant 0 : index
    %338 = vector.load %arg9[%c0_49, %c0_50] : memref<1x256xf32, #tpu.memory_space<vmem>>, vector<1x256xf32>
    %339 = vector.broadcast %338 : vector<1x256xf32> to vector<64x256xf32>
    %340 = arith.addf %337, %339 : vector<64x256xf32>
    %341 = vector.shape_cast %340 : vector<64x256xf32> to vector<8x8x256xf32>
    %c0_51 = arith.constant 0 : index
    %c0_52 = arith.constant 0 : index
    %342 = vector.load %arg7[%c0_51, %c0_52] : memref<32x128xf32, #tpu.memory_space<vmem>>, vector<32x128xf32>
    %c0_53 = arith.constant 0 : index
    %c0_54 = arith.constant 0 : index
    %343 = vector.load %arg8[%c0_53, %c0_54] : memref<32x128xf32, #tpu.memory_space<vmem>>, vector<32x128xf32>
    %cst_55 = arith.constant 0.000000e+00 : f32
    %344 = vector.broadcast %cst_55 : f32 to vector<8x32xf32>
    %cst_56 = arith.constant 0.000000e+00 : f32
    %345 = vector.broadcast %cst_56 : f32 to vector<8x32xf32>
    %cst_57 = arith.constant 0.000000e+00 : f32
    %346 = vector.broadcast %cst_57 : f32 to vector<8x32xf32>
    %cst_58 = arith.constant 0.000000e+00 : f32
    %347 = vector.broadcast %cst_58 : f32 to vector<8x32xf32>
    %cst_59 = arith.constant dense<0.000000e+00> : vector<8x128xf32>
    %348 = tpu.matmul %344, %342, %cst_59 {dimension_numbers = #tpu.dot_dimension_numbers<[1], [0], [0], [1], [0, 0, 1, 1], [], []>} : vector<8x32xf32>, vector<32x128xf32>, vector<8x128xf32> -> vector<8x128xf32>
    %cst_60 = arith.constant dense<0.000000e+00> : vector<8x128xf32>
    %349 = tpu.matmul %345, %343, %cst_60 {dimension_numbers = #tpu.dot_dimension_numbers<[1], [0], [0], [1], [0, 0, 1, 1], [], []>} : vector<8x32xf32>, vector<32x128xf32>, vector<8x128xf32> -> vector<8x128xf32>
    %350 = vector.extract_strided_slice %341 {offsets = [0, 0, 0], sizes = [1, 8, 128], strides = [1, 1, 1]} : vector<8x8x256xf32> to vector<1x8x128xf32>
    %351 = vector.shape_cast %350 : vector<1x8x128xf32> to vector<8x128xf32>
    %352 = arith.addf %348, %351 : vector<8x128xf32>
    %353 = vector.extract_strided_slice %341 {offsets = [7, 0, 128], sizes = [1, 8, 128], strides = [1, 1, 1]} : vector<8x8x256xf32> to vector<1x8x128xf32>
    %354 = vector.shape_cast %353 : vector<1x8x128xf32> to vector<8x128xf32>
    %355 = arith.addf %349, %354 : vector<8x128xf32>
    %356 = arith.negf %352 : vector<8x128xf32>
    %357 = math.exp %356 : vector<8x128xf32>
    %cst_61 = arith.constant 1.000000e+00 : f32
    %358 = vector.broadcast %cst_61 : f32 to vector<8x128xf32>
    %359 = arith.addf %358, %357 : vector<8x128xf32>
    %360 = arith.divf %358, %359 : vector<8x128xf32>
    %361 = math.tanh %352 : vector<8x128xf32>
    %362 = arith.negf %355 : vector<8x128xf32>
    %363 = math.exp %362 : vector<8x128xf32>
    %cst_62 = arith.constant 1.000000e+00 : f32
    %364 = vector.broadcast %cst_62 : f32 to vector<8x128xf32>
    %365 = arith.addf %364, %363 : vector<8x128xf32>
    %366 = arith.divf %364, %365 : vector<8x128xf32>
    %367 = math.tanh %355 : vector<8x128xf32>
    %368 = vector.extract_strided_slice %360 {offsets = [0, 32], sizes = [8, 32], strides = [1, 1]} : vector<8x128xf32> to vector<8x32xf32>
    %369 = arith.mulf %368, %346 : vector<8x32xf32>
    %370 = vector.extract_strided_slice %360 {offsets = [0, 0], sizes = [8, 32], strides = [1, 1]} : vector<8x128xf32> to vector<8x32xf32>
    %371 = vector.extract_strided_slice %361 {offsets = [0, 64], sizes = [8, 32], strides = [1, 1]} : vector<8x128xf32> to vector<8x32xf32>
    %372 = arith.mulf %370, %371 : vector<8x32xf32>
    %373 = arith.addf %369, %372 : vector<8x32xf32>
    %374 = vector.extract_strided_slice %366 {offsets = [0, 32], sizes = [8, 32], strides = [1, 1]} : vector<8x128xf32> to vector<8x32xf32>
    %375 = arith.mulf %374, %347 : vector<8x32xf32>
    %376 = vector.extract_strided_slice %366 {offsets = [0, 0], sizes = [8, 32], strides = [1, 1]} : vector<8x128xf32> to vector<8x32xf32>
    %377 = vector.extract_strided_slice %367 {offsets = [0, 64], sizes = [8, 32], strides = [1, 1]} : vector<8x128xf32> to vector<8x32xf32>
    %378 = arith.mulf %376, %377 : vector<8x32xf32>
    %379 = arith.addf %375, %378 : vector<8x32xf32>
    %380 = vector.extract_strided_slice %360 {offsets = [0, 96], sizes = [8, 32], strides = [1, 1]} : vector<8x128xf32> to vector<8x32xf32>
    %381 = math.tanh %373 : vector<8x32xf32>
    %382 = arith.mulf %380, %381 : vector<8x32xf32>
    %383 = vector.extract_strided_slice %366 {offsets = [0, 96], sizes = [8, 32], strides = [1, 1]} : vector<8x128xf32> to vector<8x32xf32>
    %384 = math.tanh %379 : vector<8x32xf32>
    %385 = arith.mulf %383, %384 : vector<8x32xf32>
    %cst_63 = arith.constant dense<0.000000e+00> : vector<8x128xf32>
    %386 = tpu.matmul %382, %342, %cst_63 {dimension_numbers = #tpu.dot_dimension_numbers<[1], [0], [0], [1], [0, 0, 1, 1], [], []>} : vector<8x32xf32>, vector<32x128xf32>, vector<8x128xf32> -> vector<8x128xf32>
    %cst_64 = arith.constant dense<0.000000e+00> : vector<8x128xf32>
    %387 = tpu.matmul %385, %343, %cst_64 {dimension_numbers = #tpu.dot_dimension_numbers<[1], [0], [0], [1], [0, 0, 1, 1], [], []>} : vector<8x32xf32>, vector<32x128xf32>, vector<8x128xf32> -> vector<8x128xf32>
    %388 = vector.extract_strided_slice %341 {offsets = [1, 0, 0], sizes = [1, 8, 128], strides = [1, 1, 1]} : vector<8x8x256xf32> to vector<1x8x128xf32>
    %389 = vector.shape_cast %388 : vector<1x8x128xf32> to vector<8x128xf32>
    %390 = arith.addf %386, %389 : vector<8x128xf32>
    %391 = vector.extract_strided_slice %341 {offsets = [6, 0, 128], sizes = [1, 8, 128], strides = [1, 1, 1]} : vector<8x8x256xf32> to vector<1x8x128xf32>
    %392 = vector.shape_cast %391 : vector<1x8x128xf32> to vector<8x128xf32>
    %393 = arith.addf %387, %392 : vector<8x128xf32>
    %394 = arith.negf %390 : vector<8x128xf32>
    %395 = math.exp %394 : vector<8x128xf32>
    %cst_65 = arith.constant 1.000000e+00 : f32
    %396 = vector.broadcast %cst_65 : f32 to vector<8x128xf32>
    %397 = arith.addf %396, %395 : vector<8x128xf32>
    %398 = arith.divf %396, %397 : vector<8x128xf32>
    %399 = math.tanh %390 : vector<8x128xf32>
    %400 = arith.negf %393 : vector<8x128xf32>
    %401 = math.exp %400 : vector<8x128xf32>
    %cst_66 = arith.constant 1.000000e+00 : f32
    %402 = vector.broadcast %cst_66 : f32 to vector<8x128xf32>
    %403 = arith.addf %402, %401 : vector<8x128xf32>
    %404 = arith.divf %402, %403 : vector<8x128xf32>
    %405 = math.tanh %393 : vector<8x128xf32>
    %406 = vector.extract_strided_slice %398 {offsets = [0, 32], sizes = [8, 32], strides = [1, 1]} : vector<8x128xf32> to vector<8x32xf32>
    %407 = arith.mulf %406, %373 : vector<8x32xf32>
    %408 = vector.extract_strided_slice %398 {offsets = [0, 0], sizes = [8, 32], strides = [1, 1]} : vector<8x128xf32> to vector<8x32xf32>
    %409 = vector.extract_strided_slice %399 {offsets = [0, 64], sizes = [8, 32], strides = [1, 1]} : vector<8x128xf32> to vector<8x32xf32>
    %410 = arith.mulf %408, %409 : vector<8x32xf32>
    %411 = arith.addf %407, %410 : vector<8x32xf32>
    %412 = vector.extract_strided_slice %404 {offsets = [0, 32], sizes = [8, 32], strides = [1, 1]} : vector<8x128xf32> to vector<8x32xf32>
    %413 = arith.mulf %412, %379 : vector<8x32xf32>
    %414 = vector.extract_strided_slice %404 {offsets = [0, 0], sizes = [8, 32], strides = [1, 1]} : vector<8x128xf32> to vector<8x32xf32>
    %415 = vector.extract_strided_slice %405 {offsets = [0, 64], sizes = [8, 32], strides = [1, 1]} : vector<8x128xf32> to vector<8x32xf32>
    %416 = arith.mulf %414, %415 : vector<8x32xf32>
    %417 = arith.addf %413, %416 : vector<8x32xf32>
    %418 = vector.extract_strided_slice %398 {offsets = [0, 96], sizes = [8, 32], strides = [1, 1]} : vector<8x128xf32> to vector<8x32xf32>
    %419 = math.tanh %411 : vector<8x32xf32>
    %420 = arith.mulf %418, %419 : vector<8x32xf32>
    %421 = vector.extract_strided_slice %404 {offsets = [0, 96], sizes = [8, 32], strides = [1, 1]} : vector<8x128xf32> to vector<8x32xf32>
    %422 = math.tanh %417 : vector<8x32xf32>
    %423 = arith.mulf %421, %422 : vector<8x32xf32>
    %cst_67 = arith.constant dense<0.000000e+00> : vector<8x128xf32>
    %424 = tpu.matmul %420, %342, %cst_67 {dimension_numbers = #tpu.dot_dimension_numbers<[1], [0], [0], [1], [0, 0, 1, 1], [], []>} : vector<8x32xf32>, vector<32x128xf32>, vector<8x128xf32> -> vector<8x128xf32>
    %cst_68 = arith.constant dense<0.000000e+00> : vector<8x128xf32>
    %425 = tpu.matmul %423, %343, %cst_68 {dimension_numbers = #tpu.dot_dimension_numbers<[1], [0], [0], [1], [0, 0, 1, 1], [], []>} : vector<8x32xf32>, vector<32x128xf32>, vector<8x128xf32> -> vector<8x128xf32>
    %426 = vector.extract_strided_slice %341 {offsets = [2, 0, 0], sizes = [1, 8, 128], strides = [1, 1, 1]} : vector<8x8x256xf32> to vector<1x8x128xf32>
    %427 = vector.shape_cast %426 : vector<1x8x128xf32> to vector<8x128xf32>
    %428 = arith.addf %424, %427 : vector<8x128xf32>
    %429 = vector.extract_strided_slice %341 {offsets = [5, 0, 128], sizes = [1, 8, 128], strides = [1, 1, 1]} : vector<8x8x256xf32> to vector<1x8x128xf32>
    %430 = vector.shape_cast %429 : vector<1x8x128xf32> to vector<8x128xf32>
    %431 = arith.addf %425, %430 : vector<8x128xf32>
    %432 = arith.negf %428 : vector<8x128xf32>
    %433 = math.exp %432 : vector<8x128xf32>
    %cst_69 = arith.constant 1.000000e+00 : f32
    %434 = vector.broadcast %cst_69 : f32 to vector<8x128xf32>
    %435 = arith.addf %434, %433 : vector<8x128xf32>
    %436 = arith.divf %434, %435 : vector<8x128xf32>
    %437 = math.tanh %428 : vector<8x128xf32>
    %438 = arith.negf %431 : vector<8x128xf32>
    %439 = math.exp %438 : vector<8x128xf32>
    %cst_70 = arith.constant 1.000000e+00 : f32
    %440 = vector.broadcast %cst_70 : f32 to vector<8x128xf32>
    %441 = arith.addf %440, %439 : vector<8x128xf32>
    %442 = arith.divf %440, %441 : vector<8x128xf32>
    %443 = math.tanh %431 : vector<8x128xf32>
    %444 = vector.extract_strided_slice %436 {offsets = [0, 32], sizes = [8, 32], strides = [1, 1]} : vector<8x128xf32> to vector<8x32xf32>
    %445 = arith.mulf %444, %411 : vector<8x32xf32>
    %446 = vector.extract_strided_slice %436 {offsets = [0, 0], sizes = [8, 32], strides = [1, 1]} : vector<8x128xf32> to vector<8x32xf32>
    %447 = vector.extract_strided_slice %437 {offsets = [0, 64], sizes = [8, 32], strides = [1, 1]} : vector<8x128xf32> to vector<8x32xf32>
    %448 = arith.mulf %446, %447 : vector<8x32xf32>
    %449 = arith.addf %445, %448 : vector<8x32xf32>
    %450 = vector.extract_strided_slice %442 {offsets = [0, 32], sizes = [8, 32], strides = [1, 1]} : vector<8x128xf32> to vector<8x32xf32>
    %451 = arith.mulf %450, %417 : vector<8x32xf32>
    %452 = vector.extract_strided_slice %442 {offsets = [0, 0], sizes = [8, 32], strides = [1, 1]} : vector<8x128xf32> to vector<8x32xf32>
    %453 = vector.extract_strided_slice %443 {offsets = [0, 64], sizes = [8, 32], strides = [1, 1]} : vector<8x128xf32> to vector<8x32xf32>
    %454 = arith.mulf %452, %453 : vector<8x32xf32>
    %455 = arith.addf %451, %454 : vector<8x32xf32>
    %456 = vector.extract_strided_slice %436 {offsets = [0, 96], sizes = [8, 32], strides = [1, 1]} : vector<8x128xf32> to vector<8x32xf32>
    %457 = math.tanh %449 : vector<8x32xf32>
    %458 = arith.mulf %456, %457 : vector<8x32xf32>
    %459 = vector.extract_strided_slice %442 {offsets = [0, 96], sizes = [8, 32], strides = [1, 1]} : vector<8x128xf32> to vector<8x32xf32>
    %460 = math.tanh %455 : vector<8x32xf32>
    %461 = arith.mulf %459, %460 : vector<8x32xf32>
    %cst_71 = arith.constant dense<0.000000e+00> : vector<8x128xf32>
    %462 = tpu.matmul %458, %342, %cst_71 {dimension_numbers = #tpu.dot_dimension_numbers<[1], [0], [0], [1], [0, 0, 1, 1], [], []>} : vector<8x32xf32>, vector<32x128xf32>, vector<8x128xf32> -> vector<8x128xf32>
    %cst_72 = arith.constant dense<0.000000e+00> : vector<8x128xf32>
    %463 = tpu.matmul %461, %343, %cst_72 {dimension_numbers = #tpu.dot_dimension_numbers<[1], [0], [0], [1], [0, 0, 1, 1], [], []>} : vector<8x32xf32>, vector<32x128xf32>, vector<8x128xf32> -> vector<8x128xf32>
    %464 = vector.extract_strided_slice %341 {offsets = [3, 0, 0], sizes = [1, 8, 128], strides = [1, 1, 1]} : vector<8x8x256xf32> to vector<1x8x128xf32>
    %465 = vector.shape_cast %464 : vector<1x8x128xf32> to vector<8x128xf32>
    %466 = arith.addf %462, %465 : vector<8x128xf32>
    %467 = vector.extract_strided_slice %341 {offsets = [4, 0, 128], sizes = [1, 8, 128], strides = [1, 1, 1]} : vector<8x8x256xf32> to vector<1x8x128xf32>
    %468 = vector.shape_cast %467 : vector<1x8x128xf32> to vector<8x128xf32>
    %469 = arith.addf %463, %468 : vector<8x128xf32>
    %470 = arith.negf %466 : vector<8x128xf32>
    %471 = math.exp %470 : vector<8x128xf32>
    %cst_73 = arith.constant 1.000000e+00 : f32
    %472 = vector.broadcast %cst_73 : f32 to vector<8x128xf32>
    %473 = arith.addf %472, %471 : vector<8x128xf32>
    %474 = arith.divf %472, %473 : vector<8x128xf32>
    %475 = math.tanh %466 : vector<8x128xf32>
    %476 = arith.negf %469 : vector<8x128xf32>
    %477 = math.exp %476 : vector<8x128xf32>
    %cst_74 = arith.constant 1.000000e+00 : f32
    %478 = vector.broadcast %cst_74 : f32 to vector<8x128xf32>
    %479 = arith.addf %478, %477 : vector<8x128xf32>
    %480 = arith.divf %478, %479 : vector<8x128xf32>
    %481 = math.tanh %469 : vector<8x128xf32>
    %482 = vector.extract_strided_slice %474 {offsets = [0, 32], sizes = [8, 32], strides = [1, 1]} : vector<8x128xf32> to vector<8x32xf32>
    %483 = arith.mulf %482, %449 : vector<8x32xf32>
    %484 = vector.extract_strided_slice %474 {offsets = [0, 0], sizes = [8, 32], strides = [1, 1]} : vector<8x128xf32> to vector<8x32xf32>
    %485 = vector.extract_strided_slice %475 {offsets = [0, 64], sizes = [8, 32], strides = [1, 1]} : vector<8x128xf32> to vector<8x32xf32>
    %486 = arith.mulf %484, %485 : vector<8x32xf32>
    %487 = arith.addf %483, %486 : vector<8x32xf32>
    %488 = vector.extract_strided_slice %480 {offsets = [0, 32], sizes = [8, 32], strides = [1, 1]} : vector<8x128xf32> to vector<8x32xf32>
    %489 = arith.mulf %488, %455 : vector<8x32xf32>
    %490 = vector.extract_strided_slice %480 {offsets = [0, 0], sizes = [8, 32], strides = [1, 1]} : vector<8x128xf32> to vector<8x32xf32>
    %491 = vector.extract_strided_slice %481 {offsets = [0, 64], sizes = [8, 32], strides = [1, 1]} : vector<8x128xf32> to vector<8x32xf32>
    %492 = arith.mulf %490, %491 : vector<8x32xf32>
    %493 = arith.addf %489, %492 : vector<8x32xf32>
    %494 = vector.extract_strided_slice %474 {offsets = [0, 96], sizes = [8, 32], strides = [1, 1]} : vector<8x128xf32> to vector<8x32xf32>
    %495 = math.tanh %487 : vector<8x32xf32>
    %496 = arith.mulf %494, %495 : vector<8x32xf32>
    %497 = vector.extract_strided_slice %480 {offsets = [0, 96], sizes = [8, 32], strides = [1, 1]} : vector<8x128xf32> to vector<8x32xf32>
    %498 = math.tanh %493 : vector<8x32xf32>
    %499 = arith.mulf %497, %498 : vector<8x32xf32>
    %cst_75 = arith.constant dense<0.000000e+00> : vector<8x128xf32>
    %500 = tpu.matmul %496, %342, %cst_75 {dimension_numbers = #tpu.dot_dimension_numbers<[1], [0], [0], [1], [0, 0, 1, 1], [], []>} : vector<8x32xf32>, vector<32x128xf32>, vector<8x128xf32> -> vector<8x128xf32>
    %cst_76 = arith.constant dense<0.000000e+00> : vector<8x128xf32>
    %501 = tpu.matmul %499, %343, %cst_76 {dimension_numbers = #tpu.dot_dimension_numbers<[1], [0], [0], [1], [0, 0, 1, 1], [], []>} : vector<8x32xf32>, vector<32x128xf32>, vector<8x128xf32> -> vector<8x128xf32>
    %502 = vector.extract_strided_slice %341 {offsets = [4, 0, 0], sizes = [1, 8, 128], strides = [1, 1, 1]} : vector<8x8x256xf32> to vector<1x8x128xf32>
    %503 = vector.shape_cast %502 : vector<1x8x128xf32> to vector<8x128xf32>
    %504 = arith.addf %500, %503 : vector<8x128xf32>
    %505 = vector.extract_strided_slice %341 {offsets = [3, 0, 128], sizes = [1, 8, 128], strides = [1, 1, 1]} : vector<8x8x256xf32> to vector<1x8x128xf32>
    %506 = vector.shape_cast %505 : vector<1x8x128xf32> to vector<8x128xf32>
    %507 = arith.addf %501, %506 : vector<8x128xf32>
    %508 = arith.negf %504 : vector<8x128xf32>
    %509 = math.exp %508 : vector<8x128xf32>
    %cst_77 = arith.constant 1.000000e+00 : f32
    %510 = vector.broadcast %cst_77 : f32 to vector<8x128xf32>
    %511 = arith.addf %510, %509 : vector<8x128xf32>
    %512 = arith.divf %510, %511 : vector<8x128xf32>
    %513 = math.tanh %504 : vector<8x128xf32>
    %514 = arith.negf %507 : vector<8x128xf32>
    %515 = math.exp %514 : vector<8x128xf32>
    %cst_78 = arith.constant 1.000000e+00 : f32
    %516 = vector.broadcast %cst_78 : f32 to vector<8x128xf32>
    %517 = arith.addf %516, %515 : vector<8x128xf32>
    %518 = arith.divf %516, %517 : vector<8x128xf32>
    %519 = math.tanh %507 : vector<8x128xf32>
    %520 = vector.extract_strided_slice %512 {offsets = [0, 32], sizes = [8, 32], strides = [1, 1]} : vector<8x128xf32> to vector<8x32xf32>
    %521 = arith.mulf %520, %487 : vector<8x32xf32>
    %522 = vector.extract_strided_slice %512 {offsets = [0, 0], sizes = [8, 32], strides = [1, 1]} : vector<8x128xf32> to vector<8x32xf32>
    %523 = vector.extract_strided_slice %513 {offsets = [0, 64], sizes = [8, 32], strides = [1, 1]} : vector<8x128xf32> to vector<8x32xf32>
    %524 = arith.mulf %522, %523 : vector<8x32xf32>
    %525 = arith.addf %521, %524 : vector<8x32xf32>
    %526 = vector.extract_strided_slice %518 {offsets = [0, 32], sizes = [8, 32], strides = [1, 1]} : vector<8x128xf32> to vector<8x32xf32>
    %527 = arith.mulf %526, %493 : vector<8x32xf32>
    %528 = vector.extract_strided_slice %518 {offsets = [0, 0], sizes = [8, 32], strides = [1, 1]} : vector<8x128xf32> to vector<8x32xf32>
    %529 = vector.extract_strided_slice %519 {offsets = [0, 64], sizes = [8, 32], strides = [1, 1]} : vector<8x128xf32> to vector<8x32xf32>
    %530 = arith.mulf %528, %529 : vector<8x32xf32>
    %531 = arith.addf %527, %530 : vector<8x32xf32>
    %532 = vector.extract_strided_slice %512 {offsets = [0, 96], sizes = [8, 32], strides = [1, 1]} : vector<8x128xf32> to vector<8x32xf32>
    %533 = math.tanh %525 : vector<8x32xf32>
    %534 = arith.mulf %532, %533 : vector<8x32xf32>
    %535 = vector.extract_strided_slice %518 {offsets = [0, 96], sizes = [8, 32], strides = [1, 1]} : vector<8x128xf32> to vector<8x32xf32>
    %536 = math.tanh %531 : vector<8x32xf32>
    %537 = arith.mulf %535, %536 : vector<8x32xf32>
    %cst_79 = arith.constant dense<0.000000e+00> : vector<8x128xf32>
    %538 = tpu.matmul %534, %342, %cst_79 {dimension_numbers = #tpu.dot_dimension_numbers<[1], [0], [0], [1], [0, 0, 1, 1], [], []>} : vector<8x32xf32>, vector<32x128xf32>, vector<8x128xf32> -> vector<8x128xf32>
    %cst_80 = arith.constant dense<0.000000e+00> : vector<8x128xf32>
    %539 = tpu.matmul %537, %343, %cst_80 {dimension_numbers = #tpu.dot_dimension_numbers<[1], [0], [0], [1], [0, 0, 1, 1], [], []>} : vector<8x32xf32>, vector<32x128xf32>, vector<8x128xf32> -> vector<8x128xf32>
    %540 = vector.extract_strided_slice %341 {offsets = [5, 0, 0], sizes = [1, 8, 128], strides = [1, 1, 1]} : vector<8x8x256xf32> to vector<1x8x128xf32>
    %541 = vector.shape_cast %540 : vector<1x8x128xf32> to vector<8x128xf32>
    %542 = arith.addf %538, %541 : vector<8x128xf32>
    %543 = vector.extract_strided_slice %341 {offsets = [2, 0, 128], sizes = [1, 8, 128], strides = [1, 1, 1]} : vector<8x8x256xf32> to vector<1x8x128xf32>
    %544 = vector.shape_cast %543 : vector<1x8x128xf32> to vector<8x128xf32>
    %545 = arith.addf %539, %544 : vector<8x128xf32>
    %546 = arith.negf %542 : vector<8x128xf32>
    %547 = math.exp %546 : vector<8x128xf32>
    %cst_81 = arith.constant 1.000000e+00 : f32
    %548 = vector.broadcast %cst_81 : f32 to vector<8x128xf32>
    %549 = arith.addf %548, %547 : vector<8x128xf32>
    %550 = arith.divf %548, %549 : vector<8x128xf32>
    %551 = math.tanh %542 : vector<8x128xf32>
    %552 = arith.negf %545 : vector<8x128xf32>
    %553 = math.exp %552 : vector<8x128xf32>
    %cst_82 = arith.constant 1.000000e+00 : f32
    %554 = vector.broadcast %cst_82 : f32 to vector<8x128xf32>
    %555 = arith.addf %554, %553 : vector<8x128xf32>
    %556 = arith.divf %554, %555 : vector<8x128xf32>
    %557 = math.tanh %545 : vector<8x128xf32>
    %558 = vector.extract_strided_slice %550 {offsets = [0, 32], sizes = [8, 32], strides = [1, 1]} : vector<8x128xf32> to vector<8x32xf32>
    %559 = arith.mulf %558, %525 : vector<8x32xf32>
    %560 = vector.extract_strided_slice %550 {offsets = [0, 0], sizes = [8, 32], strides = [1, 1]} : vector<8x128xf32> to vector<8x32xf32>
    %561 = vector.extract_strided_slice %551 {offsets = [0, 64], sizes = [8, 32], strides = [1, 1]} : vector<8x128xf32> to vector<8x32xf32>
    %562 = arith.mulf %560, %561 : vector<8x32xf32>
    %563 = arith.addf %559, %562 : vector<8x32xf32>
    %564 = vector.extract_strided_slice %556 {offsets = [0, 32], sizes = [8, 32], strides = [1, 1]} : vector<8x128xf32> to vector<8x32xf32>
    %565 = arith.mulf %564, %531 : vector<8x32xf32>
    %566 = vector.extract_strided_slice %556 {offsets = [0, 0], sizes = [8, 32], strides = [1, 1]} : vector<8x128xf32> to vector<8x32xf32>
    %567 = vector.extract_strided_slice %557 {offsets = [0, 64], sizes = [8, 32], strides = [1, 1]} : vector<8x128xf32> to vector<8x32xf32>
    %568 = arith.mulf %566, %567 : vector<8x32xf32>
    %569 = arith.addf %565, %568 : vector<8x32xf32>
    %570 = vector.extract_strided_slice %550 {offsets = [0, 96], sizes = [8, 32], strides = [1, 1]} : vector<8x128xf32> to vector<8x32xf32>
    %571 = math.tanh %563 : vector<8x32xf32>
    %572 = arith.mulf %570, %571 : vector<8x32xf32>
    %573 = vector.extract_strided_slice %556 {offsets = [0, 96], sizes = [8, 32], strides = [1, 1]} : vector<8x128xf32> to vector<8x32xf32>
    %574 = math.tanh %569 : vector<8x32xf32>
    %575 = arith.mulf %573, %574 : vector<8x32xf32>
    %cst_83 = arith.constant dense<0.000000e+00> : vector<8x128xf32>
    %576 = tpu.matmul %572, %342, %cst_83 {dimension_numbers = #tpu.dot_dimension_numbers<[1], [0], [0], [1], [0, 0, 1, 1], [], []>} : vector<8x32xf32>, vector<32x128xf32>, vector<8x128xf32> -> vector<8x128xf32>
    %cst_84 = arith.constant dense<0.000000e+00> : vector<8x128xf32>
    %577 = tpu.matmul %575, %343, %cst_84 {dimension_numbers = #tpu.dot_dimension_numbers<[1], [0], [0], [1], [0, 0, 1, 1], [], []>} : vector<8x32xf32>, vector<32x128xf32>, vector<8x128xf32> -> vector<8x128xf32>
    %578 = vector.extract_strided_slice %341 {offsets = [6, 0, 0], sizes = [1, 8, 128], strides = [1, 1, 1]} : vector<8x8x256xf32> to vector<1x8x128xf32>
    %579 = vector.shape_cast %578 : vector<1x8x128xf32> to vector<8x128xf32>
    %580 = arith.addf %576, %579 : vector<8x128xf32>
    %581 = vector.extract_strided_slice %341 {offsets = [1, 0, 128], sizes = [1, 8, 128], strides = [1, 1, 1]} : vector<8x8x256xf32> to vector<1x8x128xf32>
    %582 = vector.shape_cast %581 : vector<1x8x128xf32> to vector<8x128xf32>
    %583 = arith.addf %577, %582 : vector<8x128xf32>
    %584 = arith.negf %580 : vector<8x128xf32>
    %585 = math.exp %584 : vector<8x128xf32>
    %cst_85 = arith.constant 1.000000e+00 : f32
    %586 = vector.broadcast %cst_85 : f32 to vector<8x128xf32>
    %587 = arith.addf %586, %585 : vector<8x128xf32>
    %588 = arith.divf %586, %587 : vector<8x128xf32>
    %589 = math.tanh %580 : vector<8x128xf32>
    %590 = arith.negf %583 : vector<8x128xf32>
    %591 = math.exp %590 : vector<8x128xf32>
    %cst_86 = arith.constant 1.000000e+00 : f32
    %592 = vector.broadcast %cst_86 : f32 to vector<8x128xf32>
    %593 = arith.addf %592, %591 : vector<8x128xf32>
    %594 = arith.divf %592, %593 : vector<8x128xf32>
    %595 = math.tanh %583 : vector<8x128xf32>
    %596 = vector.extract_strided_slice %588 {offsets = [0, 32], sizes = [8, 32], strides = [1, 1]} : vector<8x128xf32> to vector<8x32xf32>
    %597 = arith.mulf %596, %563 : vector<8x32xf32>
    %598 = vector.extract_strided_slice %588 {offsets = [0, 0], sizes = [8, 32], strides = [1, 1]} : vector<8x128xf32> to vector<8x32xf32>
    %599 = vector.extract_strided_slice %589 {offsets = [0, 64], sizes = [8, 32], strides = [1, 1]} : vector<8x128xf32> to vector<8x32xf32>
    %600 = arith.mulf %598, %599 : vector<8x32xf32>
    %601 = arith.addf %597, %600 : vector<8x32xf32>
    %602 = vector.extract_strided_slice %594 {offsets = [0, 32], sizes = [8, 32], strides = [1, 1]} : vector<8x128xf32> to vector<8x32xf32>
    %603 = arith.mulf %602, %569 : vector<8x32xf32>
    %604 = vector.extract_strided_slice %594 {offsets = [0, 0], sizes = [8, 32], strides = [1, 1]} : vector<8x128xf32> to vector<8x32xf32>
    %605 = vector.extract_strided_slice %595 {offsets = [0, 64], sizes = [8, 32], strides = [1, 1]} : vector<8x128xf32> to vector<8x32xf32>
    %606 = arith.mulf %604, %605 : vector<8x32xf32>
    %607 = arith.addf %603, %606 : vector<8x32xf32>
    %608 = vector.extract_strided_slice %588 {offsets = [0, 96], sizes = [8, 32], strides = [1, 1]} : vector<8x128xf32> to vector<8x32xf32>
    %609 = math.tanh %601 : vector<8x32xf32>
    %610 = arith.mulf %608, %609 : vector<8x32xf32>
    %611 = vector.extract_strided_slice %594 {offsets = [0, 96], sizes = [8, 32], strides = [1, 1]} : vector<8x128xf32> to vector<8x32xf32>
    %612 = math.tanh %607 : vector<8x32xf32>
    %613 = arith.mulf %611, %612 : vector<8x32xf32>
    %cst_87 = arith.constant dense<0.000000e+00> : vector<8x128xf32>
    %614 = tpu.matmul %610, %342, %cst_87 {dimension_numbers = #tpu.dot_dimension_numbers<[1], [0], [0], [1], [0, 0, 1, 1], [], []>} : vector<8x32xf32>, vector<32x128xf32>, vector<8x128xf32> -> vector<8x128xf32>
    %cst_88 = arith.constant dense<0.000000e+00> : vector<8x128xf32>
    %615 = tpu.matmul %613, %343, %cst_88 {dimension_numbers = #tpu.dot_dimension_numbers<[1], [0], [0], [1], [0, 0, 1, 1], [], []>} : vector<8x32xf32>, vector<32x128xf32>, vector<8x128xf32> -> vector<8x128xf32>
    %616 = vector.extract_strided_slice %341 {offsets = [7, 0, 0], sizes = [1, 8, 128], strides = [1, 1, 1]} : vector<8x8x256xf32> to vector<1x8x128xf32>
    %617 = vector.shape_cast %616 : vector<1x8x128xf32> to vector<8x128xf32>
    %618 = arith.addf %614, %617 : vector<8x128xf32>
    %619 = vector.extract_strided_slice %341 {offsets = [0, 0, 128], sizes = [1, 8, 128], strides = [1, 1, 1]} : vector<8x8x256xf32> to vector<1x8x128xf32>
    %620 = vector.shape_cast %619 : vector<1x8x128xf32> to vector<8x128xf32>
    %621 = arith.addf %615, %620 : vector<8x128xf32>
    %622 = arith.negf %618 : vector<8x128xf32>
    %623 = math.exp %622 : vector<8x128xf32>
    %cst_89 = arith.constant 1.000000e+00 : f32
    %624 = vector.broadcast %cst_89 : f32 to vector<8x128xf32>
    %625 = arith.addf %624, %623 : vector<8x128xf32>
    %626 = arith.divf %624, %625 : vector<8x128xf32>
    %627 = math.tanh %618 : vector<8x128xf32>
    %628 = arith.negf %621 : vector<8x128xf32>
    %629 = math.exp %628 : vector<8x128xf32>
    %cst_90 = arith.constant 1.000000e+00 : f32
    %630 = vector.broadcast %cst_90 : f32 to vector<8x128xf32>
    %631 = arith.addf %630, %629 : vector<8x128xf32>
    %632 = arith.divf %630, %631 : vector<8x128xf32>
    %633 = math.tanh %621 : vector<8x128xf32>
    %634 = vector.extract_strided_slice %626 {offsets = [0, 32], sizes = [8, 32], strides = [1, 1]} : vector<8x128xf32> to vector<8x32xf32>
    %635 = arith.mulf %634, %601 : vector<8x32xf32>
    %636 = vector.extract_strided_slice %626 {offsets = [0, 0], sizes = [8, 32], strides = [1, 1]} : vector<8x128xf32> to vector<8x32xf32>
    %637 = vector.extract_strided_slice %627 {offsets = [0, 64], sizes = [8, 32], strides = [1, 1]} : vector<8x128xf32> to vector<8x32xf32>
    %638 = arith.mulf %636, %637 : vector<8x32xf32>
    %639 = arith.addf %635, %638 : vector<8x32xf32>
    %640 = vector.extract_strided_slice %632 {offsets = [0, 32], sizes = [8, 32], strides = [1, 1]} : vector<8x128xf32> to vector<8x32xf32>
    %641 = arith.mulf %640, %607 : vector<8x32xf32>
    %642 = vector.extract_strided_slice %632 {offsets = [0, 0], sizes = [8, 32], strides = [1, 1]} : vector<8x128xf32> to vector<8x32xf32>
    %643 = vector.extract_strided_slice %633 {offsets = [0, 64], sizes = [8, 32], strides = [1, 1]} : vector<8x128xf32> to vector<8x32xf32>
    %644 = arith.mulf %642, %643 : vector<8x32xf32>
    %645 = arith.addf %641, %644 : vector<8x32xf32>
    %646 = vector.extract_strided_slice %626 {offsets = [0, 96], sizes = [8, 32], strides = [1, 1]} : vector<8x128xf32> to vector<8x32xf32>
    %647 = math.tanh %639 : vector<8x32xf32>
    %648 = arith.mulf %646, %647 : vector<8x32xf32>
    %649 = vector.extract_strided_slice %632 {offsets = [0, 96], sizes = [8, 32], strides = [1, 1]} : vector<8x128xf32> to vector<8x32xf32>
    %650 = math.tanh %645 : vector<8x32xf32>
    %651 = arith.mulf %649, %650 : vector<8x32xf32>
    %652 = tpu.concatenate %382, %651 in 1 : vector<8x32xf32>, vector<8x32xf32> -> vector<8x64xf32>
    %653 = tpu.concatenate %420, %613 in 1 : vector<8x32xf32>, vector<8x32xf32> -> vector<8x64xf32>
    %654 = tpu.concatenate %458, %575 in 1 : vector<8x32xf32>, vector<8x32xf32> -> vector<8x64xf32>
    %655 = tpu.concatenate %496, %537 in 1 : vector<8x32xf32>, vector<8x32xf32> -> vector<8x64xf32>
    %656 = tpu.concatenate %534, %499 in 1 : vector<8x32xf32>, vector<8x32xf32> -> vector<8x64xf32>
    %657 = tpu.concatenate %572, %461 in 1 : vector<8x32xf32>, vector<8x32xf32> -> vector<8x64xf32>
    %658 = tpu.concatenate %610, %423 in 1 : vector<8x32xf32>, vector<8x32xf32> -> vector<8x64xf32>
    %659 = tpu.concatenate %648, %385 in 1 : vector<8x32xf32>, vector<8x32xf32> -> vector<8x64xf32>
    %660 = vector.shape_cast %652 : vector<8x64xf32> to vector<1x8x64xf32>
    %661 = vector.shape_cast %653 : vector<8x64xf32> to vector<1x8x64xf32>
    %662 = vector.shape_cast %654 : vector<8x64xf32> to vector<1x8x64xf32>
    %663 = vector.shape_cast %655 : vector<8x64xf32> to vector<1x8x64xf32>
    %664 = vector.shape_cast %656 : vector<8x64xf32> to vector<1x8x64xf32>
    %665 = vector.shape_cast %657 : vector<8x64xf32> to vector<1x8x64xf32>
    %666 = vector.shape_cast %658 : vector<8x64xf32> to vector<1x8x64xf32>
    %667 = vector.shape_cast %659 : vector<8x64xf32> to vector<1x8x64xf32>
    %668 = tpu.concatenate %660, %661, %662, %663, %664, %665, %666, %667 in 0 : vector<1x8x64xf32>, vector<1x8x64xf32>, vector<1x8x64xf32>, vector<1x8x64xf32>, vector<1x8x64xf32>, vector<1x8x64xf32>, vector<1x8x64xf32>, vector<1x8x64xf32> -> vector<8x8x64xf32>
    %669 = vector.shape_cast %668 : vector<8x8x64xf32> to vector<64x64xf32>
    %c0_91 = arith.constant 0 : index
    %c0_92 = arith.constant 0 : index
    %670 = vector.load %arg10[%c0_91, %c0_92] : memref<64x64xf32, #tpu.memory_space<vmem>>, vector<64x64xf32>
    %cst_93 = arith.constant dense<0.000000e+00> : vector<64x64xf32>
    %671 = tpu.matmul %669, %670, %cst_93 {dimension_numbers = #tpu.dot_dimension_numbers<[1], [0], [0], [1], [0, 0, 1, 1], [], []>} : vector<64x64xf32>, vector<64x64xf32>, vector<64x64xf32> -> vector<64x64xf32>
    %c0_94 = arith.constant 0 : index
    %c0_95 = arith.constant 0 : index
    %672 = vector.load %arg11[%c0_94, %c0_95] : memref<1x64xf32, #tpu.memory_space<vmem>>, vector<1x64xf32>
    %673 = vector.broadcast %672 : vector<1x64xf32> to vector<64x64xf32>
    %674 = arith.addf %671, %673 : vector<64x64xf32>
    %675 = vector.shape_cast %674 : vector<64x64xf32> to vector<8x8x64xf32>
    %676 = vector.extract_strided_slice %675 {offsets = [0, 0, 0], sizes = [8, 8, 32], strides = [1, 1, 1]} : vector<8x8x64xf32> to vector<8x8x32xf32>
    %677 = vector.extract_strided_slice %675 {offsets = [0, 0, 32], sizes = [8, 8, 32], strides = [1, 1, 1]} : vector<8x8x64xf32> to vector<8x8x32xf32>
    %678 = vector.shape_cast %676 : vector<8x8x32xf32> to vector<8x1x8x32xf32>
    %679 = vector.shape_cast %677 : vector<8x8x32xf32> to vector<1x8x8x32xf32>
    %680 = vector.broadcast %678 : vector<8x1x8x32xf32> to vector<8x8x8x32xf32>
    %681 = vector.broadcast %679 : vector<1x8x8x32xf32> to vector<8x8x8x32xf32>
    %682 = arith.addf %680, %681 : vector<8x8x8x32xf32>
    %683 = math.tanh %682 : vector<8x8x8x32xf32>
    %c0_96 = arith.constant 0 : index
    %c0_97 = arith.constant 0 : index
    %684 = vector.load %arg12[%c0_96, %c0_97] : memref<1x32xf32, #tpu.memory_space<vmem>>, vector<1x32xf32>
    %685 = vector.shape_cast %684 : vector<1x32xf32> to vector<1x1x1x32xf32>
    %686 = vector.broadcast %685 : vector<1x1x1x32xf32> to vector<8x8x8x32xf32>
    %687 = arith.mulf %683, %686 : vector<8x8x8x32xf32>
    %cst_98 = arith.constant dense<0.000000e+00> : vector<8x8x8xf32>
    %688 = vector.multi_reduction <add>, %687, %cst_98 [3] : vector<8x8x8x32xf32> to vector<8x8x8xf32>
    %c0_99 = arith.constant 0 : index
    %c0_100 = arith.constant 0 : index
    %689 = vector.load %arg13[%c0_99, %c0_100] : memref<1x1xf32, #tpu.memory_space<vmem>>, vector<1x1xf32>
    %690 = vector.shape_cast %689 : vector<1x1xf32> to vector<1x1x1xf32>
    %691 = vector.broadcast %690 : vector<1x1x1xf32> to vector<8x8x8xf32>
    %692 = arith.addf %688, %691 : vector<8x8x8xf32>
    %693 = vector.shape_cast %692 : vector<8x8x8xf32> to vector<1x8x8x8xf32>
    %c0_101 = arith.constant 0 : index
    %c0_102 = arith.constant 0 : index
    %c0_103 = arith.constant 0 : index
    %c0_104 = arith.constant 0 : index
    %694 = vector.load %arg14[%c0_101, %c0_102, %c0_103, %c0_104] : memref<1x8x8x8xf32, #tpu.memory_space<vmem>>, vector<1x8x8x8xf32>
    tpu.vector_store %arg14[%c0_101, %c0_102, %c0_103, %c0_104], %693 {strides = array<i32>} : memref<1x8x8x8xf32, #tpu.memory_space<vmem>>, vector<1x8x8x8xf32>,
    return
  }
  func.func @transform_0(%arg0: i32) -> (i32, i32, i32) {
    %c0_i32 = arith.constant 0 : i32
    %c0_i32_0 = arith.constant 0 : i32
    %c0_i32_1 = arith.constant 0 : i32
    return %c0_i32, %arg0, %c0_i32_0 : i32, i32, i32
  }
  func.func @transform_1(%arg0: i32) -> (i32, i32) {
    %c0_i32 = arith.constant 0 : i32
    %c0_i32_0 = arith.constant 0 : i32
    %c0_i32_1 = arith.constant 0 : i32
    return %c0_i32, %c0_i32_0 : i32, i32
  }
  func.func @transform_2(%arg0: i32) -> (i32, i32) {
    %c0_i32 = arith.constant 0 : i32
    %c0_i32_0 = arith.constant 0 : i32
    %c0_i32_1 = arith.constant 0 : i32
    return %c0_i32, %c0_i32_0 : i32, i32
  }
  func.func @transform_3(%arg0: i32) -> (i32, i32) {
    %c0_i32 = arith.constant 0 : i32
    %c0_i32_0 = arith.constant 0 : i32
    %c0_i32_1 = arith.constant 0 : i32
    return %c0_i32, %c0_i32_0 : i32, i32
  }
  func.func @transform_4(%arg0: i32) -> (i32, i32) {
    %c0_i32 = arith.constant 0 : i32
    %c0_i32_0 = arith.constant 0 : i32
    %c0_i32_1 = arith.constant 0 : i32
    return %c0_i32, %c0_i32_0 : i32, i32
  }
  func.func @transform_5(%arg0: i32) -> (i32, i32) {
    %c0_i32 = arith.constant 0 : i32
    %c0_i32_0 = arith.constant 0 : i32
    %c0_i32_1 = arith.constant 0 : i32
    return %c0_i32, %c0_i32_0 : i32, i32
  }
  func.func @transform_6(%arg0: i32) -> (i32, i32) {
    %c0_i32 = arith.constant 0 : i32
    %c0_i32_0 = arith.constant 0 : i32
    %c0_i32_1 = arith.constant 0 : i32
    return %c0_i32, %c0_i32_0 : i32, i32
  }
  func.func @transform_7(%arg0: i32) -> (i32, i32) {
    %c0_i32 = arith.constant 0 : i32
    %c0_i32_0 = arith.constant 0 : i32
    %c0_i32_1 = arith.constant 0 : i32
    return %c0_i32, %c0_i32_0 : i32, i32
  }
  func.func @transform_8(%arg0: i32) -> (i32, i32) {
    %c0_i32 = arith.constant 0 : i32
    %c0_i32_0 = arith.constant 0 : i32
    %c0_i32_1 = arith.constant 0 : i32
    return %c0_i32, %c0_i32_0 : i32, i32
  }
  func.func @transform_9(%arg0: i32) -> (i32, i32) {
    %c0_i32 = arith.constant 0 : i32
    %c0_i32_0 = arith.constant 0 : i32
    %c0_i32_1 = arith.constant 0 : i32
    return %c0_i32, %c0_i32_0 : i32, i32
  }
  func.func @transform_10(%arg0: i32) -> (i32, i32) {
    %c0_i32 = arith.constant 0 : i32
    %c0_i32_0 = arith.constant 0 : i32
    %c0_i32_1 = arith.constant 0 : i32
    return %c0_i32, %c0_i32_0 : i32, i32
  }
  func.func @transform_11(%arg0: i32) -> (i32, i32) {
    %c0_i32 = arith.constant 0 : i32
    %c0_i32_0 = arith.constant 0 : i32
    %c0_i32_1 = arith.constant 0 : i32
    return %c0_i32, %c0_i32_0 : i32, i32
  }
  func.func @transform_12(%arg0: i32) -> (i32, i32) {
    %c0_i32 = arith.constant 0 : i32
    %c0_i32_0 = arith.constant 0 : i32
    %c0_i32_1 = arith.constant 0 : i32
    return %c0_i32, %c0_i32_0 : i32, i32
  }
  func.func @transform_13(%arg0: i32) -> (i32, i32, i32, i32) {
    %c0_i32 = arith.constant 0 : i32
    %c0_i32_0 = arith.constant 0 : i32
    %c0_i32_1 = arith.constant 0 : i32
    %c0_i32_2 = arith.constant 0 : i32
    return %arg0, %c0_i32, %c0_i32_0, %c0_i32_1 : i32, i32, i32, i32
  }
}

</mosaic_0001>

<bundles_post_ra>
// kernel: forward.1
= control target key start
LH: loop header
LB: loop body
LE: loop exit
PB: predicated region body
PF: predicated region fallthrough
CT: control target
= control target key end

     0   :  { %s8454_s0 = inlined_call_operand.vmem [shape: f32[8,16,48], index: 0, kind: input, shape index: {}]   ;;  %s8455_s1 = inlined_call_operand.vmem [shape: f32[48,256], index: 1, kind: input, shape index: {}]   ;;  %s8456_s2 = inlined_call_operand.vmem [shape: f32[32,128], index: 2, kind: input, shape index: {}]   ;;  %s8457_s3 = inlined_call_operand.vmem [shape: f32[32,128], index: 3, kind: input, shape index: {}]   ;;  %s8458_s4 = inlined_call_operand.vmem [shape: f32[1,256], index: 4, kind: input, shape index: {}]   ;;  %s8459_s5 = inlined_call_operand.vmem [shape: f32[64,256], index: 5, kind: input, shape index: {}]   ;;  %s8460_s6 = inlined_call_operand.vmem [shape: f32[32,128], index: 6, kind: input, shape index: {}]   ;;  %s8461_s7 = inlined_call_operand.vmem [shape: f32[32,128], index: 7, kind: input, shape index: {}]   ;;  %s8462_s8 = inlined_call_operand.vmem [shape: f32[1,256], index: 8, kind: input, shape index: {}]   ;;  %s8463_s9 = inlined_call_operand.vmem [shape: f32[64,64], index: 9, kind: input, shape index: {}]   ;;  %s8464_s10 = inlined_call_operand.vmem [shape: f32[1,64], index: 10, kind: input, shape index: {}]   ;;  %s8465_s11 = inlined_call_operand.vmem [shape: f32[1,32], index: 11, kind: input, shape index: {}]   ;;  %s8466_s12 = inlined_call_operand.<no memory space> [shape: f32[1,1], index: 12, kind: input, shape index: {}]   ;;  %s8467_s13 = inlined_call_operand.vmem [shape: f32[2,8,8,8], index: 13, kind: output, shape index: {}]  }
   0x1   :  { %v18_v0 = vstv %s8466_s12 }
   0x2   :  { %19 = vst [vmem:[#allocation2] sm:$0x1] %v18_v0 }
   0x3   :  { %s6394_s27 = smov 0   ;;  %s6396_s28 = smov 0  }
   0x4   :  { %s6398_s29 = smov 0  }
   0x5 LB: > { %s5202_s12 = sadd.s32 4294967295, %s6313_s29   ;;  %s6411_s30 = sadd.s32 1, %s6313_s29   ;;  %s6313_s29 = sphi %s6398_s29, %s8574_s29   ;;  %s6309_s28 = sphi %s6396_s28, %s8573_s28   ;;  %s6305_s27 = sphi %s6394_s27, %s8572_s27  }
   0x6   : > { %s29_s14 = ssub.s32 %s6313_s29, %s6411_s30  ;;  %s32_s15 = sadd.s32 1, %s6309_s28 }
   0x7   : > { %p30_p0 = scmp.eq.s32.totalorder %s29_s14, 0  ;;  %p39_p1 = scmp.ne.s32.totalorder %s6309_s28, %s6305_s27 }
   0x8   : > { %p40_p2 = scmp.eq.s32.totalorder %s6313_s29, 0  ;;  %p5205_p4 = scmp.ge.s32.totalorder %s6313_s29, 2 }
   0x9   : > { %s6420_s16 = scalar_select %p30_p0, %s6309_s28, %s32_s15  }
   0xa   : > { %p41_p3 = por %p40_p2, %p39_p1  ;;  %379 = sbr.rel (%p5205_p4) target bundleno = 23 (0x17), region = 64 }
   0xf   : > { %382 = sbr.rel (!%p41_p3) target bundleno = 23 (0x17), region = 68  ;;  %s384_s17 = sand.u32 (%p41_p3), 1, %s6309_s28  }
  0x10   : > { %s5207_s18 = sshll.u32 (%p41_p3), %s6313_s29, 3  ;;  %s5206_s19 = sshll.u32 (%p41_p3), %s384_s17, 6 }
  0x11   : > { %s388_s22 = scalar_lea.vmem (%p41_p3), %s8454_s0, %s5207_s18  ;;  %s386_s23 = scalar_lea.vmem (%p41_p3), [#allocation3], %s5206_s19 }
  0x12   : > { %v431_v1 = vld [vmem:[%s388_s22] sm:$0xff] (%p41_p3)  ;;  %v433_v2 = vld [vmem:[%s388_s22 + $0x10] sm:$0xff] (%p41_p3) }
  0x13   : > { %v435_v3 = vld [vmem:[%s388_s22 + $0x20] sm:$0xff] (%p41_p3)  ;;  %432 = vst [vmem:[%s386_s23] sm:$0xff] (%p41_p3), %v431_v1  ;;  %434 = vst [vmem:[%s386_s23 + $0x8] sm:$0xff] (%p41_p3), %v433_v2  ;;  %v437_v4 = vld [vmem:[%s388_s22 + $0x30] sm:$0xff] (%p41_p3) }
  0x14   : > { %436 = vst [vmem:[%s386_s23 + $0x10] sm:$0xff] %v435_v3  ;;  %v439_v5 = vld [vmem:[%s388_s22 + $0x40] sm:$0xff]  ;;  %v441_v6 = vld [vmem:[%s388_s22 + $0x50] sm:$0xff]  ;;  %438 = vst [vmem:[%s386_s23 + $0x18] sm:$0xff] %v437_v4 }
  0x15   : > { %440 = vst [vmem:[%s386_s23 + $0x20] sm:$0xff] %v439_v5  ;;  %442 = vst [vmem:[%s386_s23 + $0x28] sm:$0xff] %v441_v6  ;;  %v443_v7 = vld [vmem:[%s388_s22 + $0x60] sm:$0xff]  ;;  %v445_v8 = vld [vmem:[%s388_s22 + $0x70] sm:$0xff] }
  0x16   : > { %444 = vst [vmem:[%s386_s23 + $0x30] sm:$0xff] %v443_v7  ;;  %446 = vst [vmem:[%s386_s23 + $0x38] sm:$0xff] %v445_v8 }
  0x17 PF: > { %p5208_p5 = scmp.ge.s32.totalorder %s6313_s29, 1  ;;  %p451_p6 = scmp.lt.s32.totalorder %s6313_s29, 3 }
  0x19   : > { %p452_p7 = pnand %p5208_p5, %p451_p6 }
  0x1b   : > { %455 = sbr.rel (%p452_p7) target bundleno = 11764 (0x2df4), region = 106 }
  0x20   : > { %v525_v9 = vld [vmem:[%s8455_s1 + $0x58] sm:$0xff]  ;;  %v524_v10 = vld [vmem:[%s8455_s1 + $0x50] sm:$0xff]  ;;  %v523_v11 = vld [vmem:[%s8455_s1 + $0x48] sm:$0xff]  ;;  %s458_s20 = sand.u32 1, %s6305_s27   ;;  %v6315_v20 = vmov 0.0   ;;  %vm538_vm0 = vcmask 392192   ;;  %v528_v33 = vlaneseq }
  0x21   : > { %5858 = vmatprep.subr.mxu1 %v525_v9  ;;  %v522_v12 = vld [vmem:[%s8455_s1 + $0x40] sm:$0xff]  ;;  %583 = vmatprep.subr.mxu0 %v525_v9  ;;  %v521_v13 = vld [vmem:[%s8455_s1 + $0x38] sm:$0xff]  ;;  %v520_v14 = vld [vmem:[%s8455_s1 + $0x30] sm:$0xff]  ;;  %s5209_s14 = sshll.u32 %s458_s20, 6  ;;  %vm6316_vm1 = vmmov 0   ;;  %s6317_s19 = smov 64  }
  0x22   : > { %5864 = vmatpush1.msra.mxu1 %v524_v10  ;;  %584 = vmatpush1.msra.mxu0 %v524_v10  ;;  %v519_v15 = vld [vmem:[%s8455_s1 + $0x28] sm:$0xff]  ;;  %v518_v16 = vld [vmem:[%s8455_s1 + $0x20] sm:$0xff]  ;;  %v517_v17 = vld [vmem:[%s8455_s1 + $0x18] sm:$0xff]  ;;  %s6468_s25 = scalar_lea.vmem [#allocation3], %s5209_s14  ;;  %v6562_v34 = vshrl.u32 %v528_v33, 7  ;;  %s6318_s21 = smov 32  }
  0x23   : > { %5859 = vmatprep.subr.mxu1 %v523_v11  ;;  %585 = vmatprep.subr.mxu0 %v523_v11  ;;  %v516_v18 = vld [vmem:[%s8455_s1 + $0x10] sm:$0xff]  ;;  %v515_v19 = vld [vmem:[%s8455_s1 + $0x8] sm:$0xff]  ;;  %v514_v21 = vld [vmem:[%s8455_s1] sm:$0xff]  ;;  %vm684_vm2 = vcmask 261120   ;;  %vm2334_vm3 = vcmask 523264   ;;  %s6319_s18 = smov 96  }
  0x24   : > { %5865 = vmatpush1.msra.mxu1 %v522_v12  ;;  %586 = vmatpush1.msra.mxu0 %v522_v12  ;;  %v512_v22 = vld [vmem:[%s6468_s25 + $0x30] sm:$0xff]  ;;  %v513_v25 = vld [vmem:[%s6468_s25 + $0x38] sm:$0xff]  ;;  %v506_v26 = vld [vmem:[%s6468_s25] sm:$0xff]  ;;  %v530_v35 = vsub.s32 0, %v6562_v34  ;;  %v534_v45 = vsub.s32 1, %v6562_v34  ;;  %vm5061_vm4 = vcmask 1041409  }
  0x25   : > { %5860 = vmatprep.subr.mxu1 %v521_v13  ;;  %587 = vmatprep.subr.mxu0 %v521_v13  ;;  %v6474_v23 = vld [vmem:[%s8456_s2 + $0x18] sm:$0xff]  ;;  %v6481_v24 = vld [vmem:[%s8456_s2 + $0x10] sm:$0xff]  ;;  %v6491_v27 = vld [vmem:[%s8456_s2 + $0x8] sm:$0xff]  ;;  %vm5063_vm5 = vcmask 1042434   ;;  %vm5065_vm6 = vcmask 1043459   ;;  %vm5067_vm7 = vcmask 1044484  }
  0x26   : > { %5866 = vmatpush1.msra.mxu1 %v520_v14  ;;  %588 = vmatpush1.msra.mxu0 %v520_v14  ;;  %v6500_v28 = vld [vmem:[%s8456_s2] sm:$0xff]  ;;  %v6510_v29 = vld [vmem:[%s8457_s3 + $0x18] sm:$0xff]  ;;  %v6519_v30 = vld [vmem:[%s8457_s3 + $0x10] sm:$0xff]  ;;  %p8171_p8 = scmp.lt.s32.totalorder %s5202_s12, 1  ;;  %vm5069_vm8 = vcmask 1045509   ;;  %vm5071_vm9 = vcmask 1046534  }
  0x27   : > { %5861 = vmatprep.subr.mxu1 %v519_v15  ;;  %589 = vmatprep.subr.mxu0 %v519_v15  ;;  %v6528_v31 = vld [vmem:[%s8457_s3 + $0x8] sm:$0xff]  ;;  %v6537_v32 = vld [vmem:[%s8457_s3] sm:$0xff]  ;;  %vm5073_vm10 = vcmask 1047559   ;;  %vm5132_vm11 = vcmask 64512  }
  0x28   : > { %5867 = vmatpush1.msra.mxu1 %v518_v16  ;;  %663 = vmatprep.mubr.f32.mxu1 %v6315_v20  ;;  %v526_v37 = vld [vmem:[%s8458_s4] sm:$0x3]  ;;  %v507_v9 = vld [vmem:[%s6468_s25 + $0x8] sm:$0xff]  ;;  %s8576_s12 = smov (!%p8171_p8, %s5202_s12), 1 }
  0x29   : > { %5862 = vmatprep.subr.mxu1 %v517_v17  ;;  %590 = vmatpush1.msra.mxu0 %v518_v16  ;;  %v6574_v39 = vrot.slane %v526_v37, %v530_v35  ;;  %v6582_v48 = vrot.slane %v526_v37, %v534_v45  ;;  %s5301_s29 = sshll.u32 %s8576_s12, 6 }
  0x2a   : > { %5868 = vmatpush1.msra.mxu1 %v516_v18  ;;  %591 = vmatprep.subr.mxu0 %v517_v17  ;;  %s8296_s24 = scalar_lea.vmem %s8467_s13, %s5301_s29 }
  0x2b   : > { %5863 = vmatprep.subr.mxu1 %v515_v19  ;;  %592 = vmatpush1.msra.mxu0 %v516_v18 }
  0x2c   : > { %5869 = vmatpush1.msra.mxu1 %v514_v21  ;;  %593 = vmatprep.subr.mxu0 %v515_v19 }
  0x2d   : > { %5218 = vmatmul.mubr.msk.f32.vlgmr.msra.gmra.mxu1 %vm538_vm0, %v512_v22  ;;  %5478 = vmatprep.subr.mxu1 %v6315_v20 }
  0x2e   : > { %5479 = vmatpush3.msra.mxu1 %v6474_v23  ;;  %669 = vmatprep.mubr.f32.mxu1 %v6315_v20 }
  0x2f   : > { %5480 = vmatprep.subr.mxu1 %v6315_v20  ;;  %594 = vmatpush1.msra.mxu0 %v514_v21 }
  0x30   : > { %5481 = vmatpush3.msra.mxu1 %v6481_v24  ;;  %627 = vmatprep.mubr.f32.mxu0 %v6315_v20 }
  0x31   : > { %5219 = vmatmul.mubr.msk.f32.gmra.mxu1 %vm538_vm0, %v513_v25  ;;  %5482 = vmatprep.subr.mxu1 %v6315_v20 }
  0x32   : > { %5212 = vmatmul.mubr.msk.f32.vlgmr.msra.gmra.mxu0 %vm538_vm0, %v506_v26  ;;  %5483 = vmatpush3.msra.mxu1 %v6491_v27 }
  0x33   : > { %5484 = vmatprep.subr.mxu1 %v6315_v20  ;;  %5486 = vmatprep.mubr.msk.f32.mxu1 %vm6316_vm1, %v6315_v20 }
  0x34   : > { %5485 = vmatpush3.msra.mxu1 %v6500_v28  ;;  %633 = vmatprep.mubr.f32.mxu0 %v6315_v20 }
  0x35   : > { %5487 = vmatmul.mubr.f32.vlgmr.msra.gmra.mxu1 %v6315_v20  ;;  %5489 = vmatprep.subr.mxu1 %v6315_v20 }
  0x36   : > { %5490 = vmatpush3.msra.mxu1 %v6510_v29  ;;  %5497 = vmatprep.mubr.msk.f32.mxu1 %vm6316_vm1, %v6315_v20 }
  0x37   : > { %5491 = vmatprep.subr.mxu1 %v6315_v20  ;;  %5533 = vmatprep.subr.mxu0 %v6315_v20 }
  0x38   : > { %5492 = vmatpush3.msra.mxu1 %v6519_v30  ;;  %5534 = vmatpush3.msra.mxu0 %v6510_v29 }
  0x39   : > { %5493 = vmatprep.subr.mxu1 %v6315_v20  ;;  %5535 = vmatprep.subr.mxu0 %v6315_v20 }
  0x3a   : > { %5494 = vmatpush3.msra.mxu1 %v6528_v31  ;;  %5536 = vmatpush3.msra.mxu0 %v6519_v30 }
  0x3b   : > { %5495 = vmatprep.subr.mxu1 %v6315_v20  ;;  %5537 = vmatprep.subr.mxu0 %v6315_v20 }
  0x3c   : > { %5496 = vmatpush3.msra.mxu1 %v6537_v32  ;;  %5538 = vmatpush3.msra.mxu0 %v6528_v31 }
  0x3d   : > { %5498 = vmatmul.mubr.f32.vlgmr.msra.gmra.mxu1 %v6315_v20  ;;  %5500 = vmatprep.subr.mxu1 %v6315_v20 }
  0x3e   : > { %5501 = vmatpush3.msra.mxu1 %v6474_v23  ;;  %5508 = vmatprep.mubr.msk.f32.mxu1 %vm6316_vm1, %v6315_v20 }
  0x3f   : > { %5502 = vmatprep.subr.mxu1 %v6315_v20  ;;  %5539 = vmatprep.subr.mxu0 %v6315_v20 }
  0x40   : > { %5503 = vmatpush3.msra.mxu1 %v6481_v24  ;;  %5540 = vmatpush3.msra.mxu0 %v6537_v32 }
  0x41   : > { %5504 = vmatprep.subr.mxu1 %v6315_v20  ;;  %5555 = vmatprep.subr.mxu0 %v6315_v20 }
  0x42   : > { %5505 = vmatpush3.msra.mxu1 %v6491_v27  ;;  %5213 = vmatmul.mubr.msk.f32.gmra.mxu0 %vm538_vm0, %v507_v9 }
  0x43   : > { %5506 = vmatprep.subr.mxu1 %v6315_v20  ;;  %639 = vmatprep.mubr.f32.mxu0 %v6315_v20 }
  0x44   : > { %5507 = vmatpush3.msra.mxu1 %v6500_v28 }
  0x45   : > { %5511 = vmatprep.subr.mxu1 %v6315_v20 }
  0xed   : > { %v6565_v36 = vpop.f32.mrf.mxu1 }
  0xef   : > { %v6570_v38 = vpop.f32.mrf.mxu1 }
  0xf0   : > { %v668_v37 = vadd.f32 %v6570_v38, %v6582_v48 }
  0xf1   : > { %v6576_v40 = vpop.f32.mrf.mxu1 }
  0xf2   : > { %v629_v41 = vpop.f32.mrf.mxu0 }
  0xf3   : > { %v630_v42 = vadd.f32 %v629_v41, %v6574_v39  ;;  %v673_v43 = vpop.f32.mrf.mxu1 }
  0xf4   : > { %v674_v49 = vadd.f32 %v673_v43, %v6582_v48  ;;  %v6630_v18 = vpop.f32.mrf.mxu0 }
  0xf5   : > { %v754_v44 = vpop.f32.mrf.mxu1 }
  0xf6   : > { %v755_v46 = vadd.f32 %v754_v44, %v630_v42 }
  0xf7   : > { %v5488_v47 = vpop.f32.mrf.mxu1 }
  0xf8   : > { %5902 = vtanh.f32 %v755_v46  ;;  %v5220_v55 = vmul.f32 -1.442695, %v755_v46 }
  0xfd   : > { %v824_v50 = vpop.f32.mrf.mxu1 }
  0xfe   : > { %v825_v51 = vadd.f32 %v824_v50, %v674_v49 }
  0xff   : > { %v5499_v52 = vpop.f32.mrf.mxu1 }
 0x100   : > { %5904 = vtanh.f32 %v825_v51  ;;  %v5221_v56 = vmul.f32 -1.442695, %v825_v51 }
 0x101   : > { %5906 = vpow2.f32 %v5220_v55 }
 0x102   : > { %5908 = vpow2.f32 %v5221_v56  ;;  %v635_v19 = vpop.f32.mrf.mxu0 }
 0x103   : > { %v636_v21 = vadd.f32 %v635_v19, %v6574_v39 }
 0x105   : > { %v5903_v53 = vpop.eup %5902 }
 0x106   : > { %844 = vrot.lane.b32.xlu0 %v5903_v53, %s6317_s19 }
 0x10d   : > { %v5905_v54 = vpop.eup %5904 }
 0x10e   : > { %855 = vrot.lane.b32.xlu0 %v5905_v54, %s6317_s19  ;;  %v5907_v57 = vpop.eup %5906 }
 0x10f   : > { %v831_v58 = vadd.f32 1.0, %v5907_v57  ;;  %v5909_v59 = vpop.eup %5908 }
 0x110   : > { %v838_v60 = vadd.f32 1.0, %v5909_v59 }
 0x111   : > { %5910 = vrcp.f32 %v831_v58 }
 0x112   : > { %5912 = vrcp.f32 %v838_v60 }
 0x11e   : > { %v5911_v61 = vpop.eup %5910 }
 0x11f   : > { %v5913_v0 = vpop.eup %5912  ;;  %v842_v3 = vmul.f32 0.0, %v5911_v61 }
 0x120   : > { %v853_v6 = vmul.f32 0.0, %v5913_v0 }
 0x178   : > { %v845_v62 = vpop.permute.xlu0 %844 }
 0x179   : > { %v847_v63 = vmul.f32 %v5911_v61, %v845_v62 }
 0x17b   : > { %849 = vrot.lane.b32.xlu1 %v847_v63, %s6318_s21 }
 0x180   : > { %v856_v1 = vpop.permute.xlu0 %855 }
 0x181   : > { %v858_v2 = vmul.f32 %v5913_v0, %v856_v1  ;;  %v508_v1 = vld [vmem:[%s6468_s25 + $0x10] sm:$0xff] }
 0x182   : > { %5214 = vmatmul.mubr.msk.f32.gmra.mxu0 %vm538_vm0, %v508_v1 }
 0x183   : > { %860 = vrot.lane.b32.xlu1 %v858_v2, %s6318_s21  ;;  %645 = vmatprep.mubr.f32.mxu0 %v6315_v20 }
 0x1ed   : > { %v850_v4 = vpop.permute.xlu1 %849 }
 0x1ee   : > { %v6589_v5 = vadd.f32 %v850_v4, %v842_v3  ;;  %v509_v3 = vld [vmem:[%s6468_s25 + $0x18] sm:$0xff]  ;;  %v510_v4 = vld [vmem:[%s6468_s25 + $0x20] sm:$0xff] }
 0x1ef   : > { %5215 = vmatmul.mubr.msk.f32.gmra.mxu0 %vm538_vm0, %v509_v3 }
 0x1f0   : > { %5914 = vtanh.f32 %v6589_v5  ;;  %651 = vmatprep.mubr.f32.mxu0 %v6315_v20 }
 0x1f3   : > { %5216 = vmatmul.mubr.msk.f32.gmra.mxu0 %vm538_vm0, %v510_v4 }
 0x1f4   : > { %657 = vmatprep.mubr.f32.mxu0 %v6315_v20 }
 0x1f5   : > { %v861_v7 = vpop.permute.xlu1 %860 }
 0x1f6   : > { %v6592_v8 = vadd.f32 %v861_v7, %v853_v6  ;;  %v511_v6 = vld [vmem:[%s6468_s25 + $0x28] sm:$0xff] }
 0x1f7   : > { %5217 = vmatmul.mubr.msk.f32.gmra.mxu0 %vm538_vm0, %v511_v6 }
 0x1f8   : > { %5916 = vtanh.f32 %v6592_v8  ;;  %5541 = vmatprep.mubr.msk.f32.mxu0 %vm6316_vm1, %v6315_v20 }
 0x1fd   : > { %v5915_v10 = vpop.eup %5914 }
 0x1fe   : > { %866 = vrot.lane.b32.xlu0 %v5915_v10, %s6317_s19 }
 0x205   : > { %v5917_v11 = vpop.eup %5916 }
 0x206   : > { %872 = vrot.lane.b32.xlu1 %v5917_v11, %s6317_s19 }
 0x270   : > { %v867_v12 = vpop.permute.xlu0 %866 }
 0x271   : > { %v869_v13 = vmul.f32 %v5911_v61, %v867_v12 }
 0x273   : > { %877 = vrot.lane.b32.xlu0 %v869_v13, %s6318_s21  ;;  %v6692_v13 = vpop.f32.mrf.mxu0 }
 0x278   : > { %v873_v14 = vpop.permute.xlu1 %872 }
 0x279   : > { %v6601_v15 = vmul.f32 %v5913_v0, %v873_v14  ;;  %v641_v14 = vpop.f32.mrf.mxu0 }
 0x27b   : > { %952 = vrot.lane.b32.xlu1 %v6601_v15, %s6318_s21 }
 0x2e5   : > { %v6605_v16 = vpop.permute.xlu0 %877 }
 0x2e6   : > { %5509 = vmatmul.mubr.msk.f32.vlgmr.msra.gmra.mxu1 %vm684_vm2, %v6605_v16 }
 0x2e7   : > { %5512 = vmatpush3.msra.mxu1 %v6510_v29  ;;  %5519 = vmatprep.mubr.msk.f32.mxu1 %vm6316_vm1, %v6315_v20 }
 0x2e8   : > { %5513 = vmatprep.subr.mxu1 %v6315_v20 }
 0x2e9   : > { %5514 = vmatpush3.msra.mxu1 %v6519_v30 }
 0x2ea   : > { %5515 = vmatprep.subr.mxu1 %v6315_v20 }
 0x2eb   : > { %5516 = vmatpush3.msra.mxu1 %v6528_v31 }
 0x2ec   : > { %5517 = vmatprep.subr.mxu1 %v6315_v20 }
 0x2ed   : > { %v953_v17 = vpop.permute.xlu1 %952  ;;  %5518 = vmatpush3.msra.mxu1 %v6537_v32 }
 0x2ee   : > { %5520 = vmatmul.mubr.msk.f32.vlgmr.msra.gmra.mxu1 %vm684_vm2, %v953_v17  ;;  %5522 = vmatprep.subr.mxu1 %v6315_v20  ;;  %v6694_v17 = vpop.f32.mrf.mxu0 }
 0x2ef   : > { %5523 = vmatpush3.msra.mxu1 %v6474_v23  ;;  %5530 = vmatprep.mubr.msk.f32.mxu1 %vm6316_vm1, %v6315_v20 }
 0x2f0   : > { %5524 = vmatprep.subr.mxu1 %v6315_v20  ;;  %v6696_v19 = vpop.f32.mrf.mxu0 }
 0x2f1   : > { %5525 = vmatpush3.msra.mxu1 %v6481_v24 }
 0x2f2   : > { %5526 = vmatprep.subr.mxu1 %v6315_v20 }
 0x2f3   : > { %5527 = vmatpush3.msra.mxu1 %v6491_v27 }
 0x2f4   : > { %5528 = vmatprep.subr.mxu1 %v6315_v20 }
 0x2f5   : > { %5529 = vmatpush3.msra.mxu1 %v6500_v28 }
 0x2f6   : > { %5544 = vmatprep.subr.mxu1 %v6315_v20 }
 0x3a6   : > { %v947_v22 = vpop.f32.mrf.mxu1 }
 0x3a7   : > { %v948_v25 = vadd.f32 %v947_v22, %v636_v21  ;;  %v6698_v21 = vpop.f32.mrf.mxu0 }
 0x3a8   : > { %v5510_v26 = vpop.f32.mrf.mxu1 }
 0x3a9   : > { %5918 = vtanh.f32 %v948_v25  ;;  %v5224_v47 = vmul.f32 -1.442695, %v948_v25  ;;  %v6700_v22 = vpop.f32.mrf.mxu0  ;;  %v642_v26 = vadd.f32 %v641_v14, %v6574_v39 }
 0x3ab   : > { %v6702_v25 = vpop.f32.mrf.mxu0 }
 0x3ae   : > { %v1022_v41 = vpop.f32.mrf.mxu1 }
 0x3af   : > { %v1023_v42 = vadd.f32 %v1022_v41, %v668_v37  ;;  %v6705_v41 = vpop.f32.mrf.mxu0 }
 0x3b0   : > { %v5521_v43 = vpop.f32.mrf.mxu1 }
 0x3b1   : > { %5920 = vtanh.f32 %v1023_v42  ;;  %v5225_v49 = vmul.f32 -1.442695, %v1023_v42 }
 0x3b2   : > { %5922 = vpow2.f32 %v5224_v47 }
 0x3b3   : > { %5924 = vpow2.f32 %v5225_v49 }
 0x3b6   : > { %v5919_v44 = vpop.eup %5918 }
 0x3b7   : > { %1042 = vrot.lane.b32.xlu1 %v5919_v44, %s6317_s19  ;;  %v661_v44 = vpop.f32.mrf.mxu0 }
 0x3be   : > { %v5921_v46 = vpop.eup %5920 }
 0x3bf   : > { %1053 = vrot.lane.b32.xlu0 %v5921_v46, %s6317_s19  ;;  %v5923_v50 = vpop.eup %5922  ;;  %v662_v46 = vadd.f32 %v661_v44, %v6582_v48 }
 0x3c0   : > { %v1029_v51 = vadd.f32 1.0, %v5923_v50  ;;  %v5925_v52 = vpop.eup %5924 }
 0x3c1   : > { %v1036_v53 = vadd.f32 1.0, %v5925_v52 }
 0x3c2   : > { %5926 = vrcp.f32 %v1029_v51 }
 0x3c3   : > { %5928 = vrcp.f32 %v1036_v53 }
 0x3cf   : > { %v5927_v38 = vpop.eup %5926 }
 0x3d0   : > { %v5929_v56 = vpop.eup %5928  ;;  %v1040_v59 = vmul.f32 %v5927_v38, %v6589_v5 }
 0x3d1   : > { %v1051_v62 = vmul.f32 %v5929_v56, %v6592_v8 }
 0x429   : > { %v1043_v54 = vpop.permute.xlu1 %1042 }
 0x42a   : > { %v1045_v55 = vmul.f32 %v5927_v38, %v1043_v54 }
 0x42c   : > { %1047 = vrot.lane.b32.xlu1 %v1045_v55, %s6318_s21 }
 0x431   : > { %v1054_v57 = vpop.permute.xlu0 %1053 }
 0x432   : > { %v1056_v58 = vmul.f32 %v5929_v56, %v1054_v57 }
 0x434   : > { %1058 = vrot.lane.b32.xlu0 %v1056_v58, %s6318_s21 }
 0x49e   : > { %v1048_v60 = vpop.permute.xlu1 %1047 }
 0x49f   : > { %v6640_v61 = vadd.f32 %v1048_v60, %v1040_v59 }
 0x4a1   : > { %5930 = vtanh.f32 %v6640_v61 }
 0x4a6   : > { %v1059_v63 = vpop.permute.xlu0 %1058 }
 0x4a7   : > { %v6644_v0 = vadd.f32 %v1059_v63, %v1051_v62 }
 0x4a9   : > { %5932 = vtanh.f32 %v6644_v0 }
 0x4ae   : > { %v5931_v2 = vpop.eup %5930 }
 0x4af   : > { %1064 = vrot.lane.b32.xlu1 %v5931_v2, %s6317_s19 }
 0x4b6   : > { %v5933_v5 = vpop.eup %5932 }
 0x4b7   : > { %1070 = vrot.lane.b32.xlu0 %v5933_v5, %s6317_s19 }
 0x521   : > { %v1065_v7 = vpop.permute.xlu1 %1064 }
 0x522   : > { %v1067_v8 = vmul.f32 %v5927_v38, %v1065_v7 }
 0x524   : > { %1075 = vrot.lane.b32.xlu1 %v1067_v8, %s6318_s21 }
 0x529   : > { %v1071_v9 = vpop.permute.xlu0 %1070 }
 0x52a   : > { %v6663_v10 = vmul.f32 %v5929_v56, %v1071_v9 }
 0x52c   : > { %1150 = vrot.lane.b32.xlu0 %v6663_v10, %s6318_s21 }
 0x596   : > { %v6667_v11 = vpop.permute.xlu1 %1075 }
 0x597   : > { %5531 = vmatmul.mubr.msk.f32.vlgmr.msra.gmra.mxu1 %vm684_vm2, %v6667_v11 }
 0x598   : > { %5545 = vmatpush3.msra.mxu1 %v6474_v23  ;;  %5552 = vmatprep.mubr.msk.f32.mxu1 %vm6316_vm1, %v6315_v20 }
 0x599   : > { %5546 = vmatprep.subr.mxu1 %v6315_v20 }
 0x59a   : > { %5547 = vmatpush3.msra.mxu1 %v6481_v24 }
 0x59b   : > { %5548 = vmatprep.subr.mxu1 %v6315_v20 }
 0x59c   : > { %5549 = vmatpush3.msra.mxu1 %v6491_v27 }
 0x59d   : > { %5550 = vmatprep.subr.mxu1 %v6315_v20 }
 0x59e   : > { %v1151_v12 = vpop.permute.xlu0 %1150  ;;  %5551 = vmatpush3.msra.mxu1 %v6500_v28 }
 0x59f   : > { %5542 = vmatmul.mubr.msk.f32.vlgmr.msra.gmra.mxu0 %vm684_vm2, %v1151_v12  ;;  %5566 = vmatprep.subr.mxu1 %v6315_v20 }
 0x5a0   : > { %5556 = vmatpush3.msra.mxu0 %v6510_v29  ;;  %5563 = vmatprep.mubr.msk.f32.mxu0 %vm6316_vm1, %v6315_v20 }
 0x5a1   : > { %5557 = vmatprep.subr.mxu0 %v6315_v20 }
 0x5a2   : > { %5558 = vmatpush3.msra.mxu0 %v6519_v30 }
 0x5a3   : > { %5559 = vmatprep.subr.mxu0 %v6315_v20 }
 0x5a4   : > { %5560 = vmatpush3.msra.mxu0 %v6528_v31 }
 0x5a5   : > { %5561 = vmatprep.subr.mxu0 %v6315_v20 }
 0x5a6   : > { %5562 = vmatpush3.msra.mxu0 %v6537_v32 }
 0x5a7   : > { %5577 = vmatprep.subr.mxu0 %v6315_v20 }
 0x657   : > { %v1145_v37 = vpop.f32.mrf.mxu1 }
 0x658   : > { %v1146_v42 = vadd.f32 %v1145_v37, %v642_v26 }
 0x659   : > { %v5532_v43 = vpop.f32.mrf.mxu1 }
 0x65a   : > { %5934 = vtanh.f32 %v1146_v42  ;;  %v5228_v53 = vmul.f32 -1.442695, %v1146_v42  ;;  %v648_v42 = vadd.f32 %v6696_v19, %v6574_v39 }
 0x65f   : > { %v1220_v47 = vpop.f32.mrf.mxu0 }
 0x660   : > { %v1221_v49 = vadd.f32 %v1220_v47, %v662_v46  ;;  %v656_v47 = vadd.f32 %v6702_v25, %v6582_v48 }
 0x661   : > { %v5543_v50 = vpop.f32.mrf.mxu0 }
 0x662   : > { %5936 = vtanh.f32 %v1221_v49  ;;  %v5229_v38 = vmul.f32 -1.442695, %v1221_v49 }
 0x663   : > { %5938 = vpow2.f32 %v5228_v53 }
 0x664   : > { %5940 = vpow2.f32 %v5229_v38 }
 0x667   : > { %v5935_v51 = vpop.eup %5934 }
 0x668   : > { %1240 = vrot.lane.b32.xlu1 %v5935_v51, %s6317_s19 }
 0x66f   : > { %v5937_v52 = vpop.eup %5936 }
 0x670   : > { %1251 = vrot.lane.b32.xlu0 %v5937_v52, %s6317_s19  ;;  %v5939_v54 = vpop.eup %5938 }
 0x671   : > { %v1227_v55 = vadd.f32 1.0, %v5939_v54  ;;  %v5941_v56 = vpop.eup %5940 }
 0x672   : > { %v1234_v57 = vadd.f32 1.0, %v5941_v56 }
 0x673   : > { %5942 = vrcp.f32 %v1227_v55 }
 0x674   : > { %5944 = vrcp.f32 %v1234_v57 }
 0x680   : > { %v5943_v58 = vpop.eup %5942 }
 0x681   : > { %v5945_v62 = vpop.eup %5944  ;;  %v1238_v2 = vmul.f32 %v5943_v58, %v6640_v61 }
 0x682   : > { %v1249_v5 = vmul.f32 %v5945_v62, %v6644_v0 }
 0x6da   : > { %v1241_v59 = vpop.permute.xlu1 %1240 }
 0x6db   : > { %v1243_v60 = vmul.f32 %v5943_v58, %v1241_v59 }
 0x6dd   : > { %1245 = vrot.lane.b32.xlu1 %v1243_v60, %s6318_s21 }
 0x6e2   : > { %v1252_v63 = vpop.permute.xlu0 %1251 }
 0x6e3   : > { %v1254_v1 = vmul.f32 %v5945_v62, %v1252_v63 }
 0x6e5   : > { %1256 = vrot.lane.b32.xlu0 %v1254_v1, %s6318_s21 }
 0x74f   : > { %v1246_v3 = vpop.permute.xlu1 %1245 }
 0x750   : > { %v6713_v4 = vadd.f32 %v1246_v3, %v1238_v2 }
 0x752   : > { %5946 = vtanh.f32 %v6713_v4 }
 0x757   : > { %v1257_v6 = vpop.permute.xlu0 %1256 }
 0x758   : > { %v6717_v7 = vadd.f32 %v1257_v6, %v1249_v5 }
 0x75a   : > { %5948 = vtanh.f32 %v6717_v7 }
 0x75f   : > { %v5947_v8 = vpop.eup %5946 }
 0x760   : > { %1262 = vrot.lane.b32.xlu1 %v5947_v8, %s6317_s19 }
 0x767   : > { %v5949_v9 = vpop.eup %5948 }
 0x768   : > { %1268 = vrot.lane.b32.xlu0 %v5949_v9, %s6317_s19 }
 0x7d2   : > { %v1263_v12 = vpop.permute.xlu1 %1262 }
 0x7d3   : > { %v1265_v61 = vmul.f32 %v5943_v58, %v1263_v12 }
 0x7d5   : > { %1273 = vrot.lane.b32.xlu1 %v1265_v61, %s6318_s21 }
 0x7da   : > { %v1269_v14 = vpop.permute.xlu0 %1268 }
 0x7db   : > { %v6723_v26 = vmul.f32 %v5945_v62, %v1269_v14 }
 0x7dd   : > { %1348 = vrot.lane.b32.xlu0 %v6723_v26, %s6318_s21 }
 0x847   : > { %v6727_v0 = vpop.permute.xlu1 %1273 }
 0x848   : > { %5553 = vmatmul.mubr.msk.f32.vlgmr.msra.gmra.mxu1 %vm684_vm2, %v6727_v0 }
 0x849   : > { %5567 = vmatpush3.msra.mxu1 %v6474_v23  ;;  %5574 = vmatprep.mubr.msk.f32.mxu1 %vm6316_vm1, %v6315_v20 }
 0x84a   : > { %5568 = vmatprep.subr.mxu1 %v6315_v20 }
 0x84b   : > { %5569 = vmatpush3.msra.mxu1 %v6481_v24 }
 0x84c   : > { %5570 = vmatprep.subr.mxu1 %v6315_v20 }
 0x84d   : > { %5571 = vmatpush3.msra.mxu1 %v6491_v27 }
 0x84e   : > { %5572 = vmatprep.subr.mxu1 %v6315_v20 }
 0x84f   : > { %v1349_v37 = vpop.permute.xlu0 %1348  ;;  %5573 = vmatpush3.msra.mxu1 %v6500_v28 }
 0x850   : > { %5564 = vmatmul.mubr.msk.f32.vlgmr.msra.gmra.mxu0 %vm684_vm2, %v1349_v37  ;;  %5588 = vmatprep.subr.mxu1 %v6315_v20 }
 0x851   : > { %5578 = vmatpush3.msra.mxu0 %v6510_v29  ;;  %5585 = vmatprep.mubr.msk.f32.mxu0 %vm6316_vm1, %v6315_v20 }
 0x852   : > { %5579 = vmatprep.subr.mxu0 %v6315_v20 }
 0x853   : > { %5580 = vmatpush3.msra.mxu0 %v6519_v30 }
 0x854   : > { %5581 = vmatprep.subr.mxu0 %v6315_v20 }
 0x855   : > { %5582 = vmatpush3.msra.mxu0 %v6528_v31 }
 0x856   : > { %5583 = vmatprep.subr.mxu0 %v6315_v20 }
 0x857   : > { %5584 = vmatpush3.msra.mxu0 %v6537_v32 }
 0x858   : > { %5599 = vmatprep.subr.mxu0 %v6315_v20 }
 0x908   : > { %v1343_v43 = vpop.f32.mrf.mxu1 }
 0x909   : > { %v1344_v44 = vadd.f32 %v1343_v43, %v648_v42  ;;  %v654_v43 = vadd.f32 %v6700_v22, %v6574_v39 }
 0x90a   : > { %v5554_v46 = vpop.f32.mrf.mxu1 }
 0x90b   : > { %5950 = vtanh.f32 %v1344_v44  ;;  %v5232_v38 = vmul.f32 -1.442695, %v1344_v44 }
 0x910   : > { %v1418_v49 = vpop.f32.mrf.mxu0 }
 0x911   : > { %v1419_v50 = vadd.f32 %v1418_v49, %v656_v47  ;;  %v650_v49 = vadd.f32 %v6698_v21, %v6582_v48 }
 0x912   : > { %v5565_v51 = vpop.f32.mrf.mxu0 }
 0x913   : > { %5952 = vtanh.f32 %v1419_v50  ;;  %v5233_v19 = vmul.f32 -1.442695, %v1419_v50 }
 0x914   : > { %5954 = vpow2.f32 %v5232_v38 }
 0x915   : > { %5956 = vpow2.f32 %v5233_v19 }
 0x918   : > { %v5951_v52 = vpop.eup %5950 }
 0x919   : > { %1438 = vrot.lane.b32.xlu1 %v5951_v52, %s6317_s19 }
 0x920   : > { %v5953_v53 = vpop.eup %5952 }
 0x921   : > { %1449 = vrot.lane.b32.xlu0 %v5953_v53, %s6317_s19  ;;  %v5955_v54 = vpop.eup %5954 }
 0x922   : > { %v1425_v55 = vadd.f32 1.0, %v5955_v54  ;;  %v5957_v56 = vpop.eup %5956 }
 0x923   : > { %v1432_v57 = vadd.f32 1.0, %v5957_v56 }
 0x924   : > { %5958 = vrcp.f32 %v1425_v55 }
 0x925   : > { %5960 = vrcp.f32 %v1432_v57 }
 0x931   : > { %v5959_v25 = vpop.eup %5958 }
 0x932   : > { %v5961_v60 = vpop.eup %5960  ;;  %v1436_v1 = vmul.f32 %v5959_v25, %v6713_v4 }
 0x933   : > { %v1447_v5 = vmul.f32 %v5961_v60, %v6717_v7 }
 0x98b   : > { %v1439_v58 = vpop.permute.xlu1 %1438 }
 0x98c   : > { %v1441_v59 = vmul.f32 %v5959_v25, %v1439_v58 }
 0x98e   : > { %1443 = vrot.lane.b32.xlu1 %v1441_v59, %s6318_s21 }
 0x993   : > { %v1450_v62 = vpop.permute.xlu0 %1449 }
 0x994   : > { %v1452_v63 = vmul.f32 %v5961_v60, %v1450_v62 }
 0x996   : > { %1454 = vrot.lane.b32.xlu0 %v1452_v63, %s6318_s21 }
 0xa00   : > { %v1444_v2 = vpop.permute.xlu1 %1443 }
 0xa01   : > { %v6761_v3 = vadd.f32 %v1444_v2, %v1436_v1 }
 0xa03   : > { %5962 = vtanh.f32 %v6761_v3 }
 0xa08   : > { %v1455_v6 = vpop.permute.xlu0 %1454 }
 0xa09   : > { %v6765_v8 = vadd.f32 %v1455_v6, %v1447_v5 }
 0xa0b   : > { %5964 = vtanh.f32 %v6765_v8 }
 0xa10   : > { %v5963_v9 = vpop.eup %5962 }
 0xa11   : > { %1460 = vrot.lane.b32.xlu1 %v5963_v9, %s6317_s19 }
 0xa18   : > { %v5965_v12 = vpop.eup %5964 }
 0xa19   : > { %1466 = vrot.lane.b32.xlu0 %v5965_v12, %s6317_s19 }
 0xa83   : > { %v1461_v61 = vpop.permute.xlu1 %1460 }
 0xa84   : > { %v1463_v4 = vmul.f32 %v5959_v25, %v1461_v61 }
 0xa86   : > { %1471 = vrot.lane.b32.xlu1 %v1463_v4, %s6318_s21 }
 0xa8b   : > { %v1467_v14 = vpop.permute.xlu0 %1466 }
 0xa8c   : > { %v6771_v37 = vmul.f32 %v5961_v60, %v1467_v14 }
 0xa8e   : > { %1546 = vrot.lane.b32.xlu0 %v6771_v37, %s6318_s21 }
 0xaf8   : > { %v6775_v7 = vpop.permute.xlu1 %1471 }
 0xaf9   : > { %5575 = vmatmul.mubr.msk.f32.vlgmr.msra.gmra.mxu1 %vm684_vm2, %v6775_v7 }
 0xafa   : > { %5589 = vmatpush3.msra.mxu1 %v6474_v23  ;;  %5596 = vmatprep.mubr.msk.f32.mxu1 %vm6316_vm1, %v6315_v20 }
 0xafb   : > { %5590 = vmatprep.subr.mxu1 %v6315_v20 }
 0xafc   : > { %5591 = vmatpush3.msra.mxu1 %v6481_v24 }
 0xafd   : > { %5592 = vmatprep.subr.mxu1 %v6315_v20 }
 0xafe   : > { %5593 = vmatpush3.msra.mxu1 %v6491_v27 }
 0xaff   : > { %5594 = vmatprep.subr.mxu1 %v6315_v20 }
 0xb00   : > { %v1547_v42 = vpop.permute.xlu0 %1546  ;;  %5595 = vmatpush3.msra.mxu1 %v6500_v28 }
 0xb01   : > { %5586 = vmatmul.mubr.msk.f32.vlgmr.msra.gmra.mxu0 %vm684_vm2, %v1547_v42  ;;  %5610 = vmatprep.subr.mxu1 %v6315_v20 }
 0xb02   : > { %5600 = vmatpush3.msra.mxu0 %v6510_v29  ;;  %5607 = vmatprep.mubr.msk.f32.mxu0 %vm6316_vm1, %v6315_v20 }
 0xb03   : > { %5601 = vmatprep.subr.mxu0 %v6315_v20 }
 0xb04   : > { %5602 = vmatpush3.msra.mxu0 %v6519_v30 }
 0xb05   : > { %5603 = vmatprep.subr.mxu0 %v6315_v20 }
 0xb06   : > { %5604 = vmatpush3.msra.mxu0 %v6528_v31 }
 0xb07   : > { %5605 = vmatprep.subr.mxu0 %v6315_v20 }
 0xb08   : > { %5606 = vmatpush3.msra.mxu0 %v6537_v32 }
 0xb09   : > { %5621 = vmatprep.subr.mxu0 %v6315_v20 }
 0xbb9   : > { %v1541_v44 = vpop.f32.mrf.mxu1 }
 0xbba   : > { %v1542_v46 = vadd.f32 %v1541_v44, %v654_v43 }
 0xbbb   : > { %v5576_v47 = vpop.f32.mrf.mxu1 }
 0xbbc   : > { %5966 = vtanh.f32 %v1542_v46  ;;  %v5236_v19 = vmul.f32 -1.442695, %v1542_v46 }
 0xbc1   : > { %v1616_v50 = vpop.f32.mrf.mxu0 }
 0xbc2   : > { %v1617_v51 = vadd.f32 %v1616_v50, %v650_v49  ;;  %v644_v49 = vadd.f32 %v6694_v17, %v6582_v48 }
 0xbc3   : > { %v5587_v52 = vpop.f32.mrf.mxu0 }
 0xbc4   : > { %5968 = vtanh.f32 %v1617_v51  ;;  %v5237_v22 = vmul.f32 -1.442695, %v1617_v51 }
 0xbc5   : > { %5970 = vpow2.f32 %v5236_v19 }
 0xbc6   : > { %5972 = vpow2.f32 %v5237_v22 }
 0xbc9   : > { %v5967_v53 = vpop.eup %5966 }
 0xbca   : > { %1636 = vrot.lane.b32.xlu1 %v5967_v53, %s6317_s19 }
 0xbd1   : > { %v5969_v38 = vpop.eup %5968 }
 0xbd2   : > { %1647 = vrot.lane.b32.xlu0 %v5969_v38, %s6317_s19  ;;  %v5971_v54 = vpop.eup %5970 }
 0xbd3   : > { %v1623_v55 = vadd.f32 1.0, %v5971_v54  ;;  %v5973_v56 = vpop.eup %5972 }
 0xbd4   : > { %v1630_v57 = vadd.f32 1.0, %v5973_v56 }
 0xbd5   : > { %5974 = vrcp.f32 %v1623_v55 }
 0xbd6   : > { %5976 = vrcp.f32 %v1630_v57 }
 0xbe2   : > { %v5975_v21 = vpop.eup %5974 }
 0xbe3   : > { %v5977_v59 = vpop.eup %5976  ;;  %v1634_v63 = vmul.f32 %v5975_v21, %v6761_v3 }
 0xbe4   : > { %v1645_v5 = vmul.f32 %v5977_v59, %v6765_v8 }
 0xc3c   : > { %v1637_v25 = vpop.permute.xlu1 %1636 }
 0xc3d   : > { %v1639_v58 = vmul.f32 %v5975_v21, %v1637_v25 }
 0xc3f   : > { %1641 = vrot.lane.b32.xlu1 %v1639_v58, %s6318_s21 }
 0xc44   : > { %v1648_v60 = vpop.permute.xlu0 %1647 }
 0xc45   : > { %v1650_v62 = vmul.f32 %v5977_v59, %v1648_v60 }
 0xc47   : > { %1652 = vrot.lane.b32.xlu0 %v1650_v62, %s6318_s21 }
 0xcb1   : > { %v1642_v1 = vpop.permute.xlu1 %1641 }
 0xcb2   : > { %v6809_v2 = vadd.f32 %v1642_v1, %v1634_v63 }
 0xcb4   : > { %5978 = vtanh.f32 %v6809_v2 }
 0xcb9   : > { %v1653_v6 = vpop.permute.xlu0 %1652 }
 0xcba   : > { %v6813_v9 = vadd.f32 %v1653_v6, %v1645_v5 }
 0xcbc   : > { %5980 = vtanh.f32 %v6813_v9 }
 0xcc1   : > { %v5979_v12 = vpop.eup %5978 }
 0xcc2   : > { %1658 = vrot.lane.b32.xlu1 %v5979_v12, %s6317_s19 }
 0xcc9   : > { %v5981_v61 = vpop.eup %5980 }
 0xcca   : > { %1664 = vrot.lane.b32.xlu0 %v5981_v61, %s6317_s19 }
 0xd34   : > { %v1659_v4 = vpop.permute.xlu1 %1658 }
 0xd35   : > { %v1661_v3 = vmul.f32 %v5975_v21, %v1659_v4 }
 0xd37   : > { %1669 = vrot.lane.b32.xlu1 %v1661_v3, %s6318_s21 }
 0xd3c   : > { %v1665_v14 = vpop.permute.xlu0 %1664 }
 0xd3d   : > { %v6819_v42 = vmul.f32 %v5977_v59, %v1665_v14 }
 0xd3f   : > { %1744 = vrot.lane.b32.xlu0 %v6819_v42, %s6318_s21 }
 0xda9   : > { %v6823_v8 = vpop.permute.xlu1 %1669 }
 0xdaa   : > { %5597 = vmatmul.mubr.msk.f32.vlgmr.msra.gmra.mxu1 %vm684_vm2, %v6823_v8 }
 0xdab   : > { %5611 = vmatpush3.msra.mxu1 %v6474_v23  ;;  %5618 = vmatprep.mubr.msk.f32.mxu1 %vm6316_vm1, %v6315_v20  ;;  %v660_v23 = vadd.f32 %v6705_v41, %v6574_v39 }
 0xdac   : > { %5612 = vmatprep.subr.mxu1 %v6315_v20 }
 0xdad   : > { %5613 = vmatpush3.msra.mxu1 %v6481_v24 }
 0xdae   : > { %5614 = vmatprep.subr.mxu1 %v6315_v20 }
 0xdaf   : > { %5615 = vmatpush3.msra.mxu1 %v6491_v27 }
 0xdb0   : > { %5616 = vmatprep.subr.mxu1 %v6315_v20 }
 0xdb1   : > { %v1745_v43 = vpop.permute.xlu0 %1744  ;;  %5617 = vmatpush3.msra.mxu1 %v6500_v28 }
 0xdb2   : > { %5608 = vmatmul.mubr.msk.f32.vlgmr.msra.gmra.mxu0 %vm684_vm2, %v1745_v43  ;;  %5632 = vmatprep.subr.mxu1 %v6315_v20  ;;  %v6286_v43 = vld [vmem:[%s8456_s2 + $0x18] sm:$0xff] }
 0xdb3   : > { %5622 = vmatpush3.msra.mxu0 %v6510_v29  ;;  %5629 = vmatprep.mubr.msk.f32.mxu0 %vm6316_vm1, %v6315_v20 }
 0xdb4   : > { %5623 = vmatprep.subr.mxu0 %v6315_v20 }
 0xdb5   : > { %5624 = vmatpush3.msra.mxu0 %v6519_v30 }
 0xdb6   : > { %5625 = vmatprep.subr.mxu0 %v6315_v20 }
 0xdb7   : > { %5626 = vmatpush3.msra.mxu0 %v6528_v31 }
 0xdb8   : > { %5627 = vmatprep.subr.mxu0 %v6315_v20 }
 0xdb9   : > { %5628 = vmatpush3.msra.mxu0 %v6537_v32 }
 0xdba   : > { %5643 = vmatprep.subr.mxu0 %v6315_v20 }
 0xe6a   : > { %v1739_v44 = vpop.f32.mrf.mxu1 }
 0xe6b   : > { %v1740_v46 = vadd.f32 %v1739_v44, %v660_v23 }
 0xe6c   : > { %v5598_v47 = vpop.f32.mrf.mxu1 }
 0xe6d   : > { %5982 = vtanh.f32 %v1740_v46  ;;  %v5240_v19 = vmul.f32 -1.442695, %v1740_v46 }
 0xe72   : > { %v1814_v50 = vpop.f32.mrf.mxu0 }
 0xe73   : > { %v1815_v51 = vadd.f32 %v1814_v50, %v644_v49 }
 0xe74   : > { %v5609_v52 = vpop.f32.mrf.mxu0 }
 0xe75   : > { %5984 = vtanh.f32 %v1815_v51  ;;  %v5241_v41 = vmul.f32 -1.442695, %v1815_v51 }
 0xe76   : > { %5986 = vpow2.f32 %v5240_v19 }
 0xe77   : > { %5988 = vpow2.f32 %v5241_v41 }
 0xe7a   : > { %v5983_v53 = vpop.eup %5982 }
 0xe7b   : > { %1834 = vrot.lane.b32.xlu1 %v5983_v53, %s6317_s19 }
 0xe82   : > { %v5985_v38 = vpop.eup %5984 }
 0xe83   : > { %1845 = vrot.lane.b32.xlu0 %v5985_v38, %s6317_s19  ;;  %v5987_v22 = vpop.eup %5986 }
 0xe84   : > { %v1821_v54 = vadd.f32 1.0, %v5987_v22  ;;  %v5989_v55 = vpop.eup %5988 }
 0xe85   : > { %v1828_v56 = vadd.f32 1.0, %v5989_v55 }
 0xe86   : > { %5990 = vrcp.f32 %v1821_v54 }
 0xe87   : > { %5992 = vrcp.f32 %v1828_v56 }
 0xe93   : > { %v5991_v17 = vpop.eup %5990 }
 0xe94   : > { %v5993_v25 = vpop.eup %5992  ;;  %v1832_v60 = vmul.f32 %v5991_v17, %v6809_v2 }
 0xe95   : > { %v1843_v1 = vmul.f32 %v5993_v25, %v6813_v9 }
 0xeed   : > { %v1835_v57 = vpop.permute.xlu1 %1834 }
 0xeee   : > { %v1837_v21 = vmul.f32 %v5991_v17, %v1835_v57 }
 0xef0   : > { %1839 = vrot.lane.b32.xlu1 %v1837_v21, %s6318_s21 }
 0xef5   : > { %v1846_v58 = vpop.permute.xlu0 %1845 }
 0xef6   : > { %v1848_v59 = vmul.f32 %v5993_v25, %v1846_v58 }
 0xef8   : > { %1850 = vrot.lane.b32.xlu0 %v1848_v59, %s6318_s21 }
 0xf62   : > { %v1840_v62 = vpop.permute.xlu1 %1839 }
 0xf63   : > { %v6857_v63 = vadd.f32 %v1840_v62, %v1832_v60 }
 0xf65   : > { %5994 = vtanh.f32 %v6857_v63 }
 0xf6a   : > { %v1851_v5 = vpop.permute.xlu0 %1850 }
 0xf6b   : > { %v6861_v6 = vadd.f32 %v1851_v5, %v1843_v1 }
 0xf6d   : > { %5996 = vtanh.f32 %v6861_v6 }
 0xf72   : > { %v5995_v12 = vpop.eup %5994 }
 0xf73   : > { %1856 = vrot.lane.b32.xlu1 %v5995_v12, %s6317_s19  ;;  %v672_v12 = vadd.f32 %v6576_v40, %v6574_v39 }
 0xf7a   : > { %v5997_v61 = vpop.eup %5996 }
 0xf7b   : > { %1862 = vrot.lane.b32.xlu0 %v5997_v61, %s6317_s19 }
 0xfe5   : > { %v1857_v4 = vpop.permute.xlu1 %1856 }
 0xfe6   : > { %v1859_v2 = vmul.f32 %v5991_v17, %v1857_v4 }
 0xfe8   : > { %1867 = vrot.lane.b32.xlu1 %v1859_v2, %s6318_s21 }
 0xfed   : > { %v1863_v3 = vpop.permute.xlu0 %1862 }
 0xfee   : > { %v6867_v14 = vmul.f32 %v5993_v25, %v1863_v3  ;;  %v632_v3 = vadd.f32 %v6630_v18, %v6582_v48 }
 0xff0   : > { %1942 = vrot.lane.b32.xlu0 %v6867_v14, %s6318_s21 }
0x105a   : > { %v6871_v9 = vpop.permute.xlu1 %1867 }
0x105b   : > { %5619 = vmatmul.mubr.msk.f32.vlgmr.msra.gmra.mxu1 %vm684_vm2, %v6871_v9 }
0x105c   : > { %5633 = vmatpush3.msra.mxu1 %v6286_v43  ;;  %5640 = vmatprep.mubr.msk.f32.mxu1 %vm6316_vm1, %v6315_v20 }
0x105d   : > { %5634 = vmatprep.subr.mxu1 %v6315_v20 }
0x105e   : > { %5635 = vmatpush3.msra.mxu1 %v6481_v24  ;;  %v666_v24 = vadd.f32 %v6565_v36, %v6574_v39 }
0x105f   : > { %5636 = vmatprep.subr.mxu1 %v6315_v20 }
0x1060   : > { %5637 = vmatpush3.msra.mxu1 %v6491_v27 }
0x1061   : > { %5638 = vmatprep.subr.mxu1 %v6315_v20 }
0x1062   : > { %v1943_v23 = vpop.permute.xlu0 %1942  ;;  %5639 = vmatpush3.msra.mxu1 %v6500_v28 }
0x1063   : > { %5630 = vmatmul.mubr.msk.f32.vlgmr.msra.gmra.mxu0 %vm684_vm2, %v1943_v23 }
0x1064   : > { %5644 = vmatpush3.msra.mxu0 %v6510_v29  ;;  %5651 = vmatprep.mubr.msk.f32.mxu0 %vm6316_vm1, %v6315_v20 }
0x1065   : > { %5645 = vmatprep.subr.mxu0 %v6315_v20 }
0x1066   : > { %5646 = vmatpush3.msra.mxu0 %v6519_v30  ;;  %v638_v30 = vadd.f32 %v6692_v13, %v6582_v48 }
0x1067   : > { %5647 = vmatprep.subr.mxu0 %v6315_v20 }
0x1068   : > { %5648 = vmatpush3.msra.mxu0 %v6528_v31 }
0x1069   : > { %5649 = vmatprep.subr.mxu0 %v6315_v20 }
0x106a   : > { %5650 = vmatpush3.msra.mxu0 %v6537_v32 }
0x106b   : > { %5654 = vmatprep.subr.mxu0 %v6315_v20 }
0x111b   : > { %v1937_v27 = vpop.f32.mrf.mxu1 }
0x111c   : > { %v1938_v28 = vadd.f32 %v1937_v27, %v666_v24 }
0x111d   : > { %v5620_v29 = vpop.f32.mrf.mxu1 }
0x111e   : > { %5998 = vtanh.f32 %v1938_v28  ;;  %v5244_v49 = vmul.f32 -1.442695, %v1938_v28 }
0x1123   : > { %v2012_v44 = vpop.f32.mrf.mxu0 }
0x1124   : > { %v2013_v46 = vadd.f32 %v2012_v44, %v638_v30 }
0x1125   : > { %v5631_v47 = vpop.f32.mrf.mxu0 }
0x1126   : > { %6000 = vtanh.f32 %v2013_v46  ;;  %v5245_v36 = vmul.f32 -1.442695, %v2013_v46 }
0x1127   : > { %6002 = vpow2.f32 %v5244_v49 }
0x1128   : > { %6004 = vpow2.f32 %v5245_v36 }
0x112b   : > { %v5999_v31 = vpop.eup %5998 }
0x112c   : > { %2032 = vrot.lane.b32.xlu1 %v5999_v31, %s6317_s19 }
0x1133   : > { %v6001_v32 = vpop.eup %6000 }
0x1134   : > { %2043 = vrot.lane.b32.xlu0 %v6001_v32, %s6317_s19  ;;  %v6003_v50 = vpop.eup %6002 }
0x1135   : > { %v2019_v51 = vadd.f32 1.0, %v6003_v50  ;;  %v6005_v52 = vpop.eup %6004 }
0x1136   : > { %v2026_v53 = vadd.f32 1.0, %v6005_v52 }
0x1137   : > { %6006 = vrcp.f32 %v2019_v51 }
0x1138   : > { %6008 = vrcp.f32 %v2026_v53 }
0x1144   : > { %v6007_v13 = vpop.eup %6006 }
0x1145   : > { %v6009_v41 = vpop.eup %6008  ;;  %v2030_v55 = vmul.f32 %v6007_v13, %v6857_v63 }
0x1146   : > { %v2041_v57 = vmul.f32 %v6009_v41, %v6861_v6 }
0x119e   : > { %v2033_v38 = vpop.permute.xlu1 %2032 }
0x119f   : > { %v2035_v19 = vmul.f32 %v6007_v13, %v2033_v38 }
0x11a1   : > { %2037 = vrot.lane.b32.xlu1 %v2035_v19, %s6318_s21 }
0x11a6   : > { %v2044_v22 = vpop.permute.xlu0 %2043 }
0x11a7   : > { %v2046_v54 = vmul.f32 %v6009_v41, %v2044_v22  ;;  %v2320_v22 = vld [vmem:[%s8459_s5 + $0x70] sm:$0xff] }
0x11a9   : > { %2048 = vrot.lane.b32.xlu0 %v2046_v54, %s6318_s21  ;;  %v2319_v54 = vld [vmem:[%s8459_s5 + $0x68] sm:$0xff] }
0x1213   : > { %v2038_v56 = vpop.permute.xlu1 %2037 }
0x1214   : > { %v2040_v17 = vadd.f32 %v2038_v56, %v2030_v55  ;;  %v2316_v55 = vld [vmem:[%s8459_s5 + $0x50] sm:$0xff]  ;;  %v2315_v56 = vld [vmem:[%s8459_s5 + $0x48] sm:$0xff] }
0x1216   : > { %6010 = vtanh.f32 %v2040_v17 }
0x121b   : > { %v2049_v21 = vpop.permute.xlu0 %2048 }
0x121c   : > { %v2051_v25 = vadd.f32 %v2049_v21, %v2041_v57  ;;  %v2313_v57 = vld [vmem:[%s8459_s5 + $0x38] sm:$0xff]  ;;  %v2312_v21 = vld [vmem:[%s8459_s5 + $0x30] sm:$0xff] }
0x121e   : > { %6012 = vtanh.f32 %v2051_v25 }
0x1223   : > { %v6011_v58 = vpop.eup %6010 }
0x1224   : > { %2054 = vrot.lane.b32.xlu1 %v6011_v58, %s6317_s19  ;;  %v6978_v58 = vld [vmem:[%s8460_s6 + $0x18] sm:$0xff] }
0x122b   : > { %v6013_v59 = vpop.eup %6012 }
0x122c   : > { %2060 = vrot.lane.b32.xlu0 %v6013_v59, %s6317_s19  ;;  %v2310_v59 = vld [vmem:[%s8459_s5 + $0x20] sm:$0xff] }
0x1296   : > { %v2055_v60 = vpop.permute.xlu1 %2054 }
0x1297   : > { %v2057_v62 = vmul.f32 %v6007_v13, %v2055_v60  ;;  %v6987_v60 = vld [vmem:[%s8460_s6 + $0x10] sm:$0xff] }
0x1299   : > { %2065 = vrot.lane.b32.xlu1 %v2057_v62, %s6318_s21  ;;  %v2309_v62 = vld [vmem:[%s8459_s5 + $0x18] sm:$0xff] }
0x129e   : > { %v2061_v1 = vpop.permute.xlu0 %2060 }
0x129f   : > { %v2063_v63 = vmul.f32 %v6009_v41, %v2061_v1  ;;  %v2321_v41 = vld [vmem:[%s8459_s5 + $0x78] sm:$0xff]  ;;  %v2308_v1 = vld [vmem:[%s8459_s5 + $0x10] sm:$0xff] }
0x12a0   : > { %2375 = vmatprep.subr.mxu1 %v2321_v41 }
0x12a1   : > { %2140 = vrot.lane.b32.xlu0 %v2063_v63, %s6318_s21 }
0x130b   : > { %v6911_v5 = vpop.permute.xlu1 %2065 }
0x130c   : > { %5641 = vmatmul.mubr.msk.f32.vlgmr.msra.gmra.mxu1 %vm684_vm2, %v6911_v5 }
0x130d   : > { %2423 = vmatprep.mubr.f32.mxu1 %v6315_v20  ;;  %2376 = vmatpush1.msra.mxu1 %v2320_v22 }
0x130e   : > { %2377 = vmatprep.subr.mxu1 %v2319_v54 }
0x1313   : > { %v2141_v6 = vpop.permute.xlu0 %2140 }
0x1314   : > { %5652 = vmatmul.mubr.msk.f32.vlgmr.msra.gmra.mxu0 %vm684_vm2, %v2141_v6  ;;  %v2306_v6 = vld [vmem:[%s8459_s5] sm:$0xff] }
0x1315   : > { %5662 = vmatprep.mubr.msk.f32.mxu0 %vm6316_vm1, %v6315_v20  ;;  %5655 = vmatpush3.msra.mxu0 %v6978_v58 }
0x1316   : > { %5656 = vmatprep.subr.mxu0 %v6315_v20 }
0x1317   : > { %5657 = vmatpush3.msra.mxu0 %v6987_v60 }
0x1318   : > { %5658 = vmatprep.subr.mxu0 %v6315_v20 }
0x13cc   : > { %v2135_v61 = vpop.f32.mrf.mxu1 }
0x13cd   : > { %v2136_v4 = vadd.f32 %v2135_v61, %v672_v12  ;;  %v7007_v12 = vld [vmem:[%s8460_s6 + $0x8] sm:$0xff]  ;;  %v7014_v61 = vld [vmem:[%s8460_s6] sm:$0xff] }
0x13ce   : > { %v5642_v2 = vpop.f32.mrf.mxu1  ;;  %5659 = vmatpush3.msra.mxu0 %v7007_v12 }
0x13cf   : > { %6014 = vtanh.f32 %v2136_v4  ;;  %v5248_v29 = vmul.f32 -1.442695, %v2136_v4  ;;  %5660 = vmatprep.subr.mxu0 %v6315_v20 }
0x13d0   : > { %5661 = vmatpush3.msra.mxu0 %v7014_v61 }
0x13d1   : > { %5663 = vmatmul.mubr.f32.vlgmr.msra.gmra.mxu0 %v6315_v20  ;;  %5665 = vmatprep.subr.mxu0 %v6315_v20 }
0x13d2   : > { %5673 = vmatprep.mubr.msk.f32.mxu0 %vm6316_vm1, %v6315_v20 }
0x13d4   : > { %v2210_v43 = vpop.f32.mrf.mxu0 }
0x13d5   : > { %v2211_v23 = vadd.f32 %v2210_v43, %v632_v3 }
0x13d6   : > { %v5653_v24 = vpop.f32.mrf.mxu0 }
0x13d7   : > { %6016 = vtanh.f32 %v2211_v23  ;;  %v5249_v39 = vmul.f32 -1.442695, %v2211_v23  ;;  %v7033_v23 = vld [vmem:[%s8461_s7 + $0x18] sm:$0xff]  ;;  %v7042_v24 = vld [vmem:[%s8461_s7 + $0x10] sm:$0xff] }
0x13d8   : > { %6018 = vpow2.f32 %v5248_v29  ;;  %5666 = vmatpush3.msra.mxu0 %v7033_v23 }
0x13d9   : > { %6020 = vpow2.f32 %v5249_v39  ;;  %5667 = vmatprep.subr.mxu0 %v6315_v20 }
0x13da   : > { %5668 = vmatpush3.msra.mxu0 %v7042_v24 }
0x13db   : > { %5669 = vmatprep.subr.mxu0 %v6315_v20 }
0x13dc   : > { %v6015_v27 = vpop.eup %6014 }
0x13dd   : > { %2230 = vrot.lane.b32.xlu1 %v6015_v27, %s6317_s19 }
0x13e4   : > { %v6017_v28 = vpop.eup %6016 }
0x13e5   : > { %2241 = vrot.lane.b32.xlu0 %v6017_v28, %s6317_s19  ;;  %v6019_v40 = vpop.eup %6018 }
0x13e6   : > { %v2217_v30 = vadd.f32 1.0, %v6019_v40  ;;  %v6021_v44 = vpop.eup %6020 }
0x13e7   : > { %v2224_v46 = vadd.f32 1.0, %v6021_v44 }
0x13e8   : > { %6022 = vrcp.f32 %v2217_v30 }
0x13e9   : > { %6024 = vrcp.f32 %v2224_v46 }
0x13f5   : > { %v6925_v48 = vpop.eup %6022 }
0x13f6   : > { %v6929_v31 = vpop.eup %6024  ;;  %v2228_v36 = vmul.f32 %v6925_v48, %v2040_v17  ;;  %v2314_v17 = vld [vmem:[%s8459_s5 + $0x40] sm:$0xff] }
0x13f7   : > { %v2239_v52 = vmul.f32 %v6929_v31, %v2051_v25  ;;  %v2311_v25 = vld [vmem:[%s8459_s5 + $0x28] sm:$0xff] }
0x144f   : > { %v2231_v18 = vpop.permute.xlu1 %2230 }
0x1450   : > { %v2233_v47 = vmul.f32 %v6925_v48, %v2231_v18 }
0x1452   : > { %2235 = vrot.lane.b32.xlu1 %v2233_v47, %s6318_s21 }
0x1457   : > { %v2242_v32 = vpop.permute.xlu0 %2241 }
0x1458   : > { %v2244_v49 = vmul.f32 %v6929_v31, %v2242_v32 }
0x145a   : > { %2246 = vrot.lane.b32.xlu0 %v2244_v49, %s6318_s21 }
0x14c4   : > { %v2236_v50 = vpop.permute.xlu1 %2235 }
0x14c5   : > { %v2238_v51 = vadd.f32 %v2236_v50, %v2228_v36 }
0x14c7   : > { %6026 = vtanh.f32 %v2238_v51 }
0x14cc   : > { %v2247_v53 = vpop.permute.xlu0 %2246 }
0x14cd   : > { %v2249_v13 = vadd.f32 %v2247_v53, %v2239_v52 }
0x14cf   : > { %6028 = vtanh.f32 %v2249_v13 }
0x14d4   : > { %v6027_v38 = vpop.eup %6026 }
0x14d5   : > { %2252 = vrot.lane.b32.xlu1 %v6027_v38, %s6317_s19 }
0x14d9   : > { %2269 = vrot.lane.b32.xlu1 %v2063_v63, %s6317_s19  ;;  %v2307_v63 = vld [vmem:[%s8459_s5 + $0x8] sm:$0xff] }
0x14dc   : > { %v6029_v19 = vpop.eup %6028 }
0x14dd   : > { %2258 = vrot.lane.b32.xlu0 %v6029_v19, %s6317_s19  ;;  %2279 = vrot.lane.b32.xlu1 %v6819_v42, %s6317_s19  ;;  %v2318_v42 = vld [vmem:[%s8459_s5 + $0x60] sm:$0xff] }
0x14de   : > { %2378 = vmatpush1.msra.mxu1 %v2318_v42 }
0x14e1   : > { %2289 = vrot.lane.b32.xlu1 %v6723_v26, %s6317_s19  ;;  %v2317_v26 = vld [vmem:[%s8459_s5 + $0x58] sm:$0xff] }
0x14e2   : > { %2379 = vmatprep.subr.mxu1 %v2317_v26 }
0x14e3   : > { %2380 = vmatpush1.msra.mxu1 %v2316_v55 }
0x14e4   : > { %2381 = vmatprep.subr.mxu1 %v2315_v56 }
0x14e5   : > { %2382 = vmatpush1.msra.mxu1 %v2314_v17 }
0x14e6   : > { %2383 = vmatprep.subr.mxu1 %v2313_v57 }
0x14e7   : > { %2384 = vmatpush1.msra.mxu1 %v2312_v21 }
0x14e8   : > { %2385 = vmatprep.subr.mxu1 %v2311_v25 }
0x14e9   : > { %2386 = vmatpush1.msra.mxu1 %v2310_v59 }
0x14ea   : > { %2387 = vmatprep.subr.mxu1 %v2309_v62 }
0x14eb   : > { %2388 = vmatpush1.msra.mxu1 %v2308_v1 }
0x14ec   : > { %2389 = vmatprep.subr.mxu1 %v2307_v63 }
0x14ed   : > { %2390 = vmatpush1.msra.mxu1 %v2306_v6 }
0x14ee   : > { %5709 = vmatprep.subr.mxu1 %v6315_v20 }
0x1547   : > { %v2253_v4 = vpop.permute.xlu1 %2252 }
0x1548   : > { %v2255_v2 = vmul.f32 %v6925_v48, %v2253_v4 }
0x154a   : > { %2299 = vrot.lane.b32.xlu1 %v2255_v2, %s6318_s21 }
0x154b   : > { %v2270_v27 = vpop.permute.xlu1 %2269 }
0x154c   : > { %v2272_v28 = vsel %vm684_vm2, %v6667_v11, %v2270_v27 }
0x154f   : > { %v2259_v3 = vpop.permute.xlu0 %2258  ;;  %v2280_v39 = vpop.permute.xlu1 %2279 }
0x1550   : > { %v2261_v43 = vmul.f32 %v6929_v31, %v2259_v3  ;;  %v2282_v11 = vsel %vm684_vm2, %v6775_v7, %v2280_v39 }
0x1552   : > { %2264 = vrot.lane.b32.xlu0 %v2261_v43, %s6317_s19 }
0x1553   : > { %v2290_v30 = vpop.permute.xlu1 %2289 }
0x1554   : > { %v2292_v46 = vsel %vm684_vm2, %v6871_v9, %v2290_v30  ;;  %v2546_v9 = vpop.f32.mrf.mxu0 }
0x1556   : > { %2274 = vrot.lane.b32.xlu0 %v6867_v14, %s6317_s19  ;;  %v5664_v47 = vpop.f32.mrf.mxu0 }
0x155a   : > { %2284 = vrot.lane.b32.xlu0 %v6771_v37, %s6317_s19  ;;  %v7048_v37 = vld [vmem:[%s8461_s7 + $0x8] sm:$0xff] }
0x155b   : > { %5670 = vmatpush3.msra.mxu0 %v7048_v37 }
0x155c   : > { %5671 = vmatprep.subr.mxu0 %v6315_v20 }
0x155e   : > { %2294 = vrot.lane.b32.xlu0 %v6663_v10, %s6317_s19  ;;  %v7058_v10 = vld [vmem:[%s8461_s7] sm:$0xff] }
0x155f   : > { %5672 = vmatpush3.msra.mxu0 %v7058_v10 }
0x1560   : > { %5674 = vmatmul.mubr.f32.vlgmr.msra.gmra.mxu0 %v6315_v20  ;;  %5676 = vmatprep.subr.mxu0 %v6315_v20 }
0x1561   : > { %5677 = vmatpush3.msra.mxu0 %v6978_v58  ;;  %5684 = vmatprep.mubr.msk.f32.mxu0 %vm6316_vm1, %v6315_v20 }
0x1562   : > { %2302 = vrot.lane.b32.xlu0 %v6601_v15, %s6317_s19  ;;  %5678 = vmatprep.subr.mxu0 %v6315_v20 }
0x1563   : > { %5679 = vmatpush3.msra.mxu0 %v6987_v60 }
0x1564   : > { %5680 = vmatprep.subr.mxu0 %v6315_v20 }
0x1565   : > { %5681 = vmatpush3.msra.mxu0 %v7007_v12 }
0x1566   : > { %5682 = vmatprep.subr.mxu0 %v6315_v20 }
0x1567   : > { %5683 = vmatpush3.msra.mxu0 %v7014_v61 }
0x1568   : > { %5687 = vmatprep.subr.mxu0 %v6315_v20 }
0x15c4   : > { %v2265_v15 = vpop.permute.xlu0 %2264 }
0x15c5   : > { %v2267_v14 = vsel %vm684_vm2, %v6605_v16, %v2265_v15 }
0x15c6   : > { %5250 = vmatmul.mubr.msk.f32.vlgmr.msra.gmra.mxu1 %vm2334_vm3, %v2267_v14 }
0x15c7   : > { %2429 = vmatprep.mubr.f32.mxu1 %v6315_v20  ;;  %5710 = vmatpush3.msra.mxu1 %v7033_v23 }
0x15c8   : > { %5711 = vmatprep.subr.mxu1 %v6315_v20  ;;  %v2275_v29 = vpop.permute.xlu0 %2274 }
0x15c9   : > { %5712 = vmatpush3.msra.mxu1 %v7042_v24  ;;  %v2277_v16 = vsel %vm684_vm2, %v6727_v0, %v2275_v29 }
0x15ca   : > { %5251 = vmatmul.mubr.msk.f32.gmra.mxu1 %vm2334_vm3, %v2272_v28  ;;  %5713 = vmatprep.subr.mxu1 %v6315_v20 }
0x15cb   : > { %2435 = vmatprep.mubr.f32.mxu1 %v6315_v20  ;;  %5714 = vmatpush3.msra.mxu1 %v7048_v37 }
0x15cc   : > { %5715 = vmatprep.subr.mxu1 %v6315_v20  ;;  %v2285_v40 = vpop.permute.xlu0 %2284 }
0x15cd   : > { %5716 = vmatpush3.msra.mxu1 %v7058_v10  ;;  %v2287_v0 = vsel %vm684_vm2, %v6823_v8, %v2285_v40  ;;  %v2300_v8 = vpop.permute.xlu1 %2299 }
0x15ce   : > { %5252 = vmatmul.mubr.msk.f32.gmra.mxu1 %vm2334_vm3, %v2277_v16  ;;  %5731 = vmatprep.subr.mxu1 %v6315_v20 }
0x15cf   : > { %2441 = vmatprep.mubr.f32.mxu1 %v6315_v20 }
0x15d0   : > { %v2295_v44 = vpop.permute.xlu0 %2294 }
0x15d1   : > { %v2297_v7 = vsel %vm684_vm2, %v6911_v5, %v2295_v44  ;;  %v2322_v5 = vld [vmem:[%s8462_s8] sm:$0x3] }
0x15d2   : > { %5253 = vmatmul.mubr.msk.f32.gmra.mxu1 %vm2334_vm3, %v2282_v11  ;;  %v2327_v49 = vrot.slane %v2322_v5, %v530_v35  ;;  %v2331_v36 = vrot.slane %v2322_v5, %v534_v45 }
0x15d3   : > { %2447 = vmatprep.mubr.f32.mxu1 %v6315_v20 }
0x15d4   : > { %v2303_v48 = vpop.permute.xlu0 %2302 }
0x15d5   : > { %v2305_v18 = vsel %vm684_vm2, %v2300_v8, %v2303_v48 }
0x15d6   : > { %5254 = vmatmul.mubr.msk.f32.gmra.mxu1 %vm2334_vm3, %v2287_v0 }
0x15d7   : > { %2453 = vmatprep.mubr.f32.mxu1 %v6315_v20 }
0x15da   : > { %5255 = vmatmul.mubr.msk.f32.gmra.mxu1 %vm2334_vm3, %v2292_v46 }
0x15db   : > { %2459 = vmatprep.mubr.f32.mxu1 %v6315_v20 }
0x15de   : > { %5256 = vmatmul.mubr.msk.f32.gmra.mxu1 %vm2334_vm3, %v2297_v7 }
0x15df   : > { %2465 = vmatprep.mubr.f32.mxu1 %v6315_v20 }
0x15e2   : > { %5257 = vmatmul.mubr.msk.f32.gmra.mxu1 %vm2334_vm3, %v2305_v18 }
0x15e3   : > { %5717 = vmatprep.mubr.msk.f32.mxu1 %vm6316_vm1, %v6315_v20 }
0x1620   : > { %v2616_v31 = vpop.f32.mrf.mxu0 }
0x1622   : > { %v5675_v32 = vpop.f32.mrf.mxu0 }
0x1686   : > { %v2425_v50 = vpop.f32.mrf.mxu1 }
0x1687   : > { %v2426_v51 = vadd.f32 %v2425_v50, %v2327_v49 }
0x1688   : > { %v2427_v52 = vpop.f32.mrf.mxu1 }
0x1689   : > { %v7120_v53 = vadd.f32 %v2427_v52, %v2331_v36  ;;  %v2547_v13 = vadd.f32 %v2546_v9, %v2426_v51 }
0x168a   : > { %v2431_v38 = vpop.f32.mrf.mxu1 }
0x168b   : > { %6030 = vtanh.f32 %v2547_v13  ;;  %v7122_v19 = vadd.f32 %v2431_v38, %v2327_v49  ;;  %v5258_v11 = vmul.f32 -1.442695, %v2547_v13 }
0x168c   : > { %v2433_v41 = vpop.f32.mrf.mxu1 }
0x168d   : > { %v7124_v22 = vadd.f32 %v2433_v41, %v2331_v36 }
0x168e   : > { %v2437_v54 = vpop.f32.mrf.mxu1 }
0x168f   : > { %v7126_v42 = vadd.f32 %v2437_v54, %v2327_v49 }
0x1690   : > { %v2439_v35 = vpop.f32.mrf.mxu1 }
0x1691   : > { %v7128_v26 = vadd.f32 %v2439_v35, %v2331_v36 }
0x1692   : > { %v2443_v45 = vpop.f32.mrf.mxu1 }
0x1693   : > { %v7130_v55 = vadd.f32 %v2443_v45, %v2327_v49 }
0x1694   : > { %v2445_v56 = vpop.f32.mrf.mxu1 }
0x1695   : > { %v7132_v17 = vadd.f32 %v2445_v56, %v2331_v36 }
0x1696   : > { %v2449_v57 = vpop.f32.mrf.mxu1 }
0x1697   : > { %v7134_v21 = vadd.f32 %v2449_v57, %v2327_v49 }
0x1698   : > { %v6031_v25 = vpop.eup %6030  ;;  %v2451_v59 = vpop.f32.mrf.mxu1 }
0x1699   : > { %v7136_v62 = vadd.f32 %v2451_v59, %v2331_v36  ;;  %2636 = vrot.lane.b32.xlu1 %v6031_v25, %s6317_s19 }
0x169a   : > { %v2455_v1 = vpop.f32.mrf.mxu1 }
0x169b   : > { %v7139_v63 = vadd.f32 %v2455_v1, %v2327_v49 }
0x169c   : > { %v2457_v6 = vpop.f32.mrf.mxu1 }
0x169d   : > { %v7141_v4 = vadd.f32 %v2457_v6, %v2331_v36 }
0x169e   : > { %v2461_v2 = vpop.f32.mrf.mxu1 }
0x169f   : > { %v7143_v3 = vadd.f32 %v2461_v2, %v2327_v49 }
0x16a0   : > { %v2463_v43 = vpop.f32.mrf.mxu1 }
0x16a1   : > { %v7145_v15 = vadd.f32 %v2463_v43, %v2331_v36 }
0x16a2   : > { %v2467_v14 = vpop.f32.mrf.mxu1 }
0x16a3   : > { %v7147_v27 = vadd.f32 %v2467_v14, %v2327_v49 }
0x16a4   : > { %v2469_v28 = vpop.f32.mrf.mxu1 }
0x16a5   : > { %v2470_v29 = vadd.f32 %v2469_v28, %v2331_v36 }
0x16a7   : > { %v2617_v16 = vadd.f32 %v2616_v31, %v2470_v29 }
0x16a9   : > { %6032 = vtanh.f32 %v2617_v16  ;;  %v5259_v30 = vmul.f32 -1.442695, %v2617_v16 }
0x16aa   : > { %6034 = vpow2.f32 %v5258_v11 }
0x16b6   : > { %v6033_v39 = vpop.eup %6032 }
0x16b7   : > { %2647 = vrot.lane.b32.xlu0 %v6033_v39, %s6317_s19  ;;  %v6035_v40 = vpop.eup %6034 }
0x16b8   : > { %v2623_v0 = vadd.f32 1.0, %v6035_v40 }
0x16ba   : > { %6036 = vrcp.f32 %v2623_v0 }
0x16bb   : > { %6038 = vpow2.f32 %v5259_v30 }
0x16c7   : > { %v6037_v44 = vpop.eup %6036 }
0x16c8   : > { %v6039_v48 = vpop.eup %6038  ;;  %v2634_v31 = vmul.f32 0.0, %v6037_v44 }
0x16c9   : > { %v2630_v8 = vadd.f32 1.0, %v6039_v48 }
0x16cb   : > { %6040 = vrcp.f32 %v2630_v8 }
0x16d8   : > { %v6041_v18 = vpop.eup %6040 }
0x16d9   : > { %v2645_v36 = vmul.f32 0.0, %v6041_v18 }
0x170b   : > { %v2637_v46 = vpop.permute.xlu1 %2636 }
0x170c   : > { %v2639_v7 = vmul.f32 %v6037_v44, %v2637_v46 }
0x170e   : > { %2641 = vrot.lane.b32.xlu1 %v2639_v7, %s6318_s21 }
0x1729   : > { %v2648_v9 = vpop.permute.xlu0 %2647 }
0x172a   : > { %v2650_v47 = vmul.f32 %v6041_v18, %v2648_v9 }
0x172c   : > { %2652 = vrot.lane.b32.xlu0 %v2650_v47, %s6318_s21 }
0x1780   : > { %v2642_v32 = vpop.permute.xlu1 %2641 }
0x1781   : > { %v7152_v5 = vadd.f32 %v2642_v32, %v2634_v31 }
0x1783   : > { %6042 = vtanh.f32 %v7152_v5 }
0x1790   : > { %v6043_v49 = vpop.eup %6042 }
0x1791   : > { %2658 = vrot.lane.b32.xlu1 %v6043_v49, %s6317_s19 }
0x179e   : > { %v2653_v50 = vpop.permute.xlu0 %2652 }
0x179f   : > { %v7156_v51 = vadd.f32 %v2653_v50, %v2645_v36 }
0x17a1   : > { %6044 = vtanh.f32 %v7156_v51 }
0x17ae   : > { %v6045_v52 = vpop.eup %6044 }
0x17af   : > { %2664 = vrot.lane.b32.xlu0 %v6045_v52, %s6317_s19 }
0x1803   : > { %v2659_v13 = vpop.permute.xlu1 %2658 }
0x1804   : > { %v2661_v38 = vmul.f32 %v6037_v44, %v2659_v13 }
0x1806   : > { %2669 = vrot.lane.b32.xlu1 %v2661_v38, %s6318_s21 }
0x1821   : > { %v2665_v41 = vpop.permute.xlu0 %2664 }
0x1822   : > { %v7161_v54 = vmul.f32 %v6041_v18, %v2665_v41 }
0x1824   : > { %2744 = vrot.lane.b32.xlu0 %v7161_v54, %s6318_s21 }
0x1878   : > { %v7165_v35 = vpop.permute.xlu1 %2669 }
0x1879   : > { %5685 = vmatmul.mubr.msk.f32.vlgmr.msra.gmra.mxu0 %vm684_vm2, %v7165_v35 }
0x187a   : > { %5688 = vmatpush3.msra.mxu0 %v7033_v23  ;;  %5695 = vmatprep.mubr.msk.f32.mxu0 %vm6316_vm1, %v6315_v20 }
0x187b   : > { %5689 = vmatprep.subr.mxu0 %v6315_v20 }
0x187c   : > { %5690 = vmatpush3.msra.mxu0 %v7042_v24 }
0x187d   : > { %5691 = vmatprep.subr.mxu0 %v6315_v20 }
0x187e   : > { %5692 = vmatpush3.msra.mxu0 %v7048_v37 }
0x187f   : > { %5693 = vmatprep.subr.mxu0 %v6315_v20 }
0x1880   : > { %5694 = vmatpush3.msra.mxu0 %v7058_v10 }
0x1881   : > { %5698 = vmatprep.subr.mxu0 %v6315_v20 }
0x1896   : > { %v2745_v45 = vpop.permute.xlu0 %2744 }
0x1897   : > { %5696 = vmatmul.mubr.msk.f32.vlgmr.msra.gmra.mxu0 %vm684_vm2, %v2745_v45 }
0x1898   : > { %5699 = vmatpush3.msra.mxu0 %v6978_v58  ;;  %5706 = vmatprep.mubr.msk.f32.mxu0 %vm6316_vm1, %v6315_v20 }
0x1899   : > { %5700 = vmatprep.subr.mxu0 %v6315_v20 }
0x189a   : > { %5701 = vmatpush3.msra.mxu0 %v6987_v60 }
0x189b   : > { %5702 = vmatprep.subr.mxu0 %v6315_v20 }
0x189c   : > { %5703 = vmatpush3.msra.mxu0 %v7007_v12 }
0x189d   : > { %5704 = vmatprep.subr.mxu0 %v6315_v20 }
0x189e   : > { %5705 = vmatpush3.msra.mxu0 %v7014_v61 }
0x189f   : > { %5720 = vmatprep.subr.mxu0 %v6315_v20 }
0x1939   : > { %v2739_v56 = vpop.f32.mrf.mxu0 }
0x193a   : > { %v2740_v57 = vadd.f32 %v2739_v56, %v7122_v19 }
0x193b   : > { %v5686_v25 = vpop.f32.mrf.mxu0 }
0x193c   : > { %6046 = vtanh.f32 %v2740_v57  ;;  %v5262_v14 = vmul.f32 -1.442695, %v2740_v57 }
0x1949   : > { %v6047_v59 = vpop.eup %6046 }
0x194a   : > { %2834 = vrot.lane.b32.xlu0 %v6047_v59, %s6317_s19 }
0x1957   : > { %v2814_v1 = vpop.f32.mrf.mxu0 }
0x1958   : > { %v2815_v6 = vadd.f32 %v2814_v1, %v7145_v15 }
0x1959   : > { %v5697_v2 = vpop.f32.mrf.mxu0 }
0x195a   : > { %6048 = vtanh.f32 %v2815_v6  ;;  %v5263_v16 = vmul.f32 -1.442695, %v2815_v6 }
0x195b   : > { %6050 = vpow2.f32 %v5262_v14 }
0x1967   : > { %v6049_v43 = vpop.eup %6048 }
0x1968   : > { %2845 = vrot.lane.b32.xlu1 %v6049_v43, %s6317_s19  ;;  %v6051_v28 = vpop.eup %6050 }
0x1969   : > { %v2821_v29 = vadd.f32 1.0, %v6051_v28 }
0x196b   : > { %6052 = vrcp.f32 %v2821_v29 }
0x196c   : > { %6054 = vpow2.f32 %v5263_v16 }
0x1978   : > { %v6053_v19 = vpop.eup %6052 }
0x1979   : > { %v6055_v40 = vpop.eup %6054  ;;  %v2832_v46 = vmul.f32 %v6053_v19, %v7152_v5 }
0x197a   : > { %v2828_v0 = vadd.f32 1.0, %v6055_v40 }
0x197c   : > { %6056 = vrcp.f32 %v2828_v0 }
0x1989   : > { %v6057_v15 = vpop.eup %6056 }
0x198a   : > { %v2843_v18 = vmul.f32 %v6057_v15, %v7156_v51 }
0x19bc   : > { %v2835_v39 = vpop.permute.xlu0 %2834 }
0x19bd   : > { %v2837_v11 = vmul.f32 %v6053_v19, %v2835_v39 }
0x19bf   : > { %2839 = vrot.lane.b32.xlu0 %v2837_v11, %s6318_s21 }
0x19da   : > { %v2846_v30 = vpop.permute.xlu1 %2845 }
0x19db   : > { %v2848_v44 = vmul.f32 %v6057_v15, %v2846_v30 }
0x19dd   : > { %2850 = vrot.lane.b32.xlu1 %v2848_v44, %s6318_s21 }
0x1a31   : > { %v2840_v7 = vpop.permute.xlu0 %2839 }
0x1a32   : > { %v7197_v48 = vadd.f32 %v2840_v7, %v2832_v46 }
0x1a34   : > { %6058 = vtanh.f32 %v7197_v48 }
0x1a41   : > { %v6059_v8 = vpop.eup %6058 }
0x1a42   : > { %2856 = vrot.lane.b32.xlu0 %v6059_v8, %s6317_s19 }
0x1a4f   : > { %v2851_v9 = vpop.permute.xlu1 %2850 }
0x1a50   : > { %v7202_v47 = vadd.f32 %v2851_v9, %v2843_v18 }
0x1a52   : > { %6060 = vtanh.f32 %v7202_v47 }
0x1a5f   : > { %v6061_v31 = vpop.eup %6060 }
0x1a60   : > { %2862 = vrot.lane.b32.xlu1 %v6061_v31, %s6317_s19 }
0x1ab4   : > { %v2857_v32 = vpop.permute.xlu0 %2856 }
0x1ab5   : > { %v2859_v5 = vmul.f32 %v6053_v19, %v2857_v32 }
0x1ab7   : > { %2867 = vrot.lane.b32.xlu0 %v2859_v5, %s6318_s21 }
0x1ad2   : > { %v2863_v49 = vpop.permute.xlu1 %2862 }
0x1ad3   : > { %v7207_v36 = vmul.f32 %v6057_v15, %v2863_v49 }
0x1ad5   : > { %2942 = vrot.lane.b32.xlu1 %v7207_v36, %s6318_s21 }
0x1b29   : > { %v7211_v50 = vpop.permute.xlu0 %2867 }
0x1b2a   : > { %5707 = vmatmul.mubr.msk.f32.vlgmr.msra.gmra.mxu0 %vm684_vm2, %v7211_v50 }
0x1b2b   : > { %5721 = vmatpush3.msra.mxu0 %v6978_v58  ;;  %5728 = vmatprep.mubr.msk.f32.mxu0 %vm6316_vm1, %v6315_v20 }
0x1b2c   : > { %5722 = vmatprep.subr.mxu0 %v6315_v20 }
0x1b2d   : > { %5723 = vmatpush3.msra.mxu0 %v6987_v60 }
0x1b2e   : > { %5724 = vmatprep.subr.mxu0 %v6315_v20 }
0x1b2f   : > { %5725 = vmatpush3.msra.mxu0 %v7007_v12 }
0x1b30   : > { %5726 = vmatprep.subr.mxu0 %v6315_v20 }
0x1b31   : > { %5727 = vmatpush3.msra.mxu0 %v7014_v61 }
0x1b32   : > { %5742 = vmatprep.subr.mxu0 %v6315_v20 }
0x1b47   : > { %v2943_v51 = vpop.permute.xlu1 %2942 }
0x1b48   : > { %5718 = vmatmul.mubr.msk.f32.vlgmr.msra.gmra.mxu1 %vm684_vm2, %v2943_v51 }
0x1b49   : > { %5732 = vmatpush3.msra.mxu1 %v7033_v23  ;;  %5739 = vmatprep.mubr.msk.f32.mxu1 %vm6316_vm1, %v6315_v20 }
0x1b4a   : > { %5733 = vmatprep.subr.mxu1 %v6315_v20 }
0x1b4b   : > { %5734 = vmatpush3.msra.mxu1 %v7042_v24 }
0x1b4c   : > { %5735 = vmatprep.subr.mxu1 %v6315_v20 }
0x1b4d   : > { %5736 = vmatpush3.msra.mxu1 %v7048_v37 }
0x1b4e   : > { %5737 = vmatprep.subr.mxu1 %v6315_v20 }
0x1b4f   : > { %5738 = vmatpush3.msra.mxu1 %v7058_v10 }
0x1b50   : > { %5753 = vmatprep.subr.mxu1 %v6315_v20 }
0x1bea   : > { %v2937_v52 = vpop.f32.mrf.mxu0 }
0x1beb   : > { %v2938_v13 = vadd.f32 %v2937_v52, %v7126_v42 }
0x1bec   : > { %v5708_v38 = vpop.f32.mrf.mxu0 }
0x1bed   : > { %6062 = vtanh.f32 %v2938_v13  ;;  %v5266_v59 = vmul.f32 -1.442695, %v2938_v13 }
0x1bfa   : > { %v6063_v41 = vpop.eup %6062 }
0x1bfb   : > { %3032 = vrot.lane.b32.xlu0 %v6063_v41, %s6317_s19 }
0x1c08   : > { %v3012_v45 = vpop.f32.mrf.mxu1 }
0x1c09   : > { %v3013_v56 = vadd.f32 %v3012_v45, %v7141_v4 }
0x1c0a   : > { %v5719_v57 = vpop.f32.mrf.mxu1 }
0x1c0b   : > { %6064 = vtanh.f32 %v3013_v56  ;;  %v5267_v2 = vmul.f32 -1.442695, %v3013_v56 }
0x1c0c   : > { %6066 = vpow2.f32 %v5266_v59 }
0x1c18   : > { %v6065_v25 = vpop.eup %6064 }
0x1c19   : > { %3043 = vrot.lane.b32.xlu1 %v6065_v25, %s6317_s19  ;;  %v6067_v1 = vpop.eup %6066 }
0x1c1a   : > { %v3019_v6 = vadd.f32 1.0, %v6067_v1 }
0x1c1c   : > { %6068 = vrcp.f32 %v3019_v6 }
0x1c1d   : > { %6070 = vpow2.f32 %v5267_v2 }
0x1c29   : > { %v6069_v42 = vpop.eup %6068 }
0x1c2a   : > { %v6071_v28 = vpop.eup %6070  ;;  %v3030_v39 = vmul.f32 %v6069_v42, %v7197_v48 }
0x1c2b   : > { %v3026_v29 = vadd.f32 1.0, %v6071_v28 }
0x1c2d   : > { %6072 = vrcp.f32 %v3026_v29 }
0x1c3a   : > { %v6073_v4 = vpop.eup %6072 }
0x1c3b   : > { %v3041_v15 = vmul.f32 %v6073_v4, %v7202_v47 }
0x1c6d   : > { %v3033_v43 = vpop.permute.xlu0 %3032 }
0x1c6e   : > { %v3035_v14 = vmul.f32 %v6069_v42, %v3033_v43 }
0x1c70   : > { %3037 = vrot.lane.b32.xlu0 %v3035_v14, %s6318_s21 }
0x1c8b   : > { %v3044_v16 = vpop.permute.xlu1 %3043 }
0x1c8c   : > { %v3046_v19 = vmul.f32 %v6073_v4, %v3044_v16 }
0x1c8e   : > { %3048 = vrot.lane.b32.xlu1 %v3046_v19, %s6318_s21 }
0x1ce2   : > { %v3038_v11 = vpop.permute.xlu0 %3037 }
0x1ce3   : > { %v7243_v40 = vadd.f32 %v3038_v11, %v3030_v39 }
0x1ce5   : > { %6074 = vtanh.f32 %v7243_v40 }
0x1cf2   : > { %v6075_v0 = vpop.eup %6074 }
0x1cf3   : > { %3054 = vrot.lane.b32.xlu0 %v6075_v0, %s6317_s19 }
0x1d00   : > { %v3049_v30 = vpop.permute.xlu1 %3048 }
0x1d01   : > { %v7248_v44 = vadd.f32 %v3049_v30, %v3041_v15 }
0x1d03   : > { %6076 = vtanh.f32 %v7248_v44 }
0x1d10   : > { %v6077_v46 = vpop.eup %6076 }
0x1d11   : > { %3060 = vrot.lane.b32.xlu1 %v6077_v46, %s6317_s19 }
0x1d65   : > { %v3055_v7 = vpop.permute.xlu0 %3054 }
0x1d66   : > { %v3057_v48 = vmul.f32 %v6069_v42, %v3055_v7 }
0x1d68   : > { %3065 = vrot.lane.b32.xlu0 %v3057_v48, %s6318_s21 }
0x1d83   : > { %v3061_v8 = vpop.permute.xlu1 %3060 }
0x1d84   : > { %v7253_v18 = vmul.f32 %v6073_v4, %v3061_v8 }
0x1d86   : > { %3140 = vrot.lane.b32.xlu1 %v7253_v18, %s6318_s21 }
0x1dda   : > { %v7257_v9 = vpop.permute.xlu0 %3065 }
0x1ddb   : > { %5729 = vmatmul.mubr.msk.f32.vlgmr.msra.gmra.mxu0 %vm684_vm2, %v7257_v9 }
0x1ddc   : > { %5743 = vmatpush3.msra.mxu0 %v6978_v58  ;;  %5750 = vmatprep.mubr.msk.f32.mxu0 %vm6316_vm1, %v6315_v20 }
0x1ddd   : > { %5744 = vmatprep.subr.mxu0 %v6315_v20 }
0x1dde   : > { %5745 = vmatpush3.msra.mxu0 %v6987_v60 }
0x1ddf   : > { %5746 = vmatprep.subr.mxu0 %v6315_v20 }
0x1de0   : > { %5747 = vmatpush3.msra.mxu0 %v7007_v12 }
0x1de1   : > { %5748 = vmatprep.subr.mxu0 %v6315_v20 }
0x1de2   : > { %5749 = vmatpush3.msra.mxu0 %v7014_v61 }
0x1de3   : > { %5764 = vmatprep.subr.mxu0 %v6315_v20 }
0x1df8   : > { %v3141_v47 = vpop.permute.xlu1 %3140 }
0x1df9   : > { %5740 = vmatmul.mubr.msk.f32.vlgmr.msra.gmra.mxu1 %vm684_vm2, %v3141_v47 }
0x1dfa   : > { %5754 = vmatpush3.msra.mxu1 %v7033_v23  ;;  %5761 = vmatprep.mubr.msk.f32.mxu1 %vm6316_vm1, %v6315_v20 }
0x1dfb   : > { %5755 = vmatprep.subr.mxu1 %v6315_v20 }
0x1dfc   : > { %5756 = vmatpush3.msra.mxu1 %v7042_v24 }
0x1dfd   : > { %5757 = vmatprep.subr.mxu1 %v6315_v20 }
0x1dfe   : > { %5758 = vmatpush3.msra.mxu1 %v7048_v37 }
0x1dff   : > { %5759 = vmatprep.subr.mxu1 %v6315_v20 }
0x1e00   : > { %5760 = vmatpush3.msra.mxu1 %v7058_v10 }
0x1e01   : > { %5775 = vmatprep.subr.mxu1 %v6315_v20 }
0x1e9b   : > { %v3135_v31 = vpop.f32.mrf.mxu0 }
0x1e9c   : > { %v3136_v32 = vadd.f32 %v3135_v31, %v7130_v55 }
0x1e9d   : > { %v5730_v5 = vpop.f32.mrf.mxu0 }
0x1e9e   : > { %6078 = vtanh.f32 %v3136_v32  ;;  %v5270_v41 = vmul.f32 -1.442695, %v3136_v32 }
0x1eab   : > { %v6079_v49 = vpop.eup %6078 }
0x1eac   : > { %3230 = vrot.lane.b32.xlu0 %v6079_v49, %s6317_s19 }
0x1eb9   : > { %v3210_v51 = vpop.f32.mrf.mxu1 }
0x1eba   : > { %v3211_v52 = vadd.f32 %v3210_v51, %v7136_v62 }
0x1ebb   : > { %v5741_v13 = vpop.f32.mrf.mxu1 }
0x1ebc   : > { %6080 = vtanh.f32 %v3211_v52  ;;  %v5271_v57 = vmul.f32 -1.442695, %v3211_v52 }
0x1ebd   : > { %6082 = vpow2.f32 %v5270_v41 }
0x1ec9   : > { %v6081_v38 = vpop.eup %6080 }
0x1eca   : > { %3241 = vrot.lane.b32.xlu1 %v6081_v38, %s6317_s19  ;;  %v6083_v45 = vpop.eup %6082 }
0x1ecb   : > { %v3217_v56 = vadd.f32 1.0, %v6083_v45 }
0x1ecd   : > { %6084 = vrcp.f32 %v3217_v56 }
0x1ece   : > { %6086 = vpow2.f32 %v5271_v57 }
0x1eda   : > { %v6085_v55 = vpop.eup %6084 }
0x1edb   : > { %v6087_v1 = vpop.eup %6086  ;;  %v3228_v43 = vmul.f32 %v6085_v55, %v7243_v40 }
0x1edc   : > { %v3224_v6 = vadd.f32 1.0, %v6087_v1 }
0x1ede   : > { %6088 = vrcp.f32 %v3224_v6 }
0x1eeb   : > { %v6089_v62 = vpop.eup %6088 }
0x1eec   : > { %v3239_v4 = vmul.f32 %v6089_v62, %v7248_v44 }
0x1f1e   : > { %v3231_v25 = vpop.permute.xlu0 %3230 }
0x1f1f   : > { %v3233_v59 = vmul.f32 %v6085_v55, %v3231_v25 }
0x1f21   : > { %3235 = vrot.lane.b32.xlu0 %v3233_v59, %s6318_s21 }
0x1f3c   : > { %v3242_v2 = vpop.permute.xlu1 %3241 }
0x1f3d   : > { %v3244_v42 = vmul.f32 %v6089_v62, %v3242_v2 }
0x1f3f   : > { %3246 = vrot.lane.b32.xlu1 %v3244_v42, %s6318_s21 }
0x1f93   : > { %v3236_v14 = vpop.permute.xlu0 %3235 }
0x1f94   : > { %v7289_v28 = vadd.f32 %v3236_v14, %v3228_v43 }
0x1f96   : > { %6090 = vtanh.f32 %v7289_v28 }
0x1fa3   : > { %v6091_v29 = vpop.eup %6090 }
0x1fa4   : > { %3252 = vrot.lane.b32.xlu0 %v6091_v29, %s6317_s19 }
0x1fb1   : > { %v3247_v16 = vpop.permute.xlu1 %3246 }
0x1fb2   : > { %v7294_v19 = vadd.f32 %v3247_v16, %v3239_v4 }
0x1fb4   : > { %6092 = vtanh.f32 %v7294_v19 }
0x1fc1   : > { %v6093_v39 = vpop.eup %6092 }
0x1fc2   : > { %3258 = vrot.lane.b32.xlu1 %v6093_v39, %s6317_s19 }
0x2016   : > { %v3253_v11 = vpop.permute.xlu0 %3252 }
0x2017   : > { %v3255_v40 = vmul.f32 %v6085_v55, %v3253_v11 }
0x2019   : > { %3263 = vrot.lane.b32.xlu0 %v3255_v40, %s6318_s21 }
0x2034   : > { %v3259_v0 = vpop.permute.xlu1 %3258 }
0x2035   : > { %v7299_v15 = vmul.f32 %v6089_v62, %v3259_v0 }
0x2037   : > { %3338 = vrot.lane.b32.xlu1 %v7299_v15, %s6318_s21 }
0x208b   : > { %v7303_v30 = vpop.permute.xlu0 %3263 }
0x208c   : > { %5751 = vmatmul.mubr.msk.f32.vlgmr.msra.gmra.mxu0 %vm684_vm2, %v7303_v30 }
0x208d   : > { %5765 = vmatpush3.msra.mxu0 %v6978_v58  ;;  %5772 = vmatprep.mubr.msk.f32.mxu0 %vm6316_vm1, %v6315_v20 }
0x208e   : > { %5766 = vmatprep.subr.mxu0 %v6315_v20 }
0x208f   : > { %5767 = vmatpush3.msra.mxu0 %v6987_v60 }
0x2090   : > { %5768 = vmatprep.subr.mxu0 %v6315_v20 }
0x2091   : > { %5769 = vmatpush3.msra.mxu0 %v7007_v12 }
0x2092   : > { %5770 = vmatprep.subr.mxu0 %v6315_v20 }
0x2093   : > { %5771 = vmatpush3.msra.mxu0 %v7014_v61 }
0x2094   : > { %5786 = vmatprep.subr.mxu0 %v6315_v20 }
0x20a9   : > { %v3339_v44 = vpop.permute.xlu1 %3338 }
0x20aa   : > { %5762 = vmatmul.mubr.msk.f32.vlgmr.msra.gmra.mxu1 %vm684_vm2, %v3339_v44 }
0x20ab   : > { %5776 = vmatpush3.msra.mxu1 %v7033_v23  ;;  %5783 = vmatprep.mubr.msk.f32.mxu1 %vm6316_vm1, %v6315_v20 }
0x20ac   : > { %5777 = vmatprep.subr.mxu1 %v6315_v20 }
0x20ad   : > { %5778 = vmatpush3.msra.mxu1 %v7042_v24 }
0x20ae   : > { %5779 = vmatprep.subr.mxu1 %v6315_v20 }
0x20af   : > { %5780 = vmatpush3.msra.mxu1 %v7048_v37 }
0x20b0   : > { %5781 = vmatprep.subr.mxu1 %v6315_v20 }
0x20b1   : > { %5782 = vmatpush3.msra.mxu1 %v7058_v10 }
0x20b2   : > { %5797 = vmatprep.subr.mxu1 %v6315_v20 }
0x214c   : > { %v3333_v46 = vpop.f32.mrf.mxu0 }
0x214d   : > { %v3334_v7 = vadd.f32 %v3333_v46, %v7134_v21 }
0x214e   : > { %v5752_v48 = vpop.f32.mrf.mxu0 }
0x214f   : > { %6094 = vtanh.f32 %v3334_v7  ;;  %v5274_v49 = vmul.f32 -1.442695, %v3334_v7 }
0x215c   : > { %v6095_v8 = vpop.eup %6094 }
0x215d   : > { %3428 = vrot.lane.b32.xlu0 %v6095_v8, %s6317_s19 }
0x216a   : > { %v3408_v47 = vpop.f32.mrf.mxu1 }
0x216b   : > { %v3409_v31 = vadd.f32 %v3408_v47, %v7132_v17 }
0x216c   : > { %v5763_v32 = vpop.f32.mrf.mxu1 }
0x216d   : > { %6096 = vtanh.f32 %v3409_v31  ;;  %v5275_v13 = vmul.f32 -1.442695, %v3409_v31 }
0x216e   : > { %6098 = vpow2.f32 %v5274_v49 }
0x217a   : > { %v6097_v5 = vpop.eup %6096 }
0x217b   : > { %3439 = vrot.lane.b32.xlu1 %v6097_v5, %s6317_s19  ;;  %v6099_v51 = vpop.eup %6098 }
0x217c   : > { %v3415_v52 = vadd.f32 1.0, %v6099_v51 }
0x217e   : > { %6100 = vrcp.f32 %v3415_v52 }
0x217f   : > { %6102 = vpow2.f32 %v5275_v13 }
0x218b   : > { %v6101_v21 = vpop.eup %6100 }
0x218c   : > { %v6103_v45 = vpop.eup %6102  ;;  %v3426_v25 = vmul.f32 %v6101_v21, %v7289_v28 }
0x218d   : > { %v3422_v56 = vadd.f32 1.0, %v6103_v45 }
0x218f   : > { %6104 = vrcp.f32 %v3422_v56 }
0x219c   : > { %v6105_v17 = vpop.eup %6104 }
0x219d   : > { %v3437_v62 = vmul.f32 %v6105_v17, %v7294_v19 }
0x21cf   : > { %v3429_v38 = vpop.permute.xlu0 %3428 }
0x21d0   : > { %v3431_v41 = vmul.f32 %v6101_v21, %v3429_v38 }
0x21d2   : > { %3433 = vrot.lane.b32.xlu0 %v3431_v41, %s6318_s21 }
0x21ed   : > { %v3440_v57 = vpop.permute.xlu1 %3439 }
0x21ee   : > { %v3442_v55 = vmul.f32 %v6105_v17, %v3440_v57 }
0x21f0   : > { %3444 = vrot.lane.b32.xlu1 %v3442_v55, %s6318_s21 }
0x2244   : > { %v3434_v59 = vpop.permute.xlu0 %3433 }
0x2245   : > { %v7335_v1 = vadd.f32 %v3434_v59, %v3426_v25 }
0x2247   : > { %6106 = vtanh.f32 %v7335_v1 }
0x2254   : > { %v6107_v6 = vpop.eup %6106 }
0x2255   : > { %3450 = vrot.lane.b32.xlu0 %v6107_v6, %s6317_s19  ;;  %v6288_v6 = vld [vmem:[%s8460_s6 + $0x10] sm:$0xff] }
0x2262   : > { %v3445_v2 = vpop.permute.xlu1 %3444 }
0x2263   : > { %v7340_v42 = vadd.f32 %v3445_v2, %v3437_v62  ;;  %v6289_v62 = vld [vmem:[%s8460_s6 + $0x8] sm:$0xff]  ;;  %v6290_v2 = vld [vmem:[%s8460_s6] sm:$0xff] }
0x2265   : > { %6108 = vtanh.f32 %v7340_v42 }
0x2272   : > { %v6109_v43 = vpop.eup %6108 }
0x2273   : > { %3456 = vrot.lane.b32.xlu1 %v6109_v43, %s6317_s19 }
0x22c7   : > { %v3451_v14 = vpop.permute.xlu0 %3450 }
0x22c8   : > { %v3453_v28 = vmul.f32 %v6101_v21, %v3451_v14 }
0x22ca   : > { %3461 = vrot.lane.b32.xlu0 %v3453_v28, %s6318_s21 }
0x22e5   : > { %v3457_v29 = vpop.permute.xlu1 %3456 }
0x22e6   : > { %v7345_v4 = vmul.f32 %v6105_v17, %v3457_v29 }
0x22e8   : > { %3536 = vrot.lane.b32.xlu1 %v7345_v4, %s6318_s21 }
0x233c   : > { %v7349_v16 = vpop.permute.xlu0 %3461 }
0x233d   : > { %5773 = vmatmul.mubr.msk.f32.vlgmr.msra.gmra.mxu0 %vm684_vm2, %v7349_v16 }
0x233e   : > { %5787 = vmatpush3.msra.mxu0 %v6978_v58  ;;  %5794 = vmatprep.mubr.msk.f32.mxu0 %vm6316_vm1, %v6315_v20 }
0x233f   : > { %5788 = vmatprep.subr.mxu0 %v6315_v20 }
0x2340   : > { %5789 = vmatpush3.msra.mxu0 %v6987_v60 }
0x2341   : > { %5790 = vmatprep.subr.mxu0 %v6315_v20 }
0x2342   : > { %5791 = vmatpush3.msra.mxu0 %v7007_v12 }
0x2343   : > { %5792 = vmatprep.subr.mxu0 %v6315_v20 }
0x2344   : > { %5793 = vmatpush3.msra.mxu0 %v7014_v61 }
0x2345   : > { %5808 = vmatprep.subr.mxu0 %v6315_v20 }
0x235a   : > { %v3537_v19 = vpop.permute.xlu1 %3536 }
0x235b   : > { %5784 = vmatmul.mubr.msk.f32.vlgmr.msra.gmra.mxu1 %vm684_vm2, %v3537_v19 }
0x235c   : > { %5798 = vmatpush3.msra.mxu1 %v7033_v23  ;;  %5805 = vmatprep.mubr.msk.f32.mxu1 %vm6316_vm1, %v6315_v20 }
0x235d   : > { %5799 = vmatprep.subr.mxu1 %v6315_v20 }
0x235e   : > { %5800 = vmatpush3.msra.mxu1 %v7042_v24 }
0x235f   : > { %5801 = vmatprep.subr.mxu1 %v6315_v20 }
0x2360   : > { %5802 = vmatpush3.msra.mxu1 %v7048_v37 }
0x2361   : > { %5803 = vmatprep.subr.mxu1 %v6315_v20 }
0x2362   : > { %5804 = vmatpush3.msra.mxu1 %v7058_v10 }
0x2363   : > { %5819 = vmatprep.subr.mxu1 %v6315_v20 }
0x23fd   : > { %v3531_v58 = vpop.f32.mrf.mxu0 }
0x23fe   : > { %v3532_v60 = vadd.f32 %v3531_v58, %v7139_v63 }
0x23ff   : > { %v5774_v12 = vpop.f32.mrf.mxu0 }
0x2400   : > { %6110 = vtanh.f32 %v3532_v60  ;;  %v5278_v44 = vmul.f32 -1.442695, %v3532_v60 }
0x240d   : > { %v6111_v61 = vpop.eup %6110 }
0x240e   : > { %3626 = vrot.lane.b32.xlu0 %v6111_v61, %s6317_s19 }
0x241b   : > { %v3606_v39 = vpop.f32.mrf.mxu1 }
0x241c   : > { %v3607_v11 = vadd.f32 %v3606_v39, %v7128_v26 }
0x241d   : > { %v5785_v40 = vpop.f32.mrf.mxu1 }
0x241e   : > { %6112 = vtanh.f32 %v3607_v11  ;;  %v5279_v48 = vmul.f32 -1.442695, %v3607_v11 }
0x241f   : > { %6114 = vpow2.f32 %v5278_v44 }
0x242b   : > { %v6113_v0 = vpop.eup %6112 }
0x242c   : > { %3637 = vrot.lane.b32.xlu1 %v6113_v0, %s6317_s19  ;;  %v6115_v46 = vpop.eup %6114 }
0x242d   : > { %v3613_v7 = vadd.f32 1.0, %v6115_v46 }
0x242f   : > { %6116 = vrcp.f32 %v3613_v7 }
0x2430   : > { %6118 = vpow2.f32 %v5279_v48 }
0x243c   : > { %v6117_v63 = vpop.eup %6116 }
0x243d   : > { %v6119_v31 = vpop.eup %6118  ;;  %v3624_v51 = vmul.f32 %v6117_v63, %v7335_v1  ;;  %v6287_v1 = vld [vmem:[%s8460_s6 + $0x18] sm:$0xff] }
0x243e   : > { %v3620_v32 = vadd.f32 1.0, %v6119_v31 }
0x2440   : > { %6120 = vrcp.f32 %v3620_v32 }
0x244d   : > { %v6121_v26 = vpop.eup %6120 }
0x244e   : > { %v3635_v38 = vmul.f32 %v6121_v26, %v7340_v42 }
0x2480   : > { %v3627_v8 = vpop.permute.xlu0 %3626 }
0x2481   : > { %v3629_v47 = vmul.f32 %v6117_v63, %v3627_v8 }
0x2483   : > { %3631 = vrot.lane.b32.xlu0 %v3629_v47, %s6318_s21 }
0x249e   : > { %v3638_v5 = vpop.permute.xlu1 %3637 }
0x249f   : > { %v3640_v49 = vmul.f32 %v6121_v26, %v3638_v5 }
0x24a1   : > { %3642 = vrot.lane.b32.xlu1 %v3640_v49, %s6318_s21 }
0x24f5   : > { %v3632_v52 = vpop.permute.xlu0 %3631 }
0x24f6   : > { %v7381_v13 = vadd.f32 %v3632_v52, %v3624_v51 }
0x24f8   : > { %6122 = vtanh.f32 %v7381_v13 }
0x2505   : > { %v6123_v21 = vpop.eup %6122 }
0x2506   : > { %3648 = vrot.lane.b32.xlu0 %v6123_v21, %s6317_s19 }
0x2513   : > { %v3643_v41 = vpop.permute.xlu1 %3642 }
0x2514   : > { %v7386_v45 = vadd.f32 %v3643_v41, %v3635_v38 }
0x2516   : > { %6124 = vtanh.f32 %v7386_v45 }
0x2523   : > { %v6125_v56 = vpop.eup %6124 }
0x2524   : > { %3654 = vrot.lane.b32.xlu1 %v6125_v56, %s6317_s19 }
0x2578   : > { %v3649_v17 = vpop.permute.xlu0 %3648 }
0x2579   : > { %v3651_v57 = vmul.f32 %v6117_v63, %v3649_v17 }
0x257b   : > { %3659 = vrot.lane.b32.xlu0 %v3651_v57, %s6318_s21 }
0x2596   : > { %v3655_v55 = vpop.permute.xlu1 %3654 }
0x2597   : > { %v7391_v25 = vmul.f32 %v6121_v26, %v3655_v55 }
0x2599   : > { %3734 = vrot.lane.b32.xlu1 %v7391_v25, %s6318_s21 }
0x25ed   : > { %v7395_v59 = vpop.permute.xlu0 %3659 }
0x25ee   : > { %5795 = vmatmul.mubr.msk.f32.vlgmr.msra.gmra.mxu0 %vm684_vm2, %v7395_v59 }
0x25ef   : > { %5809 = vmatpush3.msra.mxu0 %v6287_v1  ;;  %5816 = vmatprep.mubr.msk.f32.mxu0 %vm6316_vm1, %v6315_v20 }
0x25f0   : > { %5810 = vmatprep.subr.mxu0 %v6315_v20 }
0x25f1   : > { %5811 = vmatpush3.msra.mxu0 %v6288_v6 }
0x25f2   : > { %5812 = vmatprep.subr.mxu0 %v6315_v20 }
0x25f3   : > { %5813 = vmatpush3.msra.mxu0 %v6289_v62 }
0x25f4   : > { %5814 = vmatprep.subr.mxu0 %v6315_v20 }
0x25f5   : > { %5815 = vmatpush3.msra.mxu0 %v6290_v2 }
0x260b   : > { %v3735_v42 = vpop.permute.xlu1 %3734 }
0x260c   : > { %5806 = vmatmul.mubr.msk.f32.vlgmr.msra.gmra.mxu1 %vm684_vm2, %v3735_v42 }
0x260d   : > { %5820 = vmatpush3.msra.mxu1 %v7033_v23  ;;  %5827 = vmatprep.mubr.msk.f32.mxu1 %vm6316_vm1, %v6315_v20 }
0x260e   : > { %5821 = vmatprep.subr.mxu1 %v6315_v20 }
0x260f   : > { %5822 = vmatpush3.msra.mxu1 %v7042_v24 }
0x2610   : > { %5823 = vmatprep.subr.mxu1 %v6315_v20 }
0x2611   : > { %5824 = vmatpush3.msra.mxu1 %v7048_v37 }
0x2612   : > { %5825 = vmatprep.subr.mxu1 %v6315_v20 }
0x2613   : > { %5826 = vmatpush3.msra.mxu1 %v7058_v10 }
0x26ae   : > { %v3729_v43 = vpop.f32.mrf.mxu0 }
0x26af   : > { %v3730_v14 = vadd.f32 %v3729_v43, %v7143_v3 }
0x26b0   : > { %v5796_v28 = vpop.f32.mrf.mxu0 }
0x26b1   : > { %6126 = vtanh.f32 %v3730_v14  ;;  %v5282_v37 = vmul.f32 -1.442695, %v3730_v14 }
0x26be   : > { %v6127_v23 = vpop.eup %6126 }
0x26bf   : > { %3824 = vrot.lane.b32.xlu0 %v6127_v23, %s6317_s19 }
0x26cc   : > { %v3804_v29 = vpop.f32.mrf.mxu1 }
0x26cd   : > { %v3805_v19 = vadd.f32 %v3804_v29, %v7124_v22 }
0x26ce   : > { %v5807_v24 = vpop.f32.mrf.mxu1 }
0x26cf   : > { %6128 = vtanh.f32 %v3805_v19  ;;  %v5283_v60 = vmul.f32 -1.442695, %v3805_v19 }
0x26d0   : > { %6130 = vpow2.f32 %v5282_v37 }
0x26dc   : > { %v6129_v58 = vpop.eup %6128 }
0x26dd   : > { %3835 = vrot.lane.b32.xlu1 %v6129_v58, %s6317_s19  ;;  %v6131_v20 = vpop.eup %6130 }
0x26de   : > { %v3811_v10 = vadd.f32 1.0, %v6131_v20 }
0x26e0   : > { %6132 = vrcp.f32 %v3811_v10 }
0x26e1   : > { %6134 = vpow2.f32 %v5283_v60 }
0x26ed   : > { %v6133_v3 = vpop.eup %6132 }
0x26ee   : > { %v6135_v39 = vpop.eup %6134  ;;  %v3822_v44 = vmul.f32 %v6133_v3, %v7381_v13 }
0x26ef   : > { %v3818_v11 = vadd.f32 1.0, %v6135_v39  ;;  %v4100_v39 = vld [vmem:[%s8463_s9 + $0x10] sm:$0xff] }
0x26f1   : > { %6136 = vrcp.f32 %v3818_v11  ;;  %v4099_v11 = vld [vmem:[%s8463_s9 + $0x8] sm:$0xff] }
0x26fe   : > { %v6137_v22 = vpop.eup %6136 }
0x26ff   : > { %v3833_v63 = vmul.f32 %v6137_v22, %v7386_v45 }
0x2731   : > { %v3825_v12 = vpop.permute.xlu0 %3824 }
0x2732   : > { %v3827_v61 = vmul.f32 %v6133_v3, %v3825_v12  ;;  %v4104_v12 = vld [vmem:[%s8463_s9 + $0x30] sm:$0xff] }
0x2734   : > { %3829 = vrot.lane.b32.xlu0 %v3827_v61, %s6318_s21  ;;  %v4101_v61 = vld [vmem:[%s8463_s9 + $0x18] sm:$0xff] }
0x274f   : > { %v3836_v40 = vpop.permute.xlu1 %3835 }
0x2750   : > { %v3838_v0 = vmul.f32 %v6137_v22, %v3836_v40 }
0x2752   : > { %3840 = vrot.lane.b32.xlu1 %v3838_v0, %s6318_s21  ;;  %v4098_v0 = vld [vmem:[%s8463_s9] sm:$0xff] }
0x27a6   : > { %v3830_v46 = vpop.permute.xlu0 %3829 }
0x27a7   : > { %v3832_v7 = vadd.f32 %v3830_v46, %v3822_v44 }
0x27a9   : > { %6138 = vtanh.f32 %v3832_v7 }
0x27b6   : > { %v6139_v48 = vpop.eup %6138 }
0x27b7   : > { %3846 = vrot.lane.b32.xlu0 %v6139_v48, %s6317_s19 }
0x27c4   : > { %v3841_v8 = vpop.permute.xlu1 %3840 }
0x27c5   : > { %v3843_v47 = vadd.f32 %v3841_v8, %v3833_v63 }
0x27c7   : > { %6140 = vtanh.f32 %v3843_v47 }
0x27d4   : > { %v6141_v31 = vpop.eup %6140 }
0x27d5   : > { %3852 = vrot.lane.b32.xlu1 %v6141_v31, %s6317_s19 }
0x2829   : > { %v3847_v32 = vpop.permute.xlu0 %3846 }
0x282a   : > { %v3849_v26 = vmul.f32 %v6133_v3, %v3847_v32  ;;  %v4105_v3 = vld [vmem:[%s8463_s9 + $0x38] sm:$0xff] }
0x282b   : > { %5830 = vmatprep.subr.mxu0 %v4105_v3 }
0x282c   : > { %3857 = vrot.lane.b32.xlu0 %v3849_v26, %s6318_s21 }
0x2847   : > { %v3853_v5 = vpop.permute.xlu1 %3852 }
0x2848   : > { %v3855_v49 = vmul.f32 %v6137_v22, %v3853_v5 }
0x284a   : > { %3932 = vrot.lane.b32.xlu1 %v3855_v49, %s6318_s21 }
0x289e   : > { %v7438_v51 = vpop.permute.xlu0 %3857 }
0x289f   : > { %5817 = vmatmul.mubr.msk.f32.vlgmr.msra.gmra.mxu0 %vm684_vm2, %v7438_v51 }
0x28a0   : > { %5831 = vmatpush3.msra.mxu0 %v4105_v3 }
0x28a1   : > { %5832 = vmatprep.subr.mxu0 %v4104_v12 }
0x28a2   : > { %5833 = vmatpush3.msra.mxu0 %v4104_v12 }
0x28bc   : > { %v3933_v52 = vpop.permute.xlu1 %3932 }
0x28bd   : > { %5828 = vmatmul.mubr.msk.f32.vlgmr.msra.gmra.mxu1 %vm684_vm2, %v3933_v52 }
0x295f   : > { %v3927_v13 = vpop.f32.mrf.mxu0 }
0x2960   : > { %v3928_v21 = vadd.f32 %v3927_v13, %v7147_v27 }
0x2961   : > { %v5818_v38 = vpop.f32.mrf.mxu0 }
0x2962   : > { %6142 = vtanh.f32 %v3928_v21  ;;  %v5286_v55 = vmul.f32 -1.442695, %v3928_v21 }
0x296f   : > { %v6143_v41 = vpop.eup %6142 }
0x2970   : > { %4022 = vrot.lane.b32.xlu0 %v6143_v41, %s6317_s19 }
0x297d   : > { %v4002_v45 = vpop.f32.mrf.mxu1 }
0x297e   : > { %v4003_v56 = vadd.f32 %v4002_v45, %v7120_v53 }
0x297f   : > { %v5829_v17 = vpop.f32.mrf.mxu1 }
0x2980   : > { %6144 = vtanh.f32 %v4003_v56  ;;  %v5287_v62 = vmul.f32 -1.442695, %v4003_v56 }
0x2981   : > { %6146 = vpow2.f32 %v5286_v55 }
0x298d   : > { %v6145_v57 = vpop.eup %6144 }
0x298e   : > { %4033 = vrot.lane.b32.xlu1 %v6145_v57, %s6317_s19  ;;  %v6147_v1 = vpop.eup %6146 }
0x298f   : > { %v4009_v6 = vadd.f32 1.0, %v6147_v1 }
0x2991   : > { %6148 = vrcp.f32 %v4009_v6 }
0x2992   : > { %6150 = vpow2.f32 %v5287_v62 }
0x299e   : > { %v6149_v27 = vpop.eup %6148 }
0x299f   : > { %v6151_v43 = vpop.eup %6150  ;;  %v4020_v29 = vmul.f32 %v6149_v27, %v3832_v7 }
0x29a0   : > { %v4016_v14 = vadd.f32 1.0, %v6151_v43 }
0x29a2   : > { %6152 = vrcp.f32 %v4016_v14 }
0x29af   : > { %v6153_v53 = vpop.eup %6152 }
0x29b0   : > { %v4031_v37 = vmul.f32 %v6153_v53, %v3843_v47 }
0x29e2   : > { %v4023_v2 = vpop.permute.xlu0 %4022 }
0x29e3   : > { %v4025_v42 = vmul.f32 %v6149_v27, %v4023_v2 }
0x29e5   : > { %4027 = vrot.lane.b32.xlu0 %v4025_v42, %s6318_s21 }
0x2a00   : > { %v4034_v28 = vpop.permute.xlu1 %4033 }
0x2a01   : > { %v4036_v23 = vmul.f32 %v6153_v53, %v4034_v28 }
0x2a03   : > { %4038 = vrot.lane.b32.xlu1 %v4036_v23, %s6318_s21 }
0x2a57   : > { %v4028_v19 = vpop.permute.xlu0 %4027 }
0x2a58   : > { %v4030_v24 = vadd.f32 %v4028_v19, %v4020_v29 }
0x2a5a   : > { %6154 = vtanh.f32 %v4030_v24 }
0x2a67   : > { %v6155_v58 = vpop.eup %6154 }
0x2a68   : > { %4044 = vrot.lane.b32.xlu0 %v6155_v58, %s6317_s19 }
0x2a6c   : > { %4061 = vrot.lane.b32.xlu0 %v3855_v49, %s6317_s19 }
0x2a70   : > { %4071 = vrot.lane.b32.xlu0 %v7345_v4, %s6317_s19  ;;  %v4102_v4 = vld [vmem:[%s8463_s9 + $0x20] sm:$0xff] }
0x2a74   : > { %4081 = vrot.lane.b32.xlu0 %v7253_v18, %s6317_s19  ;;  %v4103_v18 = vld [vmem:[%s8463_s9 + $0x28] sm:$0xff] }
0x2a75   : > { %v4039_v20 = vpop.permute.xlu1 %4038  ;;  %5834 = vmatprep.subr.mxu0 %v4103_v18 }
0x2a76   : > { %v4041_v10 = vadd.f32 %v4039_v20, %v4031_v37  ;;  %5835 = vmatpush3.msra.mxu0 %v4103_v18  ;;  %v7553_v37 = vld [vmem:[%s8465_s11] ss:$0 sm:$0xff] }
0x2a77   : > { %5836 = vmatprep.subr.mxu0 %v4102_v4 }
0x2a78   : > { %6156 = vtanh.f32 %v4041_v10  ;;  %5837 = vmatpush3.msra.mxu0 %v4102_v4 }
0x2a79   : > { %5838 = vmatprep.subr.mxu0 %v4101_v61 }
0x2a7a   : > { %5839 = vmatpush3.msra.mxu0 %v4101_v61 }
0x2a7b   : > { %5840 = vmatprep.subr.mxu0 %v4100_v39 }
0x2a7c   : > { %5841 = vmatpush3.msra.mxu0 %v4100_v39 }
0x2a7d   : > { %5842 = vmatprep.subr.mxu0 %v4099_v11 }
0x2a7e   : > { %5843 = vmatpush3.msra.mxu0 %v4099_v11 }
0x2a7f   : > { %5844 = vmatprep.subr.mxu0 %v4098_v0 }
0x2a80   : > { %5845 = vmatpush3.msra.mxu0 %v4098_v0 }
0x2a85   : > { %v6157_v60 = vpop.eup %6156 }
0x2a86   : > { %4050 = vrot.lane.b32.xlu1 %v6157_v60, %s6317_s19 }
0x2ada   : > { %v4045_v22 = vpop.permute.xlu0 %4044 }
0x2adb   : > { %v4047_v40 = vmul.f32 %v6149_v27, %v4045_v22 }
0x2add   : > { %4091 = vrot.lane.b32.xlu0 %v4047_v40, %s6318_s21 }
0x2ade   : > { %v4062_v7 = vpop.permute.xlu0 %4061 }
0x2adf   : > { %v4064_v47 = vsel %vm684_vm2, %v7211_v50, %v4062_v7 }
0x2ae2   : > { %v4072_v63 = vpop.permute.xlu0 %4071 }
0x2af8   : > { %v4051_v44 = vpop.permute.xlu1 %4050 }
0x2af9   : > { %v4053_v46 = vmul.f32 %v6153_v53, %v4051_v44 }
0x2afb   : > { %4056 = vrot.lane.b32.xlu1 %v4053_v46, %s6317_s19 }
0x2aff   : > { %4066 = vrot.lane.b32.xlu1 %v7391_v25, %s6317_s19  ;;  %v4082_v25 = vpop.permute.xlu0 %4081 }
0x2b00   : > { %v4084_v31 = vsel %vm684_vm2, %v7395_v59, %v4082_v25 }
0x2b03   : > { %4076 = vrot.lane.b32.xlu1 %v7299_v15, %s6317_s19 }
0x2b07   : > { %4086 = vrot.lane.b32.xlu1 %v7207_v36, %s6317_s19 }
0x2b0b   : > { %4094 = vrot.lane.b32.xlu1 %v7161_v54, %s6317_s19  ;;  %v4074_v54 = vsel %vm684_vm2, %v7303_v30, %v4072_v63 }
0x2b4f   : > { %v4092_v32 = vpop.permute.xlu0 %4091 }
0x2b6d   : > { %v4057_v48 = vpop.permute.xlu1 %4056 }
0x2b6e   : > { %v4059_v8 = vsel %vm684_vm2, %v7165_v35, %v4057_v48 }
0x2b6f   : > { %5846 = vmatprep.mubr.msk.f32.mxu0 %vm2334_vm3, %v4059_v8 }
0x2b70   : > { %5847 = vmatmul.mubr.msk.f32.vlgmr.msra.gmra.mxu0 %vm2334_vm3, %v4064_v47 }
0x2b71   : > { %v4067_v15 = vpop.permute.xlu1 %4066 }
0x2b72   : > { %v4069_v36 = vsel %vm684_vm2, %v7257_v9, %v4067_v15 }
0x2b73   : > { %5849 = vmatprep.mubr.msk.f32.mxu0 %vm2334_vm3, %v4069_v36 }
0x2b74   : > { %5850 = vmatmul.mubr.msk.f32.gmra.mxu0 %vm2334_vm3, %v4074_v54 }
0x2b75   : > { %v4077_v35 = vpop.permute.xlu1 %4076 }
0x2b76   : > { %v4079_v50 = vsel %vm684_vm2, %v7349_v16, %v4077_v35  ;;  %v5288_v16 = vld [vmem:[%s8464_s10] ss:$0 sm:$0xff] }
0x2b77   : > { %5852 = vmatprep.mubr.msk.f32.mxu0 %vm2334_vm3, %v4079_v50 }
0x2b78   : > { %5853 = vmatmul.mubr.msk.f32.gmra.mxu0 %vm2334_vm3, %v4084_v31 }
0x2b79   : > { %v4087_v9 = vpop.permute.xlu1 %4086 }
0x2b7a   : > { %v4089_v30 = vsel %vm684_vm2, %v7438_v51, %v4087_v9 }
0x2b7b   : > { %5855 = vmatprep.mubr.msk.f32.mxu0 %vm2334_vm3, %v4089_v30 }
0x2b7d   : > { %v4095_v26 = vpop.permute.xlu1 %4094 }
0x2b7e   : > { %v4097_v5 = vsel %vm684_vm2, %v4092_v32, %v4095_v26 }
0x2b7f   : > { %5856 = vmatmul.mubr.msk.f32.gmra.mxu0 %vm2334_vm3, %v4097_v5 }
0x2c30   : > { %v5848_v59 = vpop.f32.mrf.mxu0 }
0x2c31   : > { %v7516_v49 = vadd.f32 %v5848_v59, %v5288_v16  ;;  %v6320_v59 = vmov 0  }
0x2c32   : > { %v4203_v52 = vpop.f32.mrf.mxu0  ;;  %5900 = vset.pattern.permute.xlu1 %v6320_v59  ;;  %5901 = vset.pattern.permute.xlu0 %v6320_v59 }
0x2c33   : > { %v7518_v13 = vadd.f32 %v5288_v16, %v4203_v52  ;;  %4252 = vrot.lane.b32.xlu1 %v7516_v49, %s6319_s18 }
0x2c34   : > { %v5851_v51 = vpop.f32.mrf.mxu0 }
0x2c35   : > { %v7521_v21 = vadd.f32 %v5851_v51, %v5288_v16  ;;  %4250 = vrot.lane.b32.xlu0 %v7518_v13, %s6319_s18 }
0x2c36   : > { %v4213_v38 = vpop.f32.mrf.mxu0 }
0x2c37   : > { %v7524_v41 = vadd.f32 %v5288_v16, %v4213_v38  ;;  %4256 = vrot.lane.b32.xlu1 %v7521_v21, %s6319_s18 }
0x2c38   : > { %v5854_v45 = vpop.f32.mrf.mxu0 }
0x2c39   : > { %v7527_v56 = vadd.f32 %v5854_v45, %v5288_v16  ;;  %4254 = vrot.lane.b32.xlu0 %v7524_v41, %s6319_s18 }
0x2c3a   : > { %v4223_v17 = vpop.f32.mrf.mxu0 }
0x2c3b   : > { %v7530_v57 = vadd.f32 %v5288_v16, %v4223_v17  ;;  %4260 = vrot.lane.b32.xlu1 %v7527_v56, %s6319_s18 }
0x2c3d   : > { %4258 = vrot.lane.b32.xlu0 %v7530_v57, %s6319_s18 }
0x2c3f   : > { %v5857_v55 = vpop.f32.mrf.mxu0 }
0x2c40   : > { %v7534_v1 = vadd.f32 %v5857_v55, %v5288_v16 }
0x2c41   : > { %v4233_v6 = vpop.f32.mrf.mxu0 }
0x2c42   : > { %v7536_v62 = vadd.f32 %v5288_v16, %v4233_v6  ;;  %4264 = vrot.lane.b32.xlu1 %v7534_v1, %s6319_s18 }
0x2c44   : > { %4262 = vrot.lane.b32.xlu0 %v7536_v62, %s6319_s18 }
0x2ca5   : > { %v4253_v27 = vpop.permute.xlu1 %4252 }
0x2ca6   : > { %v4283_v2 = vadd.f32 %v4253_v27, %v7516_v49  ;;  %v4275_v42 = vadd.f32 %v4253_v27, %v7518_v13  ;;  %v4291_v43 = vadd.f32 %v4253_v27, %v7524_v41  ;;  %v4315_v14 = vadd.f32 %v4253_v27, %v7527_v56 }
0x2ca7   : > { %v4299_v53 = vadd.f32 %v4253_v27, %v7521_v21  ;;  %v4323_v28 = vadd.f32 %v4253_v27, %v7536_v62  ;;  %v4307_v23 = vadd.f32 %v4253_v27, %v7530_v57  ;;  %v4251_v29 = vpop.permute.xlu0 %4250  ;;  %v4331_v19 = vadd.f32 %v4253_v27, %v7534_v1 }
0x2ca8   : > { %6158 = vtanh.f32 %v4283_v2  ;;  %v4274_v24 = vadd.f32 %v4251_v29, %v7518_v13  ;;  %v4282_v58 = vadd.f32 %v4251_v29, %v7516_v49  ;;  %v4314_v20 = vadd.f32 %v4251_v29, %v7527_v56 }
0x2ca9   : > { %6160 = vtanh.f32 %v4275_v42  ;;  %v4290_v60 = vadd.f32 %v4251_v29, %v7524_v41  ;;  %v4322_v22 = vadd.f32 %v4251_v29, %v7536_v62  ;;  %v4298_v46 = vadd.f32 %v4251_v29, %v7521_v21  ;;  %v7568_v15 = vpop.permute.xlu1 %4256 }
0x2caa   : > { %6162 = vtanh.f32 %v4291_v43  ;;  %v4330_v8 = vadd.f32 %v4251_v29, %v7534_v1  ;;  %v4306_v25 = vadd.f32 %v4251_v29, %v7530_v57  ;;  %v4277_v9 = vadd.f32 %v7568_v15, %v7518_v13 }
0x2cab   : > { %6164 = vtanh.f32 %v4315_v14  ;;  %v4309_v5 = vadd.f32 %v7568_v15, %v7530_v57  ;;  %v4285_v38 = vadd.f32 %v7568_v15, %v7516_v49  ;;  %v4325_v6 = vadd.f32 %v7568_v15, %v7536_v62  ;;  %v7589_v2 = vpop.permute.xlu0 %4254 }
0x2cac   : > { %6166 = vtanh.f32 %v4299_v53  ;;  %v4293_v14 = vadd.f32 %v7568_v15, %v7524_v41  ;;  %v4284_v29 = vadd.f32 %v7589_v2, %v7516_v49  ;;  %v4316_v59 = vadd.f32 %v7589_v2, %v7527_v56 }
0x2cad   : > { %6168 = vtanh.f32 %v4323_v28 }
0x2cae   : > { %6170 = vtanh.f32 %v4307_v23 }
0x2caf   : > { %6172 = vtanh.f32 %v4331_v19 }
0x2cb0   : > { %6174 = vtanh.f32 %v4274_v24 }
0x2cb1   : > { %6176 = vtanh.f32 %v4282_v58 }
0x2cb2   : > { %6178 = vtanh.f32 %v4314_v20  ;;  %v4301_v20 = vadd.f32 %v7568_v15, %v7521_v21 }
0x2cb3   : > { %6180 = vtanh.f32 %v4290_v60 }
0x2cb4   : > { %6182 = vtanh.f32 %v4322_v22 }
0x2cb5   : > { %v6159_v10 = vpop.eup %6158  ;;  %6184 = vtanh.f32 %v4298_v46 }
0x2cb6   : > { %v6161_v3 = vpop.eup %6160  ;;  %v4418_v12 = vmul.f32 %v6159_v10, %v7553_v37  ;;  %6186 = vtanh.f32 %v4330_v8 }
0x2cb7   : > { %v6163_v18 = vpop.eup %6162  ;;  %v4410_v4 = vmul.f32 %v6161_v3, %v7553_v37  ;;  %6188 = vtanh.f32 %v4306_v25 }
0x2cb8   : > { %v6165_v61 = vpop.eup %6164  ;;  %v4500_v39 = vsel %vm684_vm2, %v4418_v12, 0.0  ;;  %v4426_v11 = vmul.f32 %v6163_v18, %v7553_v37  ;;  %6190 = vtanh.f32 %v4277_v9  ;;  %v4292_v12 = vadd.f32 %v7589_v2, %v7524_v41 }
0x2cb9   : > { %v6167_v40 = vpop.eup %6166  ;;  %4501 = vadd.xlane.f32.xlu0 %v4500_v39  ;;  %v4476_v0 = vsel %vm684_vm2, %v4410_v4, 0.0  ;;  %v4450_v44 = vmul.f32 %v6165_v61, %v7553_v37  ;;  %6192 = vtanh.f32 %v4309_v5  ;;  %v4317_v39 = vadd.f32 %v7568_v15, %v7527_v56 }
0x2cba   : > { %v6169_v7 = vpop.eup %6168  ;;  %4477 = vadd.xlane.f32.xlu1 %v4476_v0  ;;  %v4524_v48 = vsel %vm684_vm2, %v4426_v11, 0.0  ;;  %v4434_v63 = vmul.f32 %v6167_v40, %v7553_v37  ;;  %6194 = vtanh.f32 %v4285_v38  ;;  %v4300_v0 = vadd.f32 %v7589_v2, %v7521_v21 }
0x2cbb   : > { %v6171_v47 = vpop.eup %6170  ;;  %v4596_v36 = vsel %vm684_vm2, %v4450_v44, 0.0  ;;  %v4458_v54 = vmul.f32 %v6169_v7, %v7553_v37  ;;  %6196 = vtanh.f32 %v4325_v6 }
0x2cbc   : > { %v6173_v35 = vpop.eup %6172  ;;  %v4548_v50 = vsel %vm684_vm2, %v4434_v63, 0.0  ;;  %v4442_v31 = vmul.f32 %v6171_v47, %v7553_v37  ;;  %6198 = vtanh.f32 %v4293_v14 }
0x2cbd   : > { %4525 = vadd.xlane.f32.xlu0 %v4524_v48  ;;  %v6175_v30 = vpop.eup %6174  ;;  %v4620_v32 = vsel %vm684_vm2, %v4458_v54, 0.0  ;;  %v4466_v26 = vmul.f32 %v6173_v35, %v7553_v37  ;;  %6200 = vtanh.f32 %v4284_v29  ;;  %v4333_v48 = vadd.f32 %v7568_v15, %v7534_v1 }
0x2cbe   : > { %4597 = vadd.xlane.f32.xlu1 %v4596_v36  ;;  %v6177_v16 = vpop.eup %6176  ;;  %v4572_v52 = vsel %vm684_vm2, %v4442_v31, 0.0  ;;  %v4409_v51 = vmul.f32 %v6175_v30, %v7553_v37  ;;  %6202 = vtanh.f32 %v4301_v20  ;;  %v4308_v36 = vadd.f32 %v7589_v2, %v7530_v57 }
0x2cbf   : > { %v6179_v45 = vpop.eup %6178  ;;  %v4644_v17 = vsel %vm684_vm2, %v4466_v26, 0.0  ;;  %v4417_v55 = vmul.f32 %v6177_v16, %v7553_v37  ;;  %6204 = vtanh.f32 %v4292_v12  ;;  %v4276_v15 = vadd.f32 %v7589_v2, %v7518_v13  ;;  %v7631_v26 = vpop.permute.xlu1 %4260 }
0x2cc0   : > { %v6181_v27 = vpop.eup %6180  ;;  %v4473_v42 = vsel %vm684_vm2, %v4409_v51, 0.0  ;;  %v4449_v43 = vmul.f32 %v6179_v45, %v7553_v37  ;;  %6206 = vtanh.f32 %v4317_v39  ;;  %v4324_v30 = vadd.f32 %v7589_v2, %v7536_v62 }
0x2cc1   : > { %4549 = vadd.xlane.f32.xlu0 %v4548_v50  ;;  %v6183_v53 = vpop.eup %6182  ;;  %v4497_v28 = vsel %vm684_vm2, %v4417_v55, 0.0  ;;  %v4425_v23 = vmul.f32 %v6181_v27, %v7553_v37  ;;  %6208 = vtanh.f32 %v4300_v0  ;;  %v4311_v45 = vadd.f32 %v7631_v26, %v7530_v57 }
0x2cc2   : > { %4621 = vadd.xlane.f32.xlu1 %v4620_v32  ;;  %v6185_v19 = vpop.eup %6184  ;;  %v4593_v24 = vsel %vm684_vm2, %v4449_v43, 0.0  ;;  %v4457_v58 = vmul.f32 %v6183_v53, %v7553_v37  ;;  %6210 = vtanh.f32 %v4333_v48  ;;  %v4332_v27 = vadd.f32 %v7589_v2, %v7534_v1 }
0x2cc3   : > { %v6187_v10 = vpop.eup %6186  ;;  %v4521_v60 = vsel %vm684_vm2, %v4425_v23, 0.0  ;;  %v4433_v3 = vmul.f32 %v6185_v19, %v7553_v37  ;;  %6212 = vtanh.f32 %v4308_v36  ;;  %v4327_v53 = vadd.f32 %v7631_v26, %v7536_v62  ;;  %v7649_v23 = vpop.permute.xlu0 %4258 }
0x2cc4   : > { %v6189_v18 = vpop.eup %6188  ;;  %v4617_v4 = vsel %vm684_vm2, %v4457_v58, 0.0  ;;  %v4465_v61 = vmul.f32 %v6187_v10, %v7553_v37  ;;  %6214 = vtanh.f32 %v4276_v15  ;;  %v4279_v2 = vadd.f32 %v7631_v26, %v7518_v13 }
0x2cc5   : > { %4573 = vadd.xlane.f32.xlu0 %v4572_v52  ;;  %v6191_v11 = vpop.eup %6190  ;;  %v4545_v22 = vsel %vm684_vm2, %v4433_v3, 0.0  ;;  %v4441_v40 = vmul.f32 %v6189_v18, %v7553_v37  ;;  %6216 = vtanh.f32 %v4324_v30  ;;  %v4278_v10 = vadd.f32 %v7649_v23, %v7518_v13 }
0x2cc6   : > { %4645 = vadd.xlane.f32.xlu1 %v4644_v17  ;;  %v6193_v44 = vpop.eup %6192  ;;  %v4641_v46 = vsel %vm684_vm2, %v4465_v61, 0.0  ;;  %v4412_v7 = vmul.f32 %v6191_v11, %v7553_v37  ;;  %6218 = vtanh.f32 %v4316_v59  ;;  %v4287_v18 = vadd.f32 %v7631_v26, %v7516_v49 }
0x2cc7   : > { %v6195_v63 = vpop.eup %6194  ;;  %v4569_v8 = vsel %vm684_vm2, %v4441_v40, 0.0  ;;  %v4444_v47 = vmul.f32 %v6193_v44, %v7553_v37  ;;  %6220 = vtanh.f32 %v4311_v45  ;;  %v4286_v11 = vadd.f32 %v7649_v23, %v7516_v49 }
0x2cc8   : > { %v6197_v54 = vpop.eup %6196  ;;  %v4482_v25 = vsel %vm684_vm2, %v4412_v7, 0.0  ;;  %v4420_v35 = vmul.f32 %v6195_v63, %v7553_v37  ;;  %6222 = vtanh.f32 %v4332_v27  ;;  %v4295_v44 = vadd.f32 %v7631_v26, %v7524_v41 }
0x2cc9   : > { %4474 = vadd.xlane.f32.xlu0 %v4473_v42  ;;  %v6199_v50 = vpop.eup %6198  ;;  %v4578_v31 = vsel %vm684_vm2, %v4444_v47, 0.0  ;;  %v4460_v9 = vmul.f32 %v6197_v54, %v7553_v37  ;;  %6224 = vtanh.f32 %v4327_v53  ;;  %v4294_v63 = vadd.f32 %v7649_v23, %v7524_v41 }
0x2cca   : > { %4498 = vadd.xlane.f32.xlu1 %v4497_v28  ;;  %v6201_v32 = vpop.eup %6200  ;;  %v4506_v5 = vsel %vm684_vm2, %v4420_v35, 0.0  ;;  %v4428_v16 = vmul.f32 %v6199_v50, %v7553_v37  ;;  %6226 = vtanh.f32 %v4279_v2  ;;  %v4303_v54 = vadd.f32 %v7631_v26, %v7521_v21 }
0x2ccb   : > { %v6203_v52 = vpop.eup %6202  ;;  %v4626_v51 = vsel %vm684_vm2, %v4460_v9, 0.0  ;;  %v4419_v38 = vmul.f32 %v6201_v32, %v7553_v37  ;;  %6228 = vtanh.f32 %v4278_v10  ;;  %v4302_v50 = vadd.f32 %v7649_v23, %v7521_v21 }
0x2ccc   : > { %v6205_v17 = vpop.eup %6204  ;;  %v4530_v55 = vsel %vm684_vm2, %v4428_v16, 0.0  ;;  %v4436_v6 = vmul.f32 %v6203_v52, %v7553_v37  ;;  %6230 = vtanh.f32 %v4287_v18  ;;  %v4319_v32 = vadd.f32 %v7631_v26, %v7527_v56 }
0x2ccd   : > { %4594 = vadd.xlane.f32.xlu0 %v4593_v24  ;;  %v6207_v42 = vpop.eup %6206  ;;  %v4503_v43 = vsel %vm684_vm2, %v4419_v38, 0.0  ;;  %v4427_v14 = vmul.f32 %v6205_v17, %v7553_v37  ;;  %6232 = vtanh.f32 %v4286_v11  ;;  %v4310_v52 = vadd.f32 %v7649_v23, %v7530_v57 }
0x2cce   : > { %4522 = vadd.xlane.f32.xlu1 %v4521_v60  ;;  %v6209_v28 = vpop.eup %6208  ;;  %v4554_v29 = vsel %vm684_vm2, %v4436_v6, 0.0  ;;  %v4452_v19 = vmul.f32 %v6207_v42, %v7553_v37  ;;  %6234 = vtanh.f32 %v4295_v44  ;;  %v4335_v17 = vadd.f32 %v7631_v26, %v7534_v1 }
0x2ccf   : > { %v6211_v24 = vpop.eup %6210  ;;  %v4527_v58 = vsel %vm684_vm2, %v4427_v14, 0.0  ;;  %v4435_v20 = vmul.f32 %v6209_v28, %v7553_v37  ;;  %6236 = vtanh.f32 %v4294_v63  ;;  %v4326_v42 = vadd.f32 %v7649_v23, %v7536_v62  ;;  %v7699_v14 = vpop.permute.xlu1 %4264 }
0x2cd0   : > { %v6213_v60 = vpop.eup %6212  ;;  %v4602_v3 = vsel %vm684_vm2, %v4452_v19, 0.0  ;;  %v4468_v12 = vmul.f32 %v6211_v24, %v7553_v37  ;;  %6238 = vtanh.f32 %v4303_v54  ;;  %v4318_v26 = vadd.f32 %v7649_v23, %v7527_v56 }
0x2cd1   : > { %4618 = vadd.xlane.f32.xlu0 %v4617_v4  ;;  %v6215_v4 = vpop.eup %6214  ;;  %v4551_v61 = vsel %vm684_vm2, %v4435_v20, 0.0  ;;  %v4443_v39 = vmul.f32 %v6213_v60, %v7553_v37  ;;  %6240 = vtanh.f32 %v4302_v50  ;;  %v4313_v24 = vadd.f32 %v7699_v14, %v7530_v57 }
0x2cd2   : > { %4546 = vadd.xlane.f32.xlu1 %v4545_v22  ;;  %v6217_v22 = vpop.eup %6216  ;;  %v4650_v40 = vsel %vm684_vm2, %v4468_v12, 0.0  ;;  %v4411_v0 = vmul.f32 %v6215_v4, %v7553_v37  ;;  %6242 = vtanh.f32 %v4319_v32  ;;  %v4334_v60 = vadd.f32 %v7649_v23, %v7534_v1 }
0x2cd3   : > { %v4575_v7 = vsel %vm684_vm2, %v4443_v39, 0.0  ;;  %v4459_v48 = vmul.f32 %v6217_v22, %v7553_v37  ;;  %6244 = vtanh.f32 %v4310_v52  ;;  %v4329_v4 = vadd.f32 %v7699_v14, %v7536_v62  ;;  %v7717_v39 = vpop.permute.xlu0 %4262 }
0x2cd4   : > { %v4479_v47 = vsel %vm684_vm2, %v4411_v0, 0.0  ;;  %6246 = vtanh.f32 %v4335_v17  ;;  %v4281_v23 = vadd.f32 %v7699_v14, %v7518_v13  ;;  %v4297_v50 = vadd.f32 %v7699_v14, %v7524_v41 }
0x2cd5   : > { %4642 = vadd.xlane.f32.xlu0 %v4641_v46  ;;  %v6219_v46 = vpop.eup %6218  ;;  %v4623_v35 = vsel %vm684_vm2, %v4459_v48, 0.0  ;;  %6248 = vtanh.f32 %v4326_v42 }
0x2cd6   : > { %4570 = vadd.xlane.f32.xlu1 %v4569_v8  ;;  %v6221_v8 = vpop.eup %6220  ;;  %v4451_v36 = vmul.f32 %v6219_v46, %v7553_v37  ;;  %6250 = vtanh.f32 %v4318_v26  ;;  %v4280_v46 = vadd.f32 %v7717_v39, %v7518_v13  ;;  %v4288_v13 = vadd.f32 %v7717_v39, %v7516_v49 }
0x2cd7   : > { %v4446_v15 = vmul.f32 %v6221_v8, %v7553_v37  ;;  %6252 = vtanh.f32 %v4313_v24  ;;  %v4289_v8 = vadd.f32 %v7699_v14, %v7516_v49  ;;  %v4296_v49 = vadd.f32 %v7717_v39, %v7524_v41 }
0x2cd8   : > { %v4599_v9 = vsel %vm684_vm2, %v4451_v36, 0.0  ;;  %v4304_v41 = vadd.f32 %v7717_v39, %v7521_v21 }
0x2cd9   : > { %4483 = vadd.xlane.f32.xlu0 %v4482_v25  ;;  %v6223_v25 = vpop.eup %6222  ;;  %v4584_v16 = vsel %vm684_vm2, %v4446_v15, 0.0  ;;  %6254 = vtanh.f32 %v4334_v60 }
0x2cda   : > { %4579 = vadd.xlane.f32.xlu1 %v4578_v31  ;;  %v6225_v31 = vpop.eup %6224  ;;  %v4467_v30 = vmul.f32 %v6223_v25, %v7553_v37  ;;  %6256 = vtanh.f32 %v4329_v4 }
0x2cdb   : > { %v4462_v59 = vmul.f32 %v6225_v31, %v7553_v37 }
0x2cdc   : > { %v4647_v38 = vsel %vm684_vm2, %v4467_v30, 0.0 }
0x2cdd   : > { %4507 = vadd.xlane.f32.xlu0 %v4506_v5  ;;  %v6227_v5 = vpop.eup %6226  ;;  %v4632_v6 = vsel %vm684_vm2, %v4462_v59, 0.0  ;;  %6258 = vtanh.f32 %v4281_v23  ;;  %v4305_v59 = vadd.f32 %v7699_v14, %v7521_v21  ;;  %v4312_v21 = vadd.f32 %v7717_v39, %v7530_v57 }
0x2cde   : > { %4627 = vadd.xlane.f32.xlu1 %v4626_v51  ;;  %v6229_v51 = vpop.eup %6228  ;;  %v4414_v45 = vmul.f32 %v6227_v5, %v7553_v37  ;;  %6260 = vtanh.f32 %v4280_v46  ;;  %v4328_v57 = vadd.f32 %v7717_v39, %v7536_v62 }
0x2cdf   : > { %v4413_v27 = vmul.f32 %v6229_v51, %v7553_v37 }
0x2ce0   : > { %v4488_v53 = vsel %vm684_vm2, %v4414_v45, 0.0 }
0x2ce1   : > { %4531 = vadd.xlane.f32.xlu0 %v4530_v55  ;;  %v6231_v55 = vpop.eup %6230  ;;  %v4485_v19 = vsel %vm684_vm2, %v4413_v27, 0.0  ;;  %6262 = vtanh.f32 %v4289_v8 }
0x2ce2   : > { %4504 = vadd.xlane.f32.xlu1 %v4503_v43  ;;  %v6233_v43 = vpop.eup %6232  ;;  %v4422_v28 = vmul.f32 %v6231_v55, %v7553_v37  ;;  %6264 = vtanh.f32 %v4288_v13 }
0x2ce3   : > { %v4421_v2 = vmul.f32 %v6233_v43, %v7553_v37 }
0x2ce4   : > { %v4512_v20 = vsel %vm684_vm2, %v4422_v28, 0.0 }
0x2ce5   : > { %4555 = vadd.xlane.f32.xlu0 %v4554_v29  ;;  %v6235_v29 = vpop.eup %6234  ;;  %v4509_v12 = vsel %vm684_vm2, %v4421_v2, 0.0  ;;  %6266 = vtanh.f32 %v4297_v50 }
0x2ce6   : > { %4528 = vadd.xlane.f32.xlu1 %v4527_v58  ;;  %v6237_v58 = vpop.eup %6236  ;;  %v4430_v10 = vmul.f32 %v6235_v29, %v7553_v37  ;;  %6268 = vtanh.f32 %v4296_v49  ;;  %v4320_v29 = vadd.f32 %v7717_v39, %v7527_v56 }
0x2ce7   : > { %v4429_v18 = vmul.f32 %v6237_v58, %v7553_v37 }
0x2ce8   : > { %v4536_v11 = vsel %vm684_vm2, %v4430_v10, 0.0 }
0x2ce9   : > { %4603 = vadd.xlane.f32.xlu0 %v4602_v3  ;;  %v6239_v3 = vpop.eup %6238  ;;  %v4533_v0 = vsel %vm684_vm2, %v4429_v18, 0.0  ;;  %6270 = vtanh.f32 %v4305_v59 }
0x2cea   : > { %4552 = vadd.xlane.f32.xlu1 %v4551_v61  ;;  %v6241_v61 = vpop.eup %6240  ;;  %v4438_v22 = vmul.f32 %v6239_v3, %v7553_v37  ;;  %6272 = vtanh.f32 %v4304_v41 }
0x2ceb   : > { %v4437_v44 = vmul.f32 %v6241_v61, %v7553_v37  ;;  %v4337_v61 = vadd.f32 %v7699_v14, %v7534_v1 }
0x2cec   : > { %v4560_v48 = vsel %vm684_vm2, %v4438_v22, 0.0 }
0x2ced   : > { %4651 = vadd.xlane.f32.xlu0 %v4650_v40  ;;  %v6243_v40 = vpop.eup %6242  ;;  %v4557_v36 = vsel %vm684_vm2, %v4437_v44, 0.0 }
0x2cee   : > { %4576 = vadd.xlane.f32.xlu1 %v4575_v7  ;;  %v6245_v7 = vpop.eup %6244  ;;  %v4454_v63 = vmul.f32 %v6243_v40, %v7553_v37 }
0x2cef   : > { %v4445_v54 = vmul.f32 %v6245_v7, %v7553_v37 }
0x2cf1   : > { %4480 = vadd.xlane.f32.xlu0 %v4479_v47  ;;  %v6247_v47 = vpop.eup %6246 }
0x2cf2   : > { %4624 = vadd.xlane.f32.xlu1 %v4623_v35  ;;  %v6249_v25 = vpop.eup %6248  ;;  %v4608_v35 = vsel %vm684_vm2, %v4454_v63, 0.0  ;;  %v4470_v15 = vmul.f32 %v6247_v47, %v7553_v37 }
0x2cf3   : > { %v6251_v31 = vpop.eup %6250  ;;  %v4461_v30 = vmul.f32 %v6249_v25, %v7553_v37 }
0x2cf4   : > { %v6253_v32 = vpop.eup %6252  ;;  %v4656_v5 = vsel %vm684_vm2, %v4470_v15, 0.0 }
0x2cf5   : > { %4600 = vadd.xlane.f32.xlu0 %v4599_v9  ;;  %v4581_v9 = vsel %vm684_vm2, %v4445_v54, 0.0  ;;  %v6255_v52 = vpop.eup %6254  ;;  %v4629_v51 = vsel %vm684_vm2, %v4461_v30, 0.0 }
0x2cf6   : > { %4585 = vadd.xlane.f32.xlu1 %v4584_v16  ;;  %v4453_v16 = vmul.f32 %v6251_v31, %v7553_v37  ;;  %v6257_v45 = vpop.eup %6256  ;;  %v4469_v55 = vmul.f32 %v6255_v52, %v7553_v37 }
0x2cf7   : > { %v6259_v27 = vpop.eup %6258  ;;  %v4464_v43 = vmul.f32 %v6257_v45, %v7553_v37 }
0x2cf8   : > { %v4605_v17 = vsel %vm684_vm2, %v4453_v16, 0.0  ;;  %v4653_v28 = vsel %vm684_vm2, %v4469_v55, 0.0  ;;  %v4416_v26 = vmul.f32 %v6259_v27, %v7553_v37  ;;  %v5298_v16 = vld [vmem:[#allocation2] ss:$0 sm:$0xff] }
0x2cf9   : > { %4648 = vadd.xlane.f32.xlu0 %v4647_v38  ;;  %v4448_v38 = vmul.f32 %v6253_v32, %v7553_v37  ;;  %v4638_v2 = vsel %vm684_vm2, %v4464_v43, 0.0 }
0x2cfa   : > { %4633 = vadd.xlane.f32.xlu1 %v4632_v6  ;;  %v4321_v6 = vadd.f32 %v7699_v14, %v7527_v56  ;;  %v4336_v56 = vadd.f32 %v7717_v39, %v7534_v1 }
0x2cfb   : > { %v4590_v42 = vsel %vm684_vm2, %v4448_v38, 0.0 }
0x2cfc   : > { %6274 = vtanh.f32 %v4321_v6 }
0x2cfd   : > { %4489 = vadd.xlane.f32.xlu0 %v4488_v53  ;;  %v6261_v53 = vpop.eup %6260  ;;  %6276 = vtanh.f32 %v4312_v21 }
0x2cfe   : > { %4486 = vadd.xlane.f32.xlu1 %v4485_v19  ;;  %v6263_v19 = vpop.eup %6262  ;;  %v4415_v24 = vmul.f32 %v6261_v53, %v7553_v37  ;;  %6278 = vtanh.f32 %v4320_v29 }
0x2cff   : > { %v6265_v58 = vpop.eup %6264  ;;  %v4424_v10 = vmul.f32 %v6263_v19, %v7553_v37  ;;  %6280 = vtanh.f32 %v4328_v57 }
0x2d00   : > { %v6267_v60 = vpop.eup %6266  ;;  %v4491_v3 = vsel %vm684_vm2, %v4415_v24, 0.0  ;;  %6282 = vtanh.f32 %v4336_v56 }
0x2d01   : > { %4513 = vadd.xlane.f32.xlu0 %v4512_v20  ;;  %v4494_v20 = vsel %vm684_vm2, %v4416_v26, 0.0  ;;  %v6269_v18 = vpop.eup %6268  ;;  %v4518_v62 = vsel %vm684_vm2, %v4424_v10, 0.0  ;;  %v4432_v4 = vmul.f32 %v6267_v60, %v7553_v37  ;;  %6284 = vtanh.f32 %v4337_v61 }
0x2d02   : > { %4510 = vadd.xlane.f32.xlu1 %v4509_v12  ;;  %v4423_v12 = vmul.f32 %v6265_v58, %v7553_v37  ;;  %v4431_v22 = vmul.f32 %v6269_v18, %v7553_v37 }
0x2d03   : > { %v4542_v40 = vsel %vm684_vm2, %v4432_v4, 0.0 }
0x2d04   : > { %v4515_v39 = vsel %vm684_vm2, %v4423_v12, 0.0  ;;  %v4539_v46 = vsel %vm684_vm2, %v4431_v22, 0.0 }
0x2d05   : > { %4537 = vadd.xlane.f32.xlu0 %v4536_v11  ;;  %v6271_v11 = vpop.eup %6270 }
0x2d06   : > { %4534 = vadd.xlane.f32.xlu1 %v4533_v0  ;;  %v6273_v23 = vpop.eup %6272  ;;  %v4440_v0 = vmul.f32 %v6271_v11, %v7553_v37 }
0x2d07   : > { %v4439_v7 = vmul.f32 %v6273_v23, %v7553_v37 }
0x2d08   : > { %v4566_v14 = vsel %vm684_vm2, %v4440_v0, 0.0 }
0x2d09   : > { %4561 = vadd.xlane.f32.xlu0 %v4560_v48  ;;  %v6275_v44 = vpop.eup %6274  ;;  %v4563_v8 = vsel %vm684_vm2, %v4439_v7, 0.0 }
0x2d0a   : > { %4558 = vadd.xlane.f32.xlu1 %v4557_v36  ;;  %v6277_v1 = vpop.eup %6276  ;;  %v4456_v48 = vmul.f32 %v6275_v44, %v7553_v37 }
0x2d0b   : > { %v6279_v63 = vpop.eup %6278  ;;  %v4447_v47 = vmul.f32 %v6277_v1, %v7553_v37 }
0x2d0c   : > { %v6281_v36 = vpop.eup %6280  ;;  %v4614_v54 = vsel %vm684_vm2, %v4456_v48, 0.0  ;;  %v4455_v13 = vmul.f32 %v6279_v63, %v7553_v37 }
0x2d0d   : > { %4609 = vadd.xlane.f32.xlu0 %v4608_v35  ;;  %v6283_v25 = vpop.eup %6282  ;;  %v4587_v35 = vsel %vm684_vm2, %v4447_v47, 0.0  ;;  %v4463_v15 = vmul.f32 %v6281_v36, %v7553_v37 }
0x2d0e   : > { %4582 = vadd.xlane.f32.xlu1 %v4581_v9  ;;  %v4611_v50 = vsel %vm684_vm2, %v4455_v13, 0.0  ;;  %v4471_v31 = vmul.f32 %v6283_v25, %v7553_v37  ;;  %v6285_v9 = vpop.eup %6284 }
0x2d0f   : > { %v4635_v30 = vsel %vm684_vm2, %v4463_v15, 0.0  ;;  %v4472_v32 = vmul.f32 %v6285_v9, %v7553_v37 }
0x2d10   : > { %v4659_v49 = vsel %vm684_vm2, %v4471_v31, 0.0 }
0x2d11   : > { %4657 = vadd.xlane.f32.xlu0 %v4656_v5  ;;  %v4662_v5 = vsel %vm684_vm2, %v4472_v32, 0.0 }
0x2d12   : > { %4630 = vadd.xlane.f32.xlu1 %v4629_v51 }
0x2d15   : > { %4606 = vadd.xlane.f32.xlu0 %v4605_v17 }
0x2d16   : > { %4591 = vadd.xlane.f32.xlu1 %v4590_v42 }
0x2d19   : > { %4654 = vadd.xlane.f32.xlu0 %v4653_v28 }
0x2d1a   : > { %4639 = vadd.xlane.f32.xlu1 %v4638_v2 }
0x2d1d   : > { %4495 = vadd.xlane.f32.xlu0 %v4494_v20 }
0x2d1e   : > { %4492 = vadd.xlane.f32.xlu1 %v4491_v3 }
0x2d21   : > { %4519 = vadd.xlane.f32.xlu0 %v4518_v62 }
0x2d22   : > { %4516 = vadd.xlane.f32.xlu1 %v4515_v39 }
0x2d25   : > { %4543 = vadd.xlane.f32.xlu0 %v4542_v40 }
0x2d26   : > { %4540 = vadd.xlane.f32.xlu1 %v4539_v46 }
0x2d29   : > { %4567 = vadd.xlane.f32.xlu0 %v4566_v14 }
0x2d2a   : > { %4564 = vadd.xlane.f32.xlu1 %v4563_v8 }
0x2d2d   : > { %4615 = vadd.xlane.f32.xlu0 %v4614_v54 }
0x2d2e   : > { %4588 = vadd.xlane.f32.xlu1 %v4587_v35 }
0x2d31   : > { %4612 = vadd.xlane.f32.xlu0 %v4611_v50 }
0x2d32   : > { %4636 = vadd.xlane.f32.xlu1 %v4635_v30 }
0x2d35   : > { %4660 = vadd.xlane.f32.xlu0 %v4659_v49 }
0x2d39   : > { %4663 = vadd.xlane.f32.xlu0 %v4662_v5  ;;  %v4804_v5 = vand.u32 127, %v528_v33 }
0x2d42   : > { %v7797_v59 = vpop.xlane.xlu0 %4501 }
0x2d43   : > { %v7799_v52 = vpop.xlane.xlu1 %4477  ;;  %4672 = vperm.xlu1 %5900, %v5298_v16  }
0x2d46   : > { %v7801_v51 = vpop.xlane.xlu0 %4525 }
0x2d47   : > { %v7803_v38 = vpop.xlane.xlu1 %4597 }
0x2d4a   : > { %v7805_v41 = vpop.xlane.xlu0 %4549 }
0x2d4b   : > { %v7807_v45 = vpop.xlane.xlu1 %4621 }
0x2d4e   : > { %v7809_v17 = vpop.xlane.xlu0 %4573 }
0x2d4f   : > { %v7811_v37 = vpop.xlane.xlu1 %4645 }
0x2d50   : > { %8479 = vst [vmem:[#allocation4_spill] sm:$0xff] %v7811_v37 }
0x2d52   : > { %v4475_v55 = vpop.xlane.xlu0 %4474 }
0x2d53   : > { %v7813_v6 = vpop.xlane.xlu1 %4498 }
0x2d56   : > { %v7815_v27 = vpop.xlane.xlu0 %4594 }
0x2d57   : > { %v7817_v42 = vpop.xlane.xlu1 %4522 }
0x2d5a   : > { %v7819_v43 = vpop.xlane.xlu0 %4618 }
0x2d5b   : > { %v7821_v21 = vpop.xlane.xlu1 %4546 }
0x2d5e   : > { %v7823_v53 = vpop.xlane.xlu0 %4642 }
0x2d5f   : > { %8480 = vst [vmem:[#allocation5_spill] sm:$0xff] %v7823_v53  ;;  %v7825_v28 = vpop.xlane.xlu1 %4570 }
0x2d62   : > { %v4484_v26 = vpop.xlane.xlu0 %4483 }
0x2d63   : > { %v7827_v29 = vpop.xlane.xlu1 %4579 }
0x2d66   : > { %v4508_v19 = vpop.xlane.xlu0 %4507 }
0x2d67   : > { %v7829_v2 = vpop.xlane.xlu1 %4627 }
0x2d6a   : > { %v7831_v24 = vpop.xlane.xlu0 %4531 }
0x2d6b   : > { %v4505_v57 = vpop.xlane.xlu1 %4504 }
0x2d6e   : > { %v7833_v58 = vpop.xlane.xlu0 %4555 }
0x2d6f   : > { %v4529_v20 = vpop.xlane.xlu1 %4528 }
0x2d72   : > { %v7835_v10 = vpop.xlane.xlu0 %4603 }
0x2d73   : > { %v7837_v56 = vpop.xlane.xlu1 %4552 }
0x2d76   : > { %v7839_v60 = vpop.xlane.xlu0 %4651 }
0x2d77   : > { %8481 = vst [vmem:[#allocation6_spill] sm:$0xff] %v7839_v60  ;;  %v7841_v3 = vpop.xlane.xlu1 %4576 }
0x2d7a   : > { %v4481_v12 = vpop.xlane.xlu0 %4480 }
0x2d7b   : > { %v7843_v18 = vpop.xlane.xlu1 %4624 }
0x2d7e   : > { %v7845_v62 = vpop.xlane.xlu0 %4600 }
0x2d7f   : > { %v7847_v4 = vpop.xlane.xlu1 %4585 }
0x2d82   : > { %v7849_v61 = vpop.xlane.xlu0 %4648 }
0x2d83   : > { %8482 = vst [vmem:[#allocation7_spill] sm:$0xff] %v7849_v61  ;;  %v7851_v11 = vpop.xlane.xlu1 %4633 }
0x2d86   : > { %v4490_v39 = vpop.xlane.xlu0 %4489 }
0x2d87   : > { %v4487_v22 = vpop.xlane.xlu1 %4486 }
0x2d8a   : > { %v4514_v23 = vpop.xlane.xlu0 %4513 }
0x2d8b   : > { %v4511_v40 = vpop.xlane.xlu1 %4510 }
0x2d8e   : > { %v4538_v0 = vpop.xlane.xlu0 %4537 }
0x2d8f   : > { %v4535_v44 = vpop.xlane.xlu1 %4534 }
0x2d92   : > { %v4562_v46 = vpop.xlane.xlu0 %4561 }
0x2d93   : > { %v4559_v7 = vpop.xlane.xlu1 %4558 }
0x2d96   : > { %v7853_v1 = vpop.xlane.xlu0 %4609 }
0x2d97   : > { %v4583_v14 = vpop.xlane.xlu1 %4582 }
0x2d9a   : > { %v7855_v48 = vpop.xlane.xlu0 %4657 }
0x2d9b   : > { %8483 = vst [vmem:[#allocation8_spill] sm:$0xff] %v7855_v48  ;;  %v7857_v63 = vpop.xlane.xlu1 %4630  ;;  %v7867_v48 = vsub.s32 %v4804_v5, %v6562_v34 }
0x2d9e   : > { %v7859_v8 = vpop.xlane.xlu0 %4606 }
0x2d9f   : > { %v4592_v47 = vpop.xlane.xlu1 %4591 }
0x2da2   : > { %v7861_v36 = vpop.xlane.xlu0 %4654 }
0x2da3   : > { %8484 = vst [vmem:[#allocation9_spill] sm:$0xff] %v7861_v36  ;;  %v7863_v54 = vpop.xlane.xlu1 %4639 }
0x2da4   : > { %8485 = vst [vmem:[#allocation10_spill] sm:$0xff] %v7863_v54 }
0x2da6   : > { %v4496_v13 = vpop.xlane.xlu0 %4495 }
0x2da7   : > { %v4493_v25 = vpop.xlane.xlu1 %4492 }
0x2daa   : > { %v4520_v35 = vpop.xlane.xlu0 %4519 }
0x2dab   : > { %v4517_v15 = vpop.xlane.xlu1 %4516 }
0x2dae   : > { %v4544_v50 = vpop.xlane.xlu0 %4543 }
0x2daf   : > { %v4541_v31 = vpop.xlane.xlu1 %4540 }
0x2db2   : > { %v4568_v30 = vpop.xlane.xlu0 %4567 }
0x2db3   : > { %v4565_v9 = vpop.xlane.xlu1 %4564 }
0x2db6   : > { %v4616_v32 = vpop.xlane.xlu0 %4615 }
0x2db7   : > { %v4589_v49 = vpop.xlane.xlu1 %4588 }
0x2dba   : > { %v4613_v36 = vpop.xlane.xlu0 %4612 }
0x2dbb   : > { %v4637_v16 = vpop.xlane.xlu1 %4636 }
0x2dbf   : > { %v7869_v60 = vpop.permute.xlu1 %4672 }
0x2dc0   : > { %v7872_v61 = vadd.f32 %v7869_v60, %v4475_v55  ;;  %v7876_v37 = vadd.f32 %v7869_v60, %v7799_v52  ;;  %v7879_v53 = vadd.f32 %v7869_v60, %v4481_v12  ;;  %v7882_v54 = vadd.f32 %v7869_v60, %v4484_v26 }
0x2dc1   : > { %v7885_v33 = vadd.f32 %v7869_v60, %v4487_v22  ;;  %v7888_v34 = vadd.f32 %v7869_v60, %v4490_v39  ;;  %v7891_v5 = vadd.f32 %v7869_v60, %v4493_v25  ;;  %v7894_v55 = vadd.f32 %v7869_v60, %v4496_v13 }
0x2dc2   : > { %v7898_v52 = vadd.f32 %v7869_v60, %v7813_v6  ;;  %v7902_v26 = vadd.f32 %v7869_v60, %v7797_v59  ;;  %v7905_v12 = vadd.f32 %v7869_v60, %v4505_v57  ;;  %v7908_v39 = vadd.f32 %v7869_v60, %v4508_v19 }
0x2dc3   : > { %v7911_v22 = vadd.f32 %v7869_v60, %v4511_v40  ;;  %v7914_v13 = vadd.f32 %v7869_v60, %v4514_v23  ;;  %v7917_v25 = vadd.f32 %v7869_v60, %v4517_v15  ;;  %v7920_v6 = vadd.f32 %v7869_v60, %v4520_v35 }
0x2dc4   : > { %v7924_v59 = vadd.f32 %v7869_v60, %v7817_v42  ;;  %v7928_v19 = vadd.f32 %v7869_v60, %v7801_v51  ;;  %v7931_v57 = vadd.f32 %v7869_v60, %v4529_v20  ;;  %v7935_v23 = vadd.f32 %v7869_v60, %v7831_v24  ;;  %v4661_v51 = vpop.xlane.xlu0 %4660 }
0x2dc5   : > { %v7938_v40 = vadd.f32 %v7869_v60, %v4535_v44  ;;  %v7941_v35 = vadd.f32 %v7869_v60, %v4538_v0  ;;  %v7944_v42 = vadd.f32 %v7869_v60, %v4541_v31  ;;  %v7947_v15 = vadd.f32 %v7869_v60, %v4544_v50 }
0x2dc6   : > { %v7951_v20 = vadd.f32 %v7869_v60, %v7821_v21  ;;  %v7955_v24 = vadd.f32 %v7869_v60, %v7805_v41  ;;  %v7959_v44 = vadd.f32 %v7869_v60, %v7837_v56  ;;  %v7963_v0 = vadd.f32 %v7869_v60, %v7833_v58 }
0x2dc7   : > { %v7966_v50 = vadd.f32 %v7869_v60, %v4559_v7  ;;  %v7969_v31 = vadd.f32 %v7869_v60, %v4562_v46  ;;  %v7972_v21 = vadd.f32 %v7869_v60, %v4565_v9  ;;  %v7975_v41 = vadd.f32 %v7869_v60, %v4568_v30 }
0x2dc8   : > { %v7979_v56 = vadd.f32 %v7869_v60, %v7825_v28  ;;  %v7983_v58 = vadd.f32 %v7869_v60, %v7809_v17  ;;  %v7987_v7 = vadd.f32 %v7869_v60, %v7841_v3  ;;  %v7991_v46 = vadd.f32 %v7869_v60, %v7827_v29 }
0x2dc9   : > { %v7994_v9 = vadd.f32 %v7869_v60, %v4583_v14  ;;  %v7998_v30 = vadd.f32 %v7869_v60, %v7847_v4  ;;  %v8001_v28 = vadd.f32 %v7869_v60, %v4589_v49  ;;  %v8004_v17 = vadd.f32 %v7869_v60, %v4592_v47 }
0x2dca   : > { %v8008_v3 = vadd.f32 %v7869_v60, %v7815_v27  ;;  %v8012_v29 = vadd.f32 %v7869_v60, %v7803_v38  ;;  %v8016_v14 = vadd.f32 %v7869_v60, %v7845_v62  ;;  %v8020_v4 = vadd.f32 %v7869_v60, %v7835_v10  ;;  %v4664_v62 = vpop.xlane.xlu0 %4663 }
0x2dcb   : > { %8486 = vst [vmem:[#allocation11_spill] sm:$0xff] %v7998_v30  ;;  %8487 = vst [vmem:[#allocation12_spill] sm:$0xff] %v8001_v28  ;;  %v8024_v47 = vadd.f32 %v7869_v60, %v7859_v8  ;;  %v8028_v27 = vadd.f32 %v7869_v60, %v7853_v1  ;;  %v8031_v49 = vadd.f32 %v7869_v60, %v4613_v36 }
0x2dcc   : > { %8488 = vst [vmem:[#allocation13_spill] sm:$0xff] %v8004_v17  ;;  %8489 = vst [vmem:[#allocation14_spill] sm:$0xff] %v8016_v14  ;;  %v8034_v38 = vadd.f32 %v7869_v60, %v4616_v32  ;;  %v8038_v14 = vadd.f32 %v7869_v60, %v7819_v43  ;;  %v8042_v10 = vadd.f32 %v7869_v60, %v7807_v45  ;;  %v8500_v45 = vld [vmem:[#allocation10_spill] sm:$0xff] }
0x2dcd   : > { %8490 = vst [vmem:[#allocation15_spill] sm:$0xff] %v8024_v47  ;;  %8491 = vst [vmem:[#allocation16_spill] sm:$0xff] %v8028_v27  ;;  %v8046_v8 = vadd.f32 %v7869_v60, %v7843_v18  ;;  %v8050_v1 = vadd.f32 %v7869_v60, %v7829_v2  ;;  %v8054_v36 = vadd.f32 %v7869_v60, %v7857_v63  ;;  %v8502_v18 = vld [vmem:[#allocation5_spill] sm:$0xff]  ;;  %v8504_v2 = vld [vmem:[#allocation4_spill] sm:$0xff] }
0x2dce   : > { %8492 = vst [vmem:[#allocation17_spill] sm:$0xff] %v8031_v49  ;;  %8493 = vst [vmem:[#allocation18_spill] sm:$0xff] %v8034_v38  ;;  %v8058_v43 = vadd.f32 %v7869_v60, %v7851_v11  ;;  %v8061_v32 = vadd.f32 %v7869_v60, %v4637_v16  ;;  %v8505_v63 = vld [vmem:[#allocation7_spill] sm:$0xff]  ;;  %v8506_v11 = vld [vmem:[#allocation6_spill] sm:$0xff] }
0x2dcf   : > { %8494 = vst [vmem:[#allocation19_spill] sm:$0xff] %v8042_v10  ;;  %8495 = vst [vmem:[#allocation20_spill] sm:$0xff] %v8046_v8  ;;  %v8065_v10 = vadd.f32 %v7869_v60, %v8500_v45  ;;  %v8069_v8 = vadd.f32 %v7869_v60, %v8502_v18  ;;  %v8081_v16 = vadd.f32 %v7869_v60, %v8506_v11 }
0x2dd0   : > { %8496 = vst [vmem:[#allocation21_spill] sm:$0xff] %v8050_v1  ;;  %8497 = vst [vmem:[#allocation22_spill] sm:$0xff] %v8054_v36  ;;  %v8073_v1 = vadd.f32 %v7869_v60, %v8504_v2  ;;  %v8077_v36 = vadd.f32 %v7869_v60, %v8505_v63  ;;  %v8095_v2 = vadd.f32 %v7869_v60, %v4664_v62 }
0x2dd1   : > { %8498 = vst [vmem:[#allocation23_spill] sm:$0xff] %v8058_v43  ;;  %8499 = vst [vmem:[#allocation24_spill] sm:$0xff] %v8061_v32  ;;  %v8507_v32 = vld [vmem:[#allocation9_spill] sm:$0xff]  ;;  %v4916_v62 = vrot.slane %v7963_v0, %v7867_v48  ;;  %v4920_v11 = vrot.slane %v7966_v50, %v7867_v48  ;;  %v4968_v50 = vrot.slane %v8008_v3, %v7867_v48 }
0x2dd2   : > { %8501 = vst [vmem:[#allocation10_spill] sm:$0xff] %v8065_v10  ;;  %8503 = vst [vmem:[#allocation5_spill] sm:$0xff] %v8069_v8  ;;  %v8085_v45 = vadd.f32 %v7869_v60, %v8507_v32  ;;  %v8509_v10 = vld [vmem:[#allocation8_spill] sm:$0xff]  ;;  %v8092_v8 = vadd.f32 %v7869_v60, %v4661_v51  ;;  %v4872_v32 = vrot.slane %v7924_v59, %v7867_v48 }
0x2dd3   : > { %v8089_v18 = vadd.f32 %v7869_v60, %v8509_v10  ;;  %v4908_v51 = vrot.slane %v7955_v24, %v7867_v48  ;;  %v4912_v60 = vrot.slane %v7959_v44, %v7867_v48  ;;  %v4972_v10 = vrot.slane %v8012_v29, %v7867_v48 }
0x2dd4   : > { %8508 = vst [vmem:[#allocation4_spill] sm:$0xff] %v8085_v45  ;;  %v4876_v45 = vrot.slane %v7928_v19, %v7867_v48  ;;  %v4904_v19 = vrot.slane %v7951_v20, %v7867_v48  ;;  %v8511_v20 = vld [vmem:[#allocation14_spill] sm:$0xff]  ;;  %v5000_v29 = vrot.slane %v8038_v14, %v7867_v48  ;;  %v5036_v27 = vrot.slane %v8073_v1, %v7867_v48 }
0x2dd5   : > { %v5040_v47 = vrot.slane %v8077_v36, %v7867_v48  ;;  %v8520_v1 = vrot.slane %v7872_v61, %v7867_v48  ;;  %v8521_v36 = vrot.slane %v7876_v37, %v7867_v48  ;;  %v8524_v61 = vrot.slane %v7879_v53, %v7867_v48 }
0x2dd6   : > { %v8512_v59 = vld [vmem:[#allocation19_spill] sm:$0xff]  ;;  %v8513_v17 = vld [vmem:[#allocation20_spill] sm:$0xff]  ;;  %v8528_v53 = vrot.slane %v7908_v39, %v7867_v48  ;;  %v8532_v39 = vrot.slane %v7938_v40, %v7867_v48 }
0x2dd7   : > { %v5004_v24 = vrot.slane %v8512_v59, %v7867_v48  ;;  %v5008_v28 = vrot.slane %v8513_v17, %v7867_v48  ;;  %v8514_v44 = vld [vmem:[#allocation21_spill] sm:$0xff]  ;;  %v8515_v63 = vld [vmem:[#allocation22_spill] sm:$0xff]  ;;  %v5052_v59 = vrot.slane %v8089_v18, %v7867_v48  ;;  %v5056_v17 = vrot.slane %v8092_v8, %v7867_v48 }
0x2dd8   : > { %v5012_v30 = vrot.slane %v8514_v44, %v7867_v48  ;;  %v5016_v3 = vrot.slane %v8515_v63, %v7867_v48  ;;  %v8516_v0 = vld [vmem:[#allocation24_spill] sm:$0xff]  ;;  %v5044_v63 = vrot.slane %v8081_v16, %v7867_v48  ;;  %v5062_v16 = vsel %vm5061_vm4, %v8521_v36, %v8520_v1 }
0x2dd9   : > { %v8518_v49 = vld [vmem:[#allocation5_spill] sm:$0xff]  ;;  %v8523_v18 = vrot.slane %v7902_v26, %v7867_v48  ;;  %v5082_v8 = vsel %vm5061_vm4, %v4876_v45, %v4872_v32  ;;  %v5064_v37 = vsel %vm5063_vm5, %v8524_v61, %v5062_v16  ;;  %v8525_v1 = vrot.slane %v7905_v12, %v7867_v48 }
0x2dda   : > { %v5032_v44 = vrot.slane %v8518_v49, %v7867_v48  ;;  %v5089_v49 = vsel %vm5061_vm4, %v4908_v51, %v4904_v19  ;;  %v8526_v26 = vrot.slane %v7931_v57, %v7867_v48  ;;  %v8527_v32 = vrot.slane %v7882_v54, %v7867_v48 }
0x2ddb   : > { %v8519_v14 = vld [vmem:[#allocation4_spill] sm:$0xff]  ;;  %v5090_v45 = vsel %vm5063_vm5, %v4912_v60, %v5089_v49  ;;  %v8529_v12 = vrot.slane %v7935_v23, %v7867_v48  ;;  %v8530_v60 = vrot.slane %v7885_v33, %v7867_v48  ;;  %v8531_v54 = vrot.slane %v7911_v22, %v7867_v48 }
0x2ddc   : > { %v5048_v43 = vrot.slane %v8519_v14, %v7867_v48  ;;  %v8522_v14 = vrot.slane %v7898_v52, %v7867_v48  ;;  %v5083_v36 = vsel %vm5063_vm5, %v8526_v26, %v5082_v8  ;;  %v5066_v51 = vsel %vm5065_vm6, %v8527_v32, %v5064_v37 }
0x2ddd   : > { %v5091_v57 = vsel %vm5065_vm6, %v4916_v62, %v5090_v45  ;;  %v5068_v49 = vsel %vm5067_vm7, %v8530_v60, %v5066_v51  ;;  %v8533_v33 = vrot.slane %v7888_v34, %v7867_v48  ;;  %v8534_v22 = vrot.slane %v7914_v13, %v7867_v48 }
0x2dde   : > { %v5075_v38 = vsel %vm5061_vm4, %v8523_v18, %v8522_v14  ;;  %v5092_v23 = vsel %vm5067_vm7, %v4920_v11, %v5091_v57  ;;  %v8535_v18 = vrot.slane %v7941_v35, %v7867_v48  ;;  %v8536_v8 = vrot.slane %v7969_v31, %v7867_v48 }
0x2ddf   : > { %v5076_v52 = vsel %vm5063_vm5, %v8525_v1, %v5075_v38  ;;  %v5084_v38 = vsel %vm5065_vm6, %v8529_v12, %v5083_v36  ;;  %v5070_v62 = vsel %vm5069_vm8, %v8533_v33, %v5068_v49  ;;  %v8537_v61 = vrot.slane %v7891_v5, %v7867_v48 }
0x2de0   : > { %v5077_v19 = vsel %vm5065_vm6, %v8528_v53, %v5076_v52  ;;  %v5085_v14 = vsel %vm5067_vm7, %v8532_v39, %v5084_v38  ;;  %v5093_v34 = vsel %vm5069_vm8, %v8536_v8, %v5092_v23  ;;  %v8538_v37 = vrot.slane %v7917_v25, %v7867_v48 }
0x2de1   : > { %v5078_v16 = vsel %vm5067_vm7, %v8531_v54, %v5077_v19  ;;  %v5086_v11 = vsel %vm5069_vm8, %v8535_v18, %v5085_v14  ;;  %v5072_v13 = vsel %vm5071_vm9, %v8537_v61, %v5070_v62  ;;  %v8539_v1 = vrot.slane %v7944_v42, %v7867_v48  ;;  %v8556_v54 = vld [vmem:[#allocation16_spill] sm:$0xff]  ;;  %v8558_v14 = vld [vmem:[#allocation23_spill] sm:$0xff] }
0x2de2   : > { %v5079_v40 = vsel %vm5069_vm8, %v8534_v22, %v5078_v16  ;;  %v8540_v31 = vrot.slane %v7972_v21, %v7867_v48  ;;  %v8541_v5 = vrot.slane %v7894_v55, %v7867_v48  ;;  %v8542_v25 = vrot.slane %v7920_v6, %v7867_v48  ;;  %v8560_v62 = vld [vmem:[#allocation12_spill] sm:$0xff] }
0x2de3   : > { %v5080_v35 = vsel %vm5071_vm9, %v8538_v37, %v5079_v40  ;;  %v5087_v52 = vsel %vm5071_vm9, %v8539_v1, %v5086_v11  ;;  %v8543_v42 = vrot.slane %v7947_v15, %v7867_v48  ;;  %v8544_v21 = vrot.slane %v7975_v41, %v7867_v48  ;;  %v8562_v40 = vld [vmem:[#allocation17_spill] sm:$0xff] }
0x2de4   : > { %v5094_v26 = vsel %vm5071_vm9, %v8540_v31, %v5093_v34  ;;  %v5074_v36 = vsel %vm5073_vm10, %v8541_v5, %v5072_v13  ;;  %v5081_v45 = vsel %vm5073_vm10, %v8542_v25, %v5080_v35  ;;  %v8545_v55 = vrot.slane %v7979_v56, %v7867_v48  ;;  %v8565_v13 = vld [vmem:[#allocation13_spill] sm:$0xff]  ;;  %v8567_v35 = vld [vmem:[#allocation18_spill] sm:$0xff] }
0x2de5   : > { %v5088_v32 = vsel %vm5073_vm10, %v8543_v42, %v5087_v52  ;;  %v5095_v51 = vsel %vm5073_vm10, %v8544_v21, %v5094_v26  ;;  %v8546_v53 = vrot.slane %v7983_v58, %v7867_v48  ;;  %v5103_v19 = vsel %vm5061_vm4, %v4972_v10, %v4968_v50  ;;  %5133 = vst.msk [vmem:[%s8296_s24] sm:$0xff] %vm5132_vm11, %v5074_v36  ;;  %v8569_v31 = vld [vmem:[#allocation10_spill] sm:$0xff] }
0x2de6   : > { %v5110_v12 = vsel %vm5061_vm4, %v5004_v24, %v5000_v29  ;;  %v5117_v15 = vsel %vm5061_vm4, %v5036_v27, %v5032_v44  ;;  %5134 = vst.msk [vmem:[%s8296_s24 + $0x8] sm:$0xff] %vm5132_vm11, %v5081_v45  ;;  %5135 = vst.msk [vmem:[%s8296_s24 + $0x10] sm:$0xff] %vm5132_vm11, %v5088_v32  ;;  %v8547_v41 = vrot.slane %v7987_v7, %v7867_v48 }
0x2de7   : > { %v5096_v6 = vsel %vm5061_vm4, %v8546_v53, %v8545_v55  ;;  %5136 = vst.msk [vmem:[%s8296_s24 + $0x18] sm:$0xff] %vm5132_vm11, %v5095_v51  ;;  %v8548_v58 = vrot.slane %v8511_v20, %v7867_v48  ;;  %v5111_v27 = vsel %vm5063_vm5, %v5008_v28, %v5110_v12  ;;  %v5118_v24 = vsel %vm5063_vm5, %v5040_v47, %v5117_v15  ;;  %v8552_v47 = vld [vmem:[#allocation15_spill] sm:$0xff] }
0x2de8   : > { %v5097_v56 = vsel %vm5063_vm5, %v8547_v41, %v5096_v6  ;;  %v8549_v50 = vrot.slane %v7991_v46, %v7867_v48  ;;  %v8550_v44 = vrot.slane %v8020_v4, %v7867_v48  ;;  %v5112_v38 = vsel %vm5065_vm6, %v5012_v30, %v5111_v27  ;;  %v8554_v30 = vld [vmem:[#allocation11_spill] sm:$0xff] }
0x2de9   : > { %v5104_v10 = vsel %vm5063_vm5, %v8548_v58, %v5103_v19  ;;  %v5119_v20 = vsel %vm5065_vm6, %v5044_v63, %v5118_v24  ;;  %v8551_v57 = vrot.slane %v7994_v9, %v7867_v48  ;;  %v8553_v60 = vrot.slane %v8552_v47, %v7867_v48 }
0x2dea   : > { %v5098_v29 = vsel %vm5065_vm6, %v8549_v50, %v5097_v56  ;;  %v5105_v7 = vsel %vm5065_vm6, %v8550_v44, %v5104_v10  ;;  %v5113_v4 = vsel %vm5067_vm7, %v5016_v3, %v5112_v38  ;;  %v5120_v49 = vsel %vm5067_vm7, %v5048_v43, %v5119_v20 }
0x2deb   : > { %v5099_v28 = vsel %vm5067_vm7, %v8551_v57, %v5098_v29  ;;  %v5106_v46 = vsel %vm5067_vm7, %v8553_v60, %v5105_v7  ;;  %v8555_v63 = vrot.slane %v8554_v30, %v7867_v48  ;;  %v8557_v16 = vrot.slane %v8556_v54, %v7867_v48 }
0x2dec   : > { %v8559_v23 = vrot.slane %v8558_v14, %v7867_v48  ;;  %v5121_v3 = vsel %vm5069_vm8, %v5052_v59, %v5120_v49  ;;  %v8561_v43 = vrot.slane %v8560_v62, %v7867_v48  ;;  %v8563_v18 = vrot.slane %v8562_v40, %v7867_v48 }
0x2ded   : > { %v5100_v9 = vsel %vm5069_vm8, %v8555_v63, %v5099_v28  ;;  %v5107_v39 = vsel %vm5069_vm8, %v8557_v16, %v5106_v46  ;;  %v8564_v8 = vrot.slane %v8516_v0, %v7867_v48  ;;  %v5122_v61 = vsel %vm5071_vm9, %v5056_v17, %v5121_v3 }
0x2dee   : > { %v5114_v33 = vsel %vm5069_vm8, %v8559_v23, %v5113_v4  ;;  %v5101_v22 = vsel %vm5071_vm9, %v8561_v43, %v5100_v9  ;;  %v5108_v11 = vsel %vm5071_vm9, %v8563_v18, %v5107_v39  ;;  %v8566_v59 = vrot.slane %v8565_v13, %v7867_v48 }
0x2def   : > { %v5115_v34 = vsel %vm5071_vm9, %v8564_v8, %v5114_v33  ;;  %v8568_v1 = vrot.slane %v8567_v35, %v7867_v48  ;;  %v8570_v26 = vrot.slane %v8569_v31, %v7867_v48  ;;  %v8571_v0 = vrot.slane %v8095_v2, %v7867_v48 }
0x2df0   : > { %v5102_v37 = vsel %vm5073_vm10, %v8566_v59, %v5101_v22 }
0x2df1   : > { %v5109_v52 = vsel %vm5073_vm10, %v8568_v1, %v5108_v11  ;;  %v5116_v5 = vsel %vm5073_vm10, %v8570_v26, %v5115_v34  ;;  %v5123_v17 = vsel %vm5073_vm10, %v8571_v0, %v5122_v61  ;;  %5137 = vst.msk [vmem:[%s8296_s24 + $0x20] sm:$0xff] %vm5132_vm11, %v5102_v37 }
0x2df2   : > { %5138 = vst.msk [vmem:[%s8296_s24 + $0x28] sm:$0xff] %vm5132_vm11, %v5109_v52  ;;  %5139 = vst.msk [vmem:[%s8296_s24 + $0x30] sm:$0xff] %vm5132_vm11, %v5116_v5 }
0x2df3   : > { %5140 = vst.msk [vmem:[%s8296_s24 + $0x38] sm:$0xff] %vm5132_vm11, %v5123_v17 }
0x2df4 PF: > { %p22_p9 = scmp.ge.s32.totalorder %s6411_s30, 4   ;;  %s8572_s27 = smov %s6309_s28 }
0x2df5   : > { %s8573_s28 = smov %s6420_s16  ;;  %s8574_s29 = smov %s6411_s30 }
0x2df6   :  { %24 = sbr.rel (!%p22_p9) target bundleno = 5 (0x5), region = 145 }

</bundles_post_ra>
